<compile_context>
chip_gen: v6e
topology: v6e:2x2x1
jax: 0.10.0
libtpu: 0.0.40
codegen_flags: <defaults>
</compile_context>

<pallas_src>
import jax
import jax.numpy as jnp
from jax.experimental import pallas as pl
from jax.experimental.pallas import tpu as pltpu

D_MODEL = 8
N_HEADS = 2
DIM_FF = D_MODEL * 2
INPUT_SEQ_LEN = 24
OUTPUT_SEQ_LEN = 24
S_TOTAL = INPUT_SEQ_LEN + OUTPUT_SEQ_LEN
LN_EPS = 1e-5

# Row indices inside the packed (32, 16) "vecs" slab.
_V_W_IN, _V_B_IN, _V_W_OUT, _V_B_OUT = 0, 1, 2, 3
_V_ENC_BQ = 4            # 4..7  : enc  bq, bk, bv, bo
_V_DSA_BQ = 8            # 8..11 : dec self-attn biases
_V_DCA_BQ = 12           # 12..15: dec cross-attn biases
_V_ENC_B1, _V_ENC_B2, _V_DEC_B1, _V_DEC_B2 = 16, 17, 18, 19
_V_ENC_LN1G, _V_ENC_LN1B, _V_ENC_LN2G, _V_ENC_LN2B = 20, 21, 22, 23
_V_DEC_LN1G, _V_DEC_LN1B, _V_DEC_LN2G, _V_DEC_LN2B = 24, 25, 26, 27
_V_DEC_LN3G, _V_DEC_LN3B = 28, 29
_N_VEC_ROWS = 32


# ----------------------------------------------------------------------------
# Pure-jnp reference (same math as the PyTorch module; used only for checking).
# ----------------------------------------------------------------------------
def _layer_norm(x, g, b, eps=LN_EPS):
    m = jnp.mean(x, axis=-1, keepdims=True)
    v = jnp.mean(jnp.square(x - m), axis=-1, keepdims=True)
    return (x - m) * jax.lax.rsqrt(v + eps) * g + b


def _mha_ref(q_in, kv_in, wq, bq, wk, bk, wv, bv, wo, bo, n_heads, mask=None):
    D = wq.shape[0]
    dh = D // n_heads
    scale = 1.0 / jnp.sqrt(jnp.float32(dh))
    q = jnp.dot(q_in, wq, preferred_element_type=jnp.float32) + bq
    k = jnp.dot(kv_in, wk, preferred_element_type=jnp.float32) + bk
    v = jnp.dot(kv_in, wv, preferred_element_type=jnp.float32) + bv
    out = jnp.zeros((q_in.shape[0], D), jnp.float32)
    for h in range(n_heads):
        sl = slice(h * dh, (h + 1) * dh)
        s = jnp.dot(q[:, sl] * scale, k[:, sl].T,
                    preferred_element_type=jnp.float32)
        if mask is not None:
            s = s + mask
        s = s - jnp.max(s, axis=-1, keepdims=True)
        e = jnp.exp(s)
        p = e / jnp.sum(e, axis=-1, keepdims=True)
        oh = jnp.dot(p, v[:, sl], preferred_element_type=jnp.float32)
        out = out + jnp.dot(oh, wo[sl, :], preferred_element_type=jnp.float32)
    return out + bo


def _ffn_ref(x, w1, b1, w2, b2):
    h = jnp.maximum(jnp.dot(x, w1, preferred_element_type=jnp.float32) + b1, 0.0)
    return jnp.dot(h, w2, preferred_element_type=jnp.float32) + b2


def forward_one(src, tgt, p, n_heads=N_HEADS):
    """Reference forward pass for a single batch element.  src/tgt: (S, 1)."""
    s_src, s_tgt = src.shape[0], tgt.shape[0]
    x_src = src * p["w_in"] + p["b_in"] + p["pos"][:s_src, :]
    x_tgt = tgt * p["w_in"] + p["b_in"] + p["pos"][:s_tgt, :]

    row = jax.lax.broadcasted_iota(jnp.int32, (s_tgt, s_tgt), 0)
    col = jax.lax.broadcasted_iota(jnp.int32, (s_tgt, s_tgt), 1)
    causal = jnp.where(col <= row, 0.0, -1e30).astype(jnp.float32)

    a = _mha_ref(x_src, x_src, p["enc_wq"], p["enc_bq"], p["enc_wk"], p["enc_bk"],
                 p["enc_wv"], p["enc_bv"], p["enc_wo"], p["enc_bo"], n_heads)
    x = _layer_norm(x_src + a, p["enc_ln1_g"], p["enc_ln1_b"])
    f = _ffn_ref(x, p["enc_w1"], p["enc_b1"], p["enc_w2"], p["enc_b2"])
    memory = _layer_norm(x + f, p["enc_ln2_g"], p["enc_ln2_b"])

    a = _mha_ref(x_tgt, x_tgt, p["dec_sa_wq"], p["dec_sa_bq"], p["dec_sa_wk"],
                 p["dec_sa_bk"], p["dec_sa_wv"], p["dec_sa_bv"], p["dec_sa_wo"],
                 p["dec_sa_bo"], n_heads, mask=causal)
    y = _layer_norm(x_tgt + a, p["dec_ln1_g"], p["dec_ln1_b"])
    a2 = _mha_ref(y, memory, p["dec_ca_wq"], p["dec_ca_bq"], p["dec_ca_wk"],
                  p["dec_ca_bk"], p["dec_ca_wv"], p["dec_ca_bv"], p["dec_ca_wo"],
                  p["dec_ca_bo"], n_heads)
    y = _layer_norm(y + a2, p["dec_ln2_g"], p["dec_ln2_b"])
    f = _ffn_ref(y, p["dec_w1"], p["dec_b1"], p["dec_w2"], p["dec_b2"])
    y = _layer_norm(y + f, p["dec_ln3_g"], p["dec_ln3_b"])

    out = jnp.sum(y * p["w_out"], axis=-1, keepdims=True) + p["b_out"][0, 0]
    return out


# ----------------------------------------------------------------------------
# Deterministic parameter construction + packing into lane-dense slabs
# ----------------------------------------------------------------------------
def make_params(key, d_model=D_MODEL, dim_ff=DIM_FF, s_total=S_TOTAL):
    D, F = d_model, dim_ff
    shapes = {
        "w_in": (1, D), "b_in": (1, D),
        "pos": (s_total, D),
        "enc_wq": (D, D), "enc_bq": (1, D), "enc_wk": (D, D), "enc_bk": (1, D),
        "enc_wv": (D, D), "enc_bv": (1, D), "enc_wo": (D, D), "enc_bo": (1, D),
        "enc_w1": (D, F), "enc_b1": (1, F), "enc_w2": (F, D), "enc_b2": (1, D),
        "enc_ln1_g": (1, D), "enc_ln1_b": (1, D),
        "enc_ln2_g": (1, D), "enc_ln2_b": (1, D),
        "dec_sa_wq": (D, D), "dec_sa_bq": (1, D), "dec_sa_wk": (D, D), "dec_sa_bk": (1, D),
        "dec_sa_wv": (D, D), "dec_sa_bv": (1, D), "dec_sa_wo": (D, D), "dec_sa_bo": (1, D),
        "dec_ca_wq": (D, D), "dec_ca_bq": (1, D), "dec_ca_wk": (D, D), "dec_ca_bk": (1, D),
        "dec_ca_wv": (D, D), "dec_ca_bv": (1, D), "dec_ca_wo": (D, D), "dec_ca_bo": (1, D),
        "dec_w1": (D, F), "dec_b1": (1, F), "dec_w2": (F, D), "dec_b2": (1, D),
        "dec_ln1_g": (1, D), "dec_ln1_b": (1, D),
        "dec_ln2_g": (1, D), "dec_ln2_b": (1, D),
        "dec_ln3_g": (1, D), "dec_ln3_b": (1, D),
        "w_out": (1, D), "b_out": (1, 1),
    }
    keys = jax.random.split(key, len(shapes))
    params = {}
    for (name, shp), k in zip(shapes.items(), keys):
        if name.endswith("_g"):
            params[name] = jnp.ones(shp, jnp.float32)
        else:
            params[name] = (0.1 * jax.random.normal(k, shp)).astype(jnp.float32)
    return params


def pack_params(p, d_model=D_MODEL, dim_ff=DIM_FF):
    """Pack the ~40 small parameter arrays into 5 lane-dense slabs."""
    D, F = d_model, dim_ff

    def blk(prefix):
        # fused [Wq | Wk | Wv | Wo], all stored (in, out)
        return jnp.concatenate([p[prefix + "wq"], p[prefix + "wk"],
                                p[prefix + "wv"], p[prefix + "wo"]], axis=1)

    attn_w = jnp.stack([blk("enc_"), blk("dec_sa_"), blk("dec_ca_")], axis=0)  # (3,D,4D)
    ffn_w1 = jnp.stack([p["enc_w1"], p["dec_w1"]], axis=0)                     # (2,D,F)
    ffn_w2 = jnp.stack([p["enc_w2"], p["dec_w2"]], axis=0)                     # (2,F,D)

    vecs = jnp.zeros((_N_VEC_ROWS, F), jnp.float32)
    rows = [
        (_V_W_IN, "w_in"), (_V_B_IN, "b_in"), (_V_W_OUT, "w_out"), (_V_B_OUT, "b_out"),
        (_V_ENC_BQ + 0, "enc_bq"), (_V_ENC_BQ + 1, "enc_bk"),
        (_V_ENC_BQ + 2, "enc_bv"), (_V_ENC_BQ + 3, "enc_bo"),
        (_V_DSA_BQ + 0, "dec_sa_bq"), (_V_DSA_BQ + 1, "dec_sa_bk"),
        (_V_DSA_BQ + 2, "dec_sa_bv"), (_V_DSA_BQ + 3, "dec_sa_bo"),
        (_V_DCA_BQ + 0, "dec_ca_bq"), (_V_DCA_BQ + 1, "dec_ca_bk"),
        (_V_DCA_BQ + 2, "dec_ca_bv"), (_V_DCA_BQ + 3, "dec_ca_bo"),
        (_V_ENC_B1, "enc_b1"), (_V_ENC_B2, "enc_b2"),
        (_V_DEC_B1, "dec_b1"), (_V_DEC_B2, "dec_b2"),
        (_V_ENC_LN1G, "enc_ln1_g"), (_V_ENC_LN1B, "enc_ln1_b"),
        (_V_ENC_LN2G, "enc_ln2_g"), (_V_ENC_LN2B, "enc_ln2_b"),
        (_V_DEC_LN1G, "dec_ln1_g"), (_V_DEC_LN1B, "dec_ln1_b"),
        (_V_DEC_LN2G, "dec_ln2_g"), (_V_DEC_LN2B, "dec_ln2_b"),
        (_V_DEC_LN3G, "dec_ln3_g"), (_V_DEC_LN3B, "dec_ln3_b"),
    ]
    for r, name in rows:
        flat = p[name].reshape(-1)
        vecs = vecs.at[r, : flat.shape[0]].set(flat)

    return {"attn_w": attn_w, "ffn_w1": ffn_w1, "ffn_w2": ffn_w2,
            "vecs": vecs, "pos": p["pos"]}


# ----------------------------------------------------------------------------
# Pallas kernel
# ----------------------------------------------------------------------------
def transformer_kernel(src_ref, tgt_ref, attn_w_ref, ffn_w1_ref, ffn_w2_ref,
                       vecs_ref, pos_ref, out_ref):
    bt, s_src, _ = src_ref.shape
    s_tgt = tgt_ref.shape[1]
    D, F, H = D_MODEL, DIM_FF, N_HEADS
    dh = D // H
    scale = dh ** -0.5

    # Whole packed slabs loaded once per grid step (a few vregs total).
    vecs = vecs_ref[...]        # (32, 16)
    attn_w = attn_w_ref[...]    # (3, D, 4D)
    w_ff1 = ffn_w1_ref[...]     # (2, D, F)
    w_ff2 = ffn_w2_ref[...]     # (2, F, D)
    pos = pos_ref[...]          # (S_TOTAL, D)

    def vrow(i, n=D):           # (1, n) slice out of the vector slab
        return vecs[i:i + 1, :n]

    def ln(x, gi, bi):
        m = jnp.mean(x, axis=-1, keepdims=True)
        v = jnp.mean(jnp.square(x - m), axis=-1, keepdims=True)
        return (x - m) * jax.lax.rsqrt(v + LN_EPS) * vrow(gi) + vrow(bi)

    def ffn(x, idx, b1i, b2i):
        h = jnp.dot(x, w_ff1[idx], preferred_element_type=jnp.float32) + vrow(b1i, F)
        h = jnp.maximum(h, 0.0)
        return jnp.dot(h, w_ff2[idx], preferred_element_type=jnp.float32) + vrow(b2i)

    # Head-selection lane masks, built once (no dh=4 lane slicing anywhere).
    lane = jax.lax.broadcasted_iota(jnp.int32, (1, 1, D), 2)
    head_masks = [((lane >= h * dh) & (lane < (h + 1) * dh)).astype(jnp.float32)
                  for h in range(H)]

    def mha(q2, kv2, blk_idx, bias_base, sq, sk, mask_st=None, self_attn=False):
        """Multi-head attention; both heads stacked along the query axis so each
        block does ONE score matmul + ONE softmax + ONE context matmul."""
        wblk = attn_w[blk_idx]                                   # (D, 4D)
        bq, bk, bv, bo = (vrow(bias_base + j) for j in range(4))
        if self_attn:
            # fused QKV: one (M, D) @ (D, 3D) matmul
            qkv = jnp.dot(q2, wblk[:, :3 * D], preferred_element_type=jnp.float32)
            q = qkv[:, 0:D] + bq
            k = qkv[:, D:2 * D] + bk
            v = qkv[:, 2 * D:3 * D] + bv
        else:
            q = jnp.dot(q2, wblk[:, 0:D], preferred_element_type=jnp.float32) + bq
            kv = jnp.dot(kv2, wblk[:, D:3 * D], preferred_element_type=jnp.float32)
            k = kv[:, 0:D] + bk
            v = kv[:, D:2 * D] + bv
        q3 = (q * scale).reshape(bt, sq, D)
        k3 = k.reshape(bt, sk, D)
        v3 = v.reshape(bt, sk, D)

        # Stack heads along q: rows [h*sq, (h+1)*sq) hold head h's queries with
        # non-head lanes zeroed, so the K-contraction over all D lanes equals the
        # per-head dh-contraction.
        q_st = jnp.concatenate([q3 * hm for hm in head_masks], axis=1)  # (bt,H*sq,D)
        s = jnp.einsum('bqd,bkd->bqk', q_st, k3,
                       preferred_element_type=jnp.float32)              # (bt,H*sq,sk)
        if mask_st is not None:
            s = s + mask_st[None]
        s = s - jnp.max(s, axis=-1, keepdims=True)
        e = jnp.exp(s)
        p = e / jnp.sum(e, axis=-1, keepdims=True)
        # Lane masking commutes with the k-contraction: (p_h @ v) * hm == p_h @ (v*hm),
        # so one full-V context matmul and a post-mask puts each head's context in
        # its own output lanes.
        ctx_st = jnp.einsum('bqk,bkd->bqd', p, v3,
                            preferred_element_type=jnp.float32)         # (bt,H*sq,D)
        ctx = ctx_st[:, 0:sq, :] * head_masks[0]
        for h in range(1, H):
            ctx = ctx + ctx_st[:, h * sq:(h + 1) * sq, :] * head_masks[h]
        return jnp.dot(ctx.reshape(bt * sq, D), wblk[:, 3 * D:4 * D],
                       preferred_element_type=jnp.float32) + bo

    # ---- input projection + positional encoding (whole batch tile at once) ----
    w_in = vrow(_V_W_IN)[None]          # (1, 1, D)
    b_in = vrow(_V_B_IN)[None]
    x_src = (src_ref[...] * w_in + b_in + pos[None, :s_src, :]).reshape(bt * s_src, D)
    x_tgt = (tgt_ref[...] * w_in + b_in + pos[None, :s_tgt, :]).reshape(bt * s_tgt, D)

    # causal mask built once per grid step; head-stacked variant for decoder SA
    r = jax.lax.broadcasted_iota(jnp.int32, (s_tgt, s_tgt), 0)
    c = jax.lax.broadcasted_iota(jnp.int32, (s_tgt, s_tgt), 1)
    causal = jnp.where(c <= r, 0.0, -1e30).astype(jnp.float32)
    causal_st = jnp.concatenate([causal] * H, axis=0)                  # (H*s_tgt, s_tgt)

    # ---- encoder layer (post-norm; dropout = identity in eval) ----
    a = mha(x_src, x_src, 0, _V_ENC_BQ, s_src, s_src, self_attn=True)
    x = ln(x_src + a, _V_ENC_LN1G, _V_ENC_LN1B)
    f = ffn(x, 0, _V_ENC_B1, _V_ENC_B2)
    memory = ln(x + f, _V_ENC_LN2G, _V_ENC_LN2B)

    # ---- decoder layer (post-norm) ----
    a = mha(x_tgt, x_tgt, 1, _V_DSA_BQ, s_tgt, s_tgt, mask_st=causal_st,
            self_attn=True)
    y = ln(x_tgt + a, _V_DEC_LN1G, _V_DEC_LN1B)
    a2 = mha(y, memory, 2, _V_DCA_BQ, s_tgt, s_src)
    y = ln(y + a2, _V_DEC_LN2G, _V_DEC_LN2B)
    f = ffn(y, 1, _V_DEC_B1, _V_DEC_B2)
    y = ln(y + f, _V_DEC_LN3G, _V_DEC_LN3B)

    # ---- output projection Linear(D, 1), written as a lane-dense (bt, s_tgt) slab
    w_out = vrow(_V_W_OUT)              # (1, D)
    b_out = vecs[_V_B_OUT:_V_B_OUT + 1, 0:1]   # (1, 1)
    out = jnp.sum(y.reshape(bt, s_tgt, D) * w_out, axis=-1) + b_out
    out_ref[...] = out

    # TODO(synk): dropout layers are identity (eval-mode); training-mode dropout
    # would need pltpu.prng_seed / pltpu.prng_random_bits inside the kernel.


# ----------------------------------------------------------------------------
# Wrapper
# ----------------------------------------------------------------------------
def build_model(packed):
    attn_w = packed["attn_w"]
    ffn_w1 = packed["ffn_w1"]
    ffn_w2 = packed["ffn_w2"]
    vecs = packed["vecs"]
    pos = packed["pos"]

    @jax.jit
    def run(src, tgt):
        B, s_src, _ = src.shape
        s_tgt = tgt.shape[1]
        # Batch tile: whole batch for small B; 8 per step for larger B (keeps the
        # grid >= 2 steps so both v7x TensorCores get work once B grows).
        bt = B if B <= 8 else 8
        pad = (-B) % bt
        src_p, tgt_p = src, tgt
        if pad:
            src_p = jnp.pad(src, ((0, pad), (0, 0), (0, 0)))
            tgt_p = jnp.pad(tgt, ((0, pad), (0, 0), (0, 0)))
        b_pad = B + pad
        grid = (b_pad // bt,)

        out2 = pl.pallas_call(
            transformer_kernel,
            out_shape=jax.ShapeDtypeStruct((b_pad, s_tgt), jnp.float32),
            grid_spec=pltpu.PrefetchScalarGridSpec(
                num_scalar_prefetch=0,
                grid=grid,
                in_specs=[
                    pl.BlockSpec((bt, s_src, 1), lambda b: (b, 0, 0)),
                    pl.BlockSpec((bt, s_tgt, 1), lambda b: (b, 0, 0)),
                    pl.BlockSpec(attn_w.shape, lambda b: (0, 0, 0)),
                    pl.BlockSpec(ffn_w1.shape, lambda b: (0, 0, 0)),
                    pl.BlockSpec(ffn_w2.shape, lambda b: (0, 0, 0)),
                    pl.BlockSpec(vecs.shape, lambda b: (0, 0)),
                    pl.BlockSpec(pos.shape, lambda b: (0, 0)),
                ],
                out_specs=pl.BlockSpec((bt, s_tgt), lambda b: (b, 0)),
            ),
            compiler_params=pltpu.CompilerParams(
                dimension_semantics=("parallel",)),
        )(src_p, tgt_p, attn_w, ffn_w1, ffn_w2, vecs, pos)

        return out2[:B][..., None]   # (B, S_tgt, 1), matching the PyTorch module
    return run


if __name__ == "__main__":
    key = jax.random.PRNGKey(0)
    k_par, k_src, k_tgt = jax.random.split(key, 3)

    params = make_params(k_par)
    packed = pack_params(params)

    batch = 2
    src = jax.random.normal(k_src, (batch, INPUT_SEQ_LEN, 1), jnp.float32)
    tgt = jax.random.normal(k_tgt, (batch, OUTPUT_SEQ_LEN, 1), jnp.float32)

    model = build_model(packed)
    out = model(src, tgt)
    out = jax.block_until_ready(out)
    assert out.shape == (batch, OUTPUT_SEQ_LEN, 1)

    # plain-JAX reference (unfused, per-element math) for a sanity check
    ref = jax.vmap(lambda s, t: forward_one(s, t, params))(src, tgt)
    ref = jax.block_until_ready(ref)
    assert jnp.allclose(out, ref, atol=1e-4, rtol=1e-4), "Pallas result mismatch"

    print("KERNEL_OK")
</pallas_src>

<mosaic_0001>
module attributes {stable_mosaic.version = 11 : i64} {
  func.func @transformer_kernel(%arg0: i32, %arg1: memref<2x24x1xf32, #tpu.memory_space<vmem>>, %arg2: memref<2x24x1xf32, #tpu.memory_space<vmem>>, %arg3: memref<3x8x32xf32, #tpu.memory_space<vmem>>, %arg4: memref<2x8x16xf32, #tpu.memory_space<vmem>>, %arg5: memref<2x16x8xf32, #tpu.memory_space<vmem>>, %arg6: memref<32x16xf32, #tpu.memory_space<vmem>>, %arg7: memref<48x8xf32, #tpu.memory_space<vmem>>, %arg8: memref<2x24xf32, #tpu.memory_space<vmem>>) attributes {dimension_semantics = [#tpu.dimension_semantics<parallel>], iteration_bounds = array<i64: 1>, scalar_prefetch = 0 : i64, scratch_operands = 0 : i64, tpu.core_type = #tpu.core_type<tc>, window_params = [{transform_indices = @transform_0, window_bounds = array<i64: 2, 24, 1>}, {transform_indices = @transform_1, window_bounds = array<i64: 2, 24, 1>}, {pipeline_mode = #tpu.pipeline_mode<synchronous>, transform_indices = @transform_2, window_bounds = array<i64: 3, 8, 32>}, {pipeline_mode = #tpu.pipeline_mode<synchronous>, transform_indices = @transform_3, window_bounds = array<i64: 2, 8, 16>}, {pipeline_mode = #tpu.pipeline_mode<synchronous>, transform_indices = @transform_4, window_bounds = array<i64: 2, 16, 8>}, {pipeline_mode = #tpu.pipeline_mode<synchronous>, transform_indices = @transform_5, window_bounds = array<i64: 32, 16>}, {pipeline_mode = #tpu.pipeline_mode<synchronous>, transform_indices = @transform_6, window_bounds = array<i64: 48, 8>}, {transform_indices = @transform_7, window_bounds = array<i64: 2, 24>}]} {
    %c0 = arith.constant 0 : index
    %c0_0 = arith.constant 0 : index
    %0 = vector.load %arg6[%c0, %c0_0] : memref<32x16xf32, #tpu.memory_space<vmem>>, vector<32x16xf32>
    %c0_1 = arith.constant 0 : index
    %c0_2 = arith.constant 0 : index
    %c0_3 = arith.constant 0 : index
    %1 = vector.load %arg3[%c0_1, %c0_2, %c0_3] : memref<3x8x32xf32, #tpu.memory_space<vmem>>, vector<3x8x32xf32>
    %c0_4 = arith.constant 0 : index
    %c0_5 = arith.constant 0 : index
    %c0_6 = arith.constant 0 : index
    %2 = vector.load %arg4[%c0_4, %c0_5, %c0_6] : memref<2x8x16xf32, #tpu.memory_space<vmem>>, vector<2x8x16xf32>
    %c0_7 = arith.constant 0 : index
    %c0_8 = arith.constant 0 : index
    %c0_9 = arith.constant 0 : index
    %3 = vector.load %arg5[%c0_7, %c0_8, %c0_9] : memref<2x16x8xf32, #tpu.memory_space<vmem>>, vector<2x16x8xf32>
    %c0_10 = arith.constant 0 : index
    %c0_11 = arith.constant 0 : index
    %4 = vector.load %arg7[%c0_10, %c0_11] : memref<48x8xf32, #tpu.memory_space<vmem>>, vector<48x8xf32>
    %5 = tpu.iota {dimensions = array<i32: 2>} : vector<1x1x8xi32>
    %c0_i32 = arith.constant 0 : i32
    %6 = vector.broadcast %c0_i32 : i32 to vector<1x1x8xi32>
    %7 = arith.cmpi sge, %5, %6 : vector<1x1x8xi32>
    %c4_i32 = arith.constant 4 : i32
    %8 = vector.broadcast %c4_i32 : i32 to vector<1x1x8xi32>
    %9 = arith.cmpi slt, %5, %8 : vector<1x1x8xi32>
    %10 = arith.andi %7, %9 : vector<1x1x8xi1>
    %11 = arith.extui %10 : vector<1x1x8xi1> to vector<1x1x8xi32>
    %12 = arith.sitofp %11 : vector<1x1x8xi32> to vector<1x1x8xf32>
    %c4_i32_12 = arith.constant 4 : i32
    %13 = vector.broadcast %c4_i32_12 : i32 to vector<1x1x8xi32>
    %14 = arith.cmpi sge, %5, %13 : vector<1x1x8xi32>
    %c8_i32 = arith.constant 8 : i32
    %15 = vector.broadcast %c8_i32 : i32 to vector<1x1x8xi32>
    %16 = arith.cmpi slt, %5, %15 : vector<1x1x8xi32>
    %17 = arith.andi %14, %16 : vector<1x1x8xi1>
    %18 = arith.extui %17 : vector<1x1x8xi1> to vector<1x1x8xi32>
    %19 = arith.sitofp %18 : vector<1x1x8xi32> to vector<1x1x8xf32>
    %20 = vector.extract_strided_slice %0 {offsets = [0, 0], sizes = [1, 8], strides = [1, 1]} : vector<32x16xf32> to vector<1x8xf32>
    %21 = vector.shape_cast %20 : vector<1x8xf32> to vector<1x1x8xf32>
    %22 = vector.extract_strided_slice %0 {offsets = [1, 0], sizes = [1, 8], strides = [1, 1]} : vector<32x16xf32> to vector<1x8xf32>
    %23 = vector.shape_cast %22 : vector<1x8xf32> to vector<1x1x8xf32>
    %c0_13 = arith.constant 0 : index
    %c0_14 = arith.constant 0 : index
    %c0_15 = arith.constant 0 : index
    %24 = vector.load %arg1[%c0_13, %c0_14, %c0_15] : memref<2x24x1xf32, #tpu.memory_space<vmem>>, vector<2x24x1xf32>
    %25 = vector.broadcast %24 : vector<2x24x1xf32> to vector<2x24x8xf32>
    %26 = vector.broadcast %21 : vector<1x1x8xf32> to vector<2x24x8xf32>
    %27 = arith.mulf %25, %26 : vector<2x24x8xf32>
    %28 = vector.broadcast %23 : vector<1x1x8xf32> to vector<2x24x8xf32>
    %29 = arith.addf %27, %28 : vector<2x24x8xf32>
    %30 = vector.extract_strided_slice %4 {offsets = [0, 0], sizes = [24, 8], strides = [1, 1]} : vector<48x8xf32> to vector<24x8xf32>
    %31 = vector.shape_cast %30 : vector<24x8xf32> to vector<1x24x8xf32>
    %32 = vector.broadcast %31 : vector<1x24x8xf32> to vector<2x24x8xf32>
    %33 = arith.addf %29, %32 : vector<2x24x8xf32>
    %34 = vector.shape_cast %33 : vector<2x24x8xf32> to vector<48x8xf32>
    %c0_16 = arith.constant 0 : index
    %c0_17 = arith.constant 0 : index
    %c0_18 = arith.constant 0 : index
    %35 = vector.load %arg2[%c0_16, %c0_17, %c0_18] : memref<2x24x1xf32, #tpu.memory_space<vmem>>, vector<2x24x1xf32>
    %36 = vector.broadcast %35 : vector<2x24x1xf32> to vector<2x24x8xf32>
    %37 = vector.broadcast %21 : vector<1x1x8xf32> to vector<2x24x8xf32>
    %38 = arith.mulf %36, %37 : vector<2x24x8xf32>
    %39 = vector.broadcast %23 : vector<1x1x8xf32> to vector<2x24x8xf32>
    %40 = arith.addf %38, %39 : vector<2x24x8xf32>
    %41 = vector.extract_strided_slice %4 {offsets = [0, 0], sizes = [24, 8], strides = [1, 1]} : vector<48x8xf32> to vector<24x8xf32>
    %42 = vector.shape_cast %41 : vector<24x8xf32> to vector<1x24x8xf32>
    %43 = vector.broadcast %42 : vector<1x24x8xf32> to vector<2x24x8xf32>
    %44 = arith.addf %40, %43 : vector<2x24x8xf32>
    %45 = vector.shape_cast %44 : vector<2x24x8xf32> to vector<48x8xf32>
    %46 = tpu.iota {dimensions = array<i32: 0>} : vector<24x24xi32>
    %47 = tpu.iota {dimensions = array<i32: 1>} : vector<24x24xi32>
    %48 = arith.cmpi sle, %47, %46 : vector<24x24xi32>
    %cst = arith.constant 0.000000e+00 : f32
    %cst_19 = arith.constant -1.000000e+30 : f32
    %49 = vector.broadcast %cst : f32 to vector<24x24xf32>
    %50 = vector.broadcast %cst_19 : f32 to vector<24x24xf32>
    %51 = arith.select %48, %49, %50 : vector<24x24xi1>, vector<24x24xf32>
    %52 = tpu.concatenate %51, %51 in 0 : vector<24x24xf32>, vector<24x24xf32> -> vector<48x24xf32>
    %53 = vector.extract_strided_slice %1 {offsets = [0, 0, 0], sizes = [1, 8, 32], strides = [1, 1, 1]} : vector<3x8x32xf32> to vector<1x8x32xf32>
    %54 = vector.shape_cast %53 : vector<1x8x32xf32> to vector<8x32xf32>
    %55 = vector.extract_strided_slice %0 {offsets = [4, 0], sizes = [1, 8], strides = [1, 1]} : vector<32x16xf32> to vector<1x8xf32>
    %56 = vector.extract_strided_slice %0 {offsets = [5, 0], sizes = [1, 8], strides = [1, 1]} : vector<32x16xf32> to vector<1x8xf32>
    %57 = vector.extract_strided_slice %0 {offsets = [6, 0], sizes = [1, 8], strides = [1, 1]} : vector<32x16xf32> to vector<1x8xf32>
    %58 = vector.extract_strided_slice %0 {offsets = [7, 0], sizes = [1, 8], strides = [1, 1]} : vector<32x16xf32> to vector<1x8xf32>
    %59 = vector.extract_strided_slice %54 {offsets = [0, 0], sizes = [8, 24], strides = [1, 1]} : vector<8x32xf32> to vector<8x24xf32>
    %cst_20 = arith.constant dense<0.000000e+00> : vector<48x24xf32>
    %60 = tpu.matmul %34, %59, %cst_20 {dimension_numbers = #tpu.dot_dimension_numbers<[1], [0], [0], [1], [0, 0, 1, 1], [], []>} : vector<48x8xf32>, vector<8x24xf32>, vector<48x24xf32> -> vector<48x24xf32>
    %61 = vector.extract_strided_slice %60 {offsets = [0, 0], sizes = [48, 8], strides = [1, 1]} : vector<48x24xf32> to vector<48x8xf32>
    %62 = vector.broadcast %55 : vector<1x8xf32> to vector<48x8xf32>
    %63 = arith.addf %61, %62 : vector<48x8xf32>
    %64 = vector.extract_strided_slice %60 {offsets = [0, 8], sizes = [48, 8], strides = [1, 1]} : vector<48x24xf32> to vector<48x8xf32>
    %65 = vector.broadcast %56 : vector<1x8xf32> to vector<48x8xf32>
    %66 = arith.addf %64, %65 : vector<48x8xf32>
    %67 = vector.extract_strided_slice %60 {offsets = [0, 16], sizes = [48, 8], strides = [1, 1]} : vector<48x24xf32> to vector<48x8xf32>
    %68 = vector.broadcast %57 : vector<1x8xf32> to vector<48x8xf32>
    %69 = arith.addf %67, %68 : vector<48x8xf32>
    %cst_21 = arith.constant 5.000000e-01 : f32
    %70 = vector.broadcast %cst_21 : f32 to vector<48x8xf32>
    %71 = arith.mulf %63, %70 : vector<48x8xf32>
    %72 = vector.shape_cast %71 : vector<48x8xf32> to vector<2x24x8xf32>
    %73 = vector.shape_cast %66 : vector<48x8xf32> to vector<2x24x8xf32>
    %74 = vector.shape_cast %69 : vector<48x8xf32> to vector<2x24x8xf32>
    %75 = vector.broadcast %12 : vector<1x1x8xf32> to vector<2x24x8xf32>
    %76 = arith.mulf %72, %75 : vector<2x24x8xf32>
    %77 = vector.broadcast %19 : vector<1x1x8xf32> to vector<2x24x8xf32>
    %78 = arith.mulf %72, %77 : vector<2x24x8xf32>
    %79 = tpu.concatenate %76, %78 in 1 : vector<2x24x8xf32>, vector<2x24x8xf32> -> vector<2x48x8xf32>
    "tpu.trace_start"() <{level = 10 : i32, message = "bqd,bkd->bqk"}> : () -> ()
    %cst_22 = arith.constant dense<0.000000e+00> : vector<2x48x24xf32>
    %80 = tpu.matmul %79, %73, %cst_22 {dimension_numbers = #tpu.dot_dimension_numbers<[2], [2], [1], [1], [0, 0, 0, 1, 1, 1], [0], [0]>} : vector<2x48x8xf32>, vector<2x24x8xf32>, vector<2x48x24xf32> -> vector<2x48x24xf32>
    "tpu.trace_stop"() : () -> ()
    %cst_23 = arith.constant dense<0xFF800000> : vector<2x48xf32>
    %81 = vector.multi_reduction <maximumf>, %80, %cst_23 [2] : vector<2x48x24xf32> to vector<2x48xf32>
    %82 = vector.shape_cast %81 : vector<2x48xf32> to vector<2x48x1xf32>
    %83 = vector.broadcast %82 : vector<2x48x1xf32> to vector<2x48x24xf32>
    %84 = arith.subf %80, %83 : vector<2x48x24xf32>
    %85 = math.exp %84 : vector<2x48x24xf32>
    %cst_24 = arith.constant dense<0.000000e+00> : vector<2x48xf32>
    %86 = vector.multi_reduction <add>, %85, %cst_24 [2] : vector<2x48x24xf32> to vector<2x48xf32>
    %87 = vector.shape_cast %86 : vector<2x48xf32> to vector<2x48x1xf32>
    %88 = vector.broadcast %87 : vector<2x48x1xf32> to vector<2x48x24xf32>
    %89 = arith.divf %85, %88 : vector<2x48x24xf32>
    "tpu.trace_start"() <{level = 10 : i32, message = "bqk,bkd->bqd"}> : () -> ()
    %cst_25 = arith.constant dense<0.000000e+00> : vector<2x48x8xf32>
    %90 = tpu.matmul %89, %74, %cst_25 {dimension_numbers = #tpu.dot_dimension_numbers<[2], [1], [1], [2], [0, 0, 0, 1, 1, 2], [0], [0]>} : vector<2x48x24xf32>, vector<2x24x8xf32>, vector<2x48x8xf32> -> vector<2x48x8xf32>
    "tpu.trace_stop"() : () -> ()
    %91 = vector.extract_strided_slice %90 {offsets = [0, 0, 0], sizes = [2, 24, 8], strides = [1, 1, 1]} : vector<2x48x8xf32> to vector<2x24x8xf32>
    %92 = vector.broadcast %12 : vector<1x1x8xf32> to vector<2x24x8xf32>
    %93 = arith.mulf %91, %92 : vector<2x24x8xf32>
    %94 = vector.extract_strided_slice %90 {offsets = [0, 24, 0], sizes = [2, 24, 8], strides = [1, 1, 1]} : vector<2x48x8xf32> to vector<2x24x8xf32>
    %95 = vector.broadcast %19 : vector<1x1x8xf32> to vector<2x24x8xf32>
    %96 = arith.mulf %94, %95 : vector<2x24x8xf32>
    %97 = arith.addf %93, %96 : vector<2x24x8xf32>
    %98 = vector.shape_cast %97 : vector<2x24x8xf32> to vector<48x8xf32>
    %99 = vector.extract_strided_slice %54 {offsets = [0, 24], sizes = [8, 8], strides = [1, 1]} : vector<8x32xf32> to vector<8x8xf32>
    %cst_26 = arith.constant dense<0.000000e+00> : vector<48x8xf32>
    %100 = tpu.matmul %98, %99, %cst_26 {dimension_numbers = #tpu.dot_dimension_numbers<[1], [0], [0], [1], [0, 0, 1, 1], [], []>} : vector<48x8xf32>, vector<8x8xf32>, vector<48x8xf32> -> vector<48x8xf32>
    %101 = vector.broadcast %58 : vector<1x8xf32> to vector<48x8xf32>
    %102 = arith.addf %100, %101 : vector<48x8xf32>
    %103 = arith.addf %34, %102 : vector<48x8xf32>
    %cst_27 = arith.constant dense<0.000000e+00> : vector<48xf32>
    %104 = vector.multi_reduction <add>, %103, %cst_27 [1] : vector<48x8xf32> to vector<48xf32>
    %105 = vector.shape_cast %104 : vector<48xf32> to vector<48x1xf32>
    %cst_28 = arith.constant 8.000000e+00 : f32
    %106 = vector.broadcast %cst_28 : f32 to vector<48x1xf32>
    %107 = arith.divf %105, %106 : vector<48x1xf32>
    %108 = vector.broadcast %107 : vector<48x1xf32> to vector<48x8xf32>
    %109 = arith.subf %103, %108 : vector<48x8xf32>
    %110 = arith.mulf %109, %109 : vector<48x8xf32>
    %cst_29 = arith.constant dense<0.000000e+00> : vector<48xf32>
    %111 = vector.multi_reduction <add>, %110, %cst_29 [1] : vector<48x8xf32> to vector<48xf32>
    %112 = vector.shape_cast %111 : vector<48xf32> to vector<48x1xf32>
    %cst_30 = arith.constant 8.000000e+00 : f32
    %113 = vector.broadcast %cst_30 : f32 to vector<48x1xf32>
    %114 = arith.divf %112, %113 : vector<48x1xf32>
    %115 = vector.broadcast %107 : vector<48x1xf32> to vector<48x8xf32>
    %116 = arith.subf %103, %115 : vector<48x8xf32>
    %cst_31 = arith.constant 9.99999974E-6 : f32
    %117 = vector.broadcast %cst_31 : f32 to vector<48x1xf32>
    %118 = arith.addf %114, %117 : vector<48x1xf32>
    %119 = math.rsqrt %118 : vector<48x1xf32>
    %120 = vector.broadcast %119 : vector<48x1xf32> to vector<48x8xf32>
    %121 = arith.mulf %116, %120 : vector<48x8xf32>
    %122 = vector.extract_strided_slice %0 {offsets = [20, 0], sizes = [1, 8], strides = [1, 1]} : vector<32x16xf32> to vector<1x8xf32>
    %123 = vector.broadcast %122 : vector<1x8xf32> to vector<48x8xf32>
    %124 = arith.mulf %121, %123 : vector<48x8xf32>
    %125 = vector.extract_strided_slice %0 {offsets = [21, 0], sizes = [1, 8], strides = [1, 1]} : vector<32x16xf32> to vector<1x8xf32>
    %126 = vector.broadcast %125 : vector<1x8xf32> to vector<48x8xf32>
    %127 = arith.addf %124, %126 : vector<48x8xf32>
    %128 = vector.extract_strided_slice %2 {offsets = [0, 0, 0], sizes = [1, 8, 16], strides = [1, 1, 1]} : vector<2x8x16xf32> to vector<1x8x16xf32>
    %129 = vector.shape_cast %128 : vector<1x8x16xf32> to vector<8x16xf32>
    %cst_32 = arith.constant dense<0.000000e+00> : vector<48x16xf32>
    %130 = tpu.matmul %127, %129, %cst_32 {dimension_numbers = #tpu.dot_dimension_numbers<[1], [0], [0], [1], [0, 0, 1, 1], [], []>} : vector<48x8xf32>, vector<8x16xf32>, vector<48x16xf32> -> vector<48x16xf32>
    %131 = vector.extract_strided_slice %0 {offsets = [16, 0], sizes = [1, 16], strides = [1, 1]} : vector<32x16xf32> to vector<1x16xf32>
    %132 = vector.broadcast %131 : vector<1x16xf32> to vector<48x16xf32>
    %133 = arith.addf %130, %132 : vector<48x16xf32>
    %cst_33 = arith.constant 0.000000e+00 : f32
    %134 = vector.broadcast %cst_33 : f32 to vector<48x16xf32>
    %135 = arith.maximumf %133, %134 : vector<48x16xf32>
    %136 = vector.extract_strided_slice %3 {offsets = [0, 0, 0], sizes = [1, 16, 8], strides = [1, 1, 1]} : vector<2x16x8xf32> to vector<1x16x8xf32>
    %137 = vector.shape_cast %136 : vector<1x16x8xf32> to vector<16x8xf32>
    %cst_34 = arith.constant dense<0.000000e+00> : vector<48x8xf32>
    %138 = tpu.matmul %135, %137, %cst_34 {dimension_numbers = #tpu.dot_dimension_numbers<[1], [0], [0], [1], [0, 0, 1, 1], [], []>} : vector<48x16xf32>, vector<16x8xf32>, vector<48x8xf32> -> vector<48x8xf32>
    %139 = vector.extract_strided_slice %0 {offsets = [17, 0], sizes = [1, 8], strides = [1, 1]} : vector<32x16xf32> to vector<1x8xf32>
    %140 = vector.broadcast %139 : vector<1x8xf32> to vector<48x8xf32>
    %141 = arith.addf %138, %140 : vector<48x8xf32>
    %142 = arith.addf %127, %141 : vector<48x8xf32>
    %cst_35 = arith.constant dense<0.000000e+00> : vector<48xf32>
    %143 = vector.multi_reduction <add>, %142, %cst_35 [1] : vector<48x8xf32> to vector<48xf32>
    %144 = vector.shape_cast %143 : vector<48xf32> to vector<48x1xf32>
    %cst_36 = arith.constant 8.000000e+00 : f32
    %145 = vector.broadcast %cst_36 : f32 to vector<48x1xf32>
    %146 = arith.divf %144, %145 : vector<48x1xf32>
    %147 = vector.broadcast %146 : vector<48x1xf32> to vector<48x8xf32>
    %148 = arith.subf %142, %147 : vector<48x8xf32>
    %149 = arith.mulf %148, %148 : vector<48x8xf32>
    %cst_37 = arith.constant dense<0.000000e+00> : vector<48xf32>
    %150 = vector.multi_reduction <add>, %149, %cst_37 [1] : vector<48x8xf32> to vector<48xf32>
    %151 = vector.shape_cast %150 : vector<48xf32> to vector<48x1xf32>
    %cst_38 = arith.constant 8.000000e+00 : f32
    %152 = vector.broadcast %cst_38 : f32 to vector<48x1xf32>
    %153 = arith.divf %151, %152 : vector<48x1xf32>
    %154 = vector.broadcast %146 : vector<48x1xf32> to vector<48x8xf32>
    %155 = arith.subf %142, %154 : vector<48x8xf32>
    %cst_39 = arith.constant 9.99999974E-6 : f32
    %156 = vector.broadcast %cst_39 : f32 to vector<48x1xf32>
    %157 = arith.addf %153, %156 : vector<48x1xf32>
    %158 = math.rsqrt %157 : vector<48x1xf32>
    %159 = vector.broadcast %158 : vector<48x1xf32> to vector<48x8xf32>
    %160 = arith.mulf %155, %159 : vector<48x8xf32>
    %161 = vector.extract_strided_slice %0 {offsets = [22, 0], sizes = [1, 8], strides = [1, 1]} : vector<32x16xf32> to vector<1x8xf32>
    %162 = vector.broadcast %161 : vector<1x8xf32> to vector<48x8xf32>
    %163 = arith.mulf %160, %162 : vector<48x8xf32>
    %164 = vector.extract_strided_slice %0 {offsets = [23, 0], sizes = [1, 8], strides = [1, 1]} : vector<32x16xf32> to vector<1x8xf32>
    %165 = vector.broadcast %164 : vector<1x8xf32> to vector<48x8xf32>
    %166 = arith.addf %163, %165 : vector<48x8xf32>
    %167 = vector.extract_strided_slice %1 {offsets = [1, 0, 0], sizes = [1, 8, 32], strides = [1, 1, 1]} : vector<3x8x32xf32> to vector<1x8x32xf32>
    %168 = vector.shape_cast %167 : vector<1x8x32xf32> to vector<8x32xf32>
    %169 = vector.extract_strided_slice %0 {offsets = [8, 0], sizes = [1, 8], strides = [1, 1]} : vector<32x16xf32> to vector<1x8xf32>
    %170 = vector.extract_strided_slice %0 {offsets = [9, 0], sizes = [1, 8], strides = [1, 1]} : vector<32x16xf32> to vector<1x8xf32>
    %171 = vector.extract_strided_slice %0 {offsets = [10, 0], sizes = [1, 8], strides = [1, 1]} : vector<32x16xf32> to vector<1x8xf32>
    %172 = vector.extract_strided_slice %0 {offsets = [11, 0], sizes = [1, 8], strides = [1, 1]} : vector<32x16xf32> to vector<1x8xf32>
    %173 = vector.extract_strided_slice %168 {offsets = [0, 0], sizes = [8, 24], strides = [1, 1]} : vector<8x32xf32> to vector<8x24xf32>
    %cst_40 = arith.constant dense<0.000000e+00> : vector<48x24xf32>
    %174 = tpu.matmul %45, %173, %cst_40 {dimension_numbers = #tpu.dot_dimension_numbers<[1], [0], [0], [1], [0, 0, 1, 1], [], []>} : vector<48x8xf32>, vector<8x24xf32>, vector<48x24xf32> -> vector<48x24xf32>
    %175 = vector.extract_strided_slice %174 {offsets = [0, 0], sizes = [48, 8], strides = [1, 1]} : vector<48x24xf32> to vector<48x8xf32>
    %176 = vector.broadcast %169 : vector<1x8xf32> to vector<48x8xf32>
    %177 = arith.addf %175, %176 : vector<48x8xf32>
    %178 = vector.extract_strided_slice %174 {offsets = [0, 8], sizes = [48, 8], strides = [1, 1]} : vector<48x24xf32> to vector<48x8xf32>
    %179 = vector.broadcast %170 : vector<1x8xf32> to vector<48x8xf32>
    %180 = arith.addf %178, %179 : vector<48x8xf32>
    %181 = vector.extract_strided_slice %174 {offsets = [0, 16], sizes = [48, 8], strides = [1, 1]} : vector<48x24xf32> to vector<48x8xf32>
    %182 = vector.broadcast %171 : vector<1x8xf32> to vector<48x8xf32>
    %183 = arith.addf %181, %182 : vector<48x8xf32>
    %cst_41 = arith.constant 5.000000e-01 : f32
    %184 = vector.broadcast %cst_41 : f32 to vector<48x8xf32>
    %185 = arith.mulf %177, %184 : vector<48x8xf32>
    %186 = vector.shape_cast %185 : vector<48x8xf32> to vector<2x24x8xf32>
    %187 = vector.shape_cast %180 : vector<48x8xf32> to vector<2x24x8xf32>
    %188 = vector.shape_cast %183 : vector<48x8xf32> to vector<2x24x8xf32>
    %189 = vector.broadcast %12 : vector<1x1x8xf32> to vector<2x24x8xf32>
    %190 = arith.mulf %186, %189 : vector<2x24x8xf32>
    %191 = vector.broadcast %19 : vector<1x1x8xf32> to vector<2x24x8xf32>
    %192 = arith.mulf %186, %191 : vector<2x24x8xf32>
    %193 = tpu.concatenate %190, %192 in 1 : vector<2x24x8xf32>, vector<2x24x8xf32> -> vector<2x48x8xf32>
    "tpu.trace_start"() <{level = 10 : i32, message = "bqd,bkd->bqk"}> : () -> ()
    %cst_42 = arith.constant dense<0.000000e+00> : vector<2x48x24xf32>
    %194 = tpu.matmul %193, %187, %cst_42 {dimension_numbers = #tpu.dot_dimension_numbers<[2], [2], [1], [1], [0, 0, 0, 1, 1, 1], [0], [0]>} : vector<2x48x8xf32>, vector<2x24x8xf32>, vector<2x48x24xf32> -> vector<2x48x24xf32>
    "tpu.trace_stop"() : () -> ()
    %195 = vector.shape_cast %52 : vector<48x24xf32> to vector<1x48x24xf32>
    %196 = vector.broadcast %195 : vector<1x48x24xf32> to vector<2x48x24xf32>
    %197 = arith.addf %194, %196 : vector<2x48x24xf32>
    %cst_43 = arith.constant dense<0xFF800000> : vector<2x48xf32>
    %198 = vector.multi_reduction <maximumf>, %197, %cst_43 [2] : vector<2x48x24xf32> to vector<2x48xf32>
    %199 = vector.shape_cast %198 : vector<2x48xf32> to vector<2x48x1xf32>
    %200 = vector.broadcast %199 : vector<2x48x1xf32> to vector<2x48x24xf32>
    %201 = arith.subf %197, %200 : vector<2x48x24xf32>
    %202 = math.exp %201 : vector<2x48x24xf32>
    %cst_44 = arith.constant dense<0.000000e+00> : vector<2x48xf32>
    %203 = vector.multi_reduction <add>, %202, %cst_44 [2] : vector<2x48x24xf32> to vector<2x48xf32>
    %204 = vector.shape_cast %203 : vector<2x48xf32> to vector<2x48x1xf32>
    %205 = vector.broadcast %204 : vector<2x48x1xf32> to vector<2x48x24xf32>
    %206 = arith.divf %202, %205 : vector<2x48x24xf32>
    "tpu.trace_start"() <{level = 10 : i32, message = "bqk,bkd->bqd"}> : () -> ()
    %cst_45 = arith.constant dense<0.000000e+00> : vector<2x48x8xf32>
    %207 = tpu.matmul %206, %188, %cst_45 {dimension_numbers = #tpu.dot_dimension_numbers<[2], [1], [1], [2], [0, 0, 0, 1, 1, 2], [0], [0]>} : vector<2x48x24xf32>, vector<2x24x8xf32>, vector<2x48x8xf32> -> vector<2x48x8xf32>
    "tpu.trace_stop"() : () -> ()
    %208 = vector.extract_strided_slice %207 {offsets = [0, 0, 0], sizes = [2, 24, 8], strides = [1, 1, 1]} : vector<2x48x8xf32> to vector<2x24x8xf32>
    %209 = vector.broadcast %12 : vector<1x1x8xf32> to vector<2x24x8xf32>
    %210 = arith.mulf %208, %209 : vector<2x24x8xf32>
    %211 = vector.extract_strided_slice %207 {offsets = [0, 24, 0], sizes = [2, 24, 8], strides = [1, 1, 1]} : vector<2x48x8xf32> to vector<2x24x8xf32>
    %212 = vector.broadcast %19 : vector<1x1x8xf32> to vector<2x24x8xf32>
    %213 = arith.mulf %211, %212 : vector<2x24x8xf32>
    %214 = arith.addf %210, %213 : vector<2x24x8xf32>
    %215 = vector.shape_cast %214 : vector<2x24x8xf32> to vector<48x8xf32>
    %216 = vector.extract_strided_slice %168 {offsets = [0, 24], sizes = [8, 8], strides = [1, 1]} : vector<8x32xf32> to vector<8x8xf32>
    %cst_46 = arith.constant dense<0.000000e+00> : vector<48x8xf32>
    %217 = tpu.matmul %215, %216, %cst_46 {dimension_numbers = #tpu.dot_dimension_numbers<[1], [0], [0], [1], [0, 0, 1, 1], [], []>} : vector<48x8xf32>, vector<8x8xf32>, vector<48x8xf32> -> vector<48x8xf32>
    %218 = vector.broadcast %172 : vector<1x8xf32> to vector<48x8xf32>
    %219 = arith.addf %217, %218 : vector<48x8xf32>
    %220 = arith.addf %45, %219 : vector<48x8xf32>
    %cst_47 = arith.constant dense<0.000000e+00> : vector<48xf32>
    %221 = vector.multi_reduction <add>, %220, %cst_47 [1] : vector<48x8xf32> to vector<48xf32>
    %222 = vector.shape_cast %221 : vector<48xf32> to vector<48x1xf32>
    %cst_48 = arith.constant 8.000000e+00 : f32
    %223 = vector.broadcast %cst_48 : f32 to vector<48x1xf32>
    %224 = arith.divf %222, %223 : vector<48x1xf32>
    %225 = vector.broadcast %224 : vector<48x1xf32> to vector<48x8xf32>
    %226 = arith.subf %220, %225 : vector<48x8xf32>
    %227 = arith.mulf %226, %226 : vector<48x8xf32>
    %cst_49 = arith.constant dense<0.000000e+00> : vector<48xf32>
    %228 = vector.multi_reduction <add>, %227, %cst_49 [1] : vector<48x8xf32> to vector<48xf32>
    %229 = vector.shape_cast %228 : vector<48xf32> to vector<48x1xf32>
    %cst_50 = arith.constant 8.000000e+00 : f32
    %230 = vector.broadcast %cst_50 : f32 to vector<48x1xf32>
    %231 = arith.divf %229, %230 : vector<48x1xf32>
    %232 = vector.broadcast %224 : vector<48x1xf32> to vector<48x8xf32>
    %233 = arith.subf %220, %232 : vector<48x8xf32>
    %cst_51 = arith.constant 9.99999974E-6 : f32
    %234 = vector.broadcast %cst_51 : f32 to vector<48x1xf32>
    %235 = arith.addf %231, %234 : vector<48x1xf32>
    %236 = math.rsqrt %235 : vector<48x1xf32>
    %237 = vector.broadcast %236 : vector<48x1xf32> to vector<48x8xf32>
    %238 = arith.mulf %233, %237 : vector<48x8xf32>
    %239 = vector.extract_strided_slice %0 {offsets = [24, 0], sizes = [1, 8], strides = [1, 1]} : vector<32x16xf32> to vector<1x8xf32>
    %240 = vector.broadcast %239 : vector<1x8xf32> to vector<48x8xf32>
    %241 = arith.mulf %238, %240 : vector<48x8xf32>
    %242 = vector.extract_strided_slice %0 {offsets = [25, 0], sizes = [1, 8], strides = [1, 1]} : vector<32x16xf32> to vector<1x8xf32>
    %243 = vector.broadcast %242 : vector<1x8xf32> to vector<48x8xf32>
    %244 = arith.addf %241, %243 : vector<48x8xf32>
    %245 = vector.extract_strided_slice %1 {offsets = [2, 0, 0], sizes = [1, 8, 32], strides = [1, 1, 1]} : vector<3x8x32xf32> to vector<1x8x32xf32>
    %246 = vector.shape_cast %245 : vector<1x8x32xf32> to vector<8x32xf32>
    %247 = vector.extract_strided_slice %0 {offsets = [12, 0], sizes = [1, 8], strides = [1, 1]} : vector<32x16xf32> to vector<1x8xf32>
    %248 = vector.extract_strided_slice %0 {offsets = [13, 0], sizes = [1, 8], strides = [1, 1]} : vector<32x16xf32> to vector<1x8xf32>
    %249 = vector.extract_strided_slice %0 {offsets = [14, 0], sizes = [1, 8], strides = [1, 1]} : vector<32x16xf32> to vector<1x8xf32>
    %250 = vector.extract_strided_slice %0 {offsets = [15, 0], sizes = [1, 8], strides = [1, 1]} : vector<32x16xf32> to vector<1x8xf32>
    %251 = vector.extract_strided_slice %246 {offsets = [0, 0], sizes = [8, 8], strides = [1, 1]} : vector<8x32xf32> to vector<8x8xf32>
    %cst_52 = arith.constant dense<0.000000e+00> : vector<48x8xf32>
    %252 = tpu.matmul %244, %251, %cst_52 {dimension_numbers = #tpu.dot_dimension_numbers<[1], [0], [0], [1], [0, 0, 1, 1], [], []>} : vector<48x8xf32>, vector<8x8xf32>, vector<48x8xf32> -> vector<48x8xf32>
    %253 = vector.broadcast %247 : vector<1x8xf32> to vector<48x8xf32>
    %254 = arith.addf %252, %253 : vector<48x8xf32>
    %255 = vector.extract_strided_slice %246 {offsets = [0, 8], sizes = [8, 16], strides = [1, 1]} : vector<8x32xf32> to vector<8x16xf32>
    %cst_53 = arith.constant dense<0.000000e+00> : vector<48x16xf32>
    %256 = tpu.matmul %166, %255, %cst_53 {dimension_numbers = #tpu.dot_dimension_numbers<[1], [0], [0], [1], [0, 0, 1, 1], [], []>} : vector<48x8xf32>, vector<8x16xf32>, vector<48x16xf32> -> vector<48x16xf32>
    %257 = vector.extract_strided_slice %256 {offsets = [0, 0], sizes = [48, 8], strides = [1, 1]} : vector<48x16xf32> to vector<48x8xf32>
    %258 = vector.broadcast %248 : vector<1x8xf32> to vector<48x8xf32>
    %259 = arith.addf %257, %258 : vector<48x8xf32>
    %260 = vector.extract_strided_slice %256 {offsets = [0, 8], sizes = [48, 8], strides = [1, 1]} : vector<48x16xf32> to vector<48x8xf32>
    %261 = vector.broadcast %249 : vector<1x8xf32> to vector<48x8xf32>
    %262 = arith.addf %260, %261 : vector<48x8xf32>
    %cst_54 = arith.constant 5.000000e-01 : f32
    %263 = vector.broadcast %cst_54 : f32 to vector<48x8xf32>
    %264 = arith.mulf %254, %263 : vector<48x8xf32>
    %265 = vector.shape_cast %264 : vector<48x8xf32> to vector<2x24x8xf32>
    %266 = vector.shape_cast %259 : vector<48x8xf32> to vector<2x24x8xf32>
    %267 = vector.shape_cast %262 : vector<48x8xf32> to vector<2x24x8xf32>
    %268 = vector.broadcast %12 : vector<1x1x8xf32> to vector<2x24x8xf32>
    %269 = arith.mulf %265, %268 : vector<2x24x8xf32>
    %270 = vector.broadcast %19 : vector<1x1x8xf32> to vector<2x24x8xf32>
    %271 = arith.mulf %265, %270 : vector<2x24x8xf32>
    %272 = tpu.concatenate %269, %271 in 1 : vector<2x24x8xf32>, vector<2x24x8xf32> -> vector<2x48x8xf32>
    "tpu.trace_start"() <{level = 10 : i32, message = "bqd,bkd->bqk"}> : () -> ()
    %cst_55 = arith.constant dense<0.000000e+00> : vector<2x48x24xf32>
    %273 = tpu.matmul %272, %266, %cst_55 {dimension_numbers = #tpu.dot_dimension_numbers<[2], [2], [1], [1], [0, 0, 0, 1, 1, 1], [0], [0]>} : vector<2x48x8xf32>, vector<2x24x8xf32>, vector<2x48x24xf32> -> vector<2x48x24xf32>
    "tpu.trace_stop"() : () -> ()
    %cst_56 = arith.constant dense<0xFF800000> : vector<2x48xf32>
    %274 = vector.multi_reduction <maximumf>, %273, %cst_56 [2] : vector<2x48x24xf32> to vector<2x48xf32>
    %275 = vector.shape_cast %274 : vector<2x48xf32> to vector<2x48x1xf32>
    %276 = vector.broadcast %275 : vector<2x48x1xf32> to vector<2x48x24xf32>
    %277 = arith.subf %273, %276 : vector<2x48x24xf32>
    %278 = math.exp %277 : vector<2x48x24xf32>
    %cst_57 = arith.constant dense<0.000000e+00> : vector<2x48xf32>
    %279 = vector.multi_reduction <add>, %278, %cst_57 [2] : vector<2x48x24xf32> to vector<2x48xf32>
    %280 = vector.shape_cast %279 : vector<2x48xf32> to vector<2x48x1xf32>
    %281 = vector.broadcast %280 : vector<2x48x1xf32> to vector<2x48x24xf32>
    %282 = arith.divf %278, %281 : vector<2x48x24xf32>
    "tpu.trace_start"() <{level = 10 : i32, message = "bqk,bkd->bqd"}> : () -> ()
    %cst_58 = arith.constant dense<0.000000e+00> : vector<2x48x8xf32>
    %283 = tpu.matmul %282, %267, %cst_58 {dimension_numbers = #tpu.dot_dimension_numbers<[2], [1], [1], [2], [0, 0, 0, 1, 1, 2], [0], [0]>} : vector<2x48x24xf32>, vector<2x24x8xf32>, vector<2x48x8xf32> -> vector<2x48x8xf32>
    "tpu.trace_stop"() : () -> ()
    %284 = vector.extract_strided_slice %283 {offsets = [0, 0, 0], sizes = [2, 24, 8], strides = [1, 1, 1]} : vector<2x48x8xf32> to vector<2x24x8xf32>
    %285 = vector.broadcast %12 : vector<1x1x8xf32> to vector<2x24x8xf32>
    %286 = arith.mulf %284, %285 : vector<2x24x8xf32>
    %287 = vector.extract_strided_slice %283 {offsets = [0, 24, 0], sizes = [2, 24, 8], strides = [1, 1, 1]} : vector<2x48x8xf32> to vector<2x24x8xf32>
    %288 = vector.broadcast %19 : vector<1x1x8xf32> to vector<2x24x8xf32>
    %289 = arith.mulf %287, %288 : vector<2x24x8xf32>
    %290 = arith.addf %286, %289 : vector<2x24x8xf32>
    %291 = vector.shape_cast %290 : vector<2x24x8xf32> to vector<48x8xf32>
    %292 = vector.extract_strided_slice %246 {offsets = [0, 24], sizes = [8, 8], strides = [1, 1]} : vector<8x32xf32> to vector<8x8xf32>
    %cst_59 = arith.constant dense<0.000000e+00> : vector<48x8xf32>
    %293 = tpu.matmul %291, %292, %cst_59 {dimension_numbers = #tpu.dot_dimension_numbers<[1], [0], [0], [1], [0, 0, 1, 1], [], []>} : vector<48x8xf32>, vector<8x8xf32>, vector<48x8xf32> -> vector<48x8xf32>
    %294 = vector.broadcast %250 : vector<1x8xf32> to vector<48x8xf32>
    %295 = arith.addf %293, %294 : vector<48x8xf32>
    %296 = arith.addf %244, %295 : vector<48x8xf32>
    %cst_60 = arith.constant dense<0.000000e+00> : vector<48xf32>
    %297 = vector.multi_reduction <add>, %296, %cst_60 [1] : vector<48x8xf32> to vector<48xf32>
    %298 = vector.shape_cast %297 : vector<48xf32> to vector<48x1xf32>
    %cst_61 = arith.constant 8.000000e+00 : f32
    %299 = vector.broadcast %cst_61 : f32 to vector<48x1xf32>
    %300 = arith.divf %298, %299 : vector<48x1xf32>
    %301 = vector.broadcast %300 : vector<48x1xf32> to vector<48x8xf32>
    %302 = arith.subf %296, %301 : vector<48x8xf32>
    %303 = arith.mulf %302, %302 : vector<48x8xf32>
    %cst_62 = arith.constant dense<0.000000e+00> : vector<48xf32>
    %304 = vector.multi_reduction <add>, %303, %cst_62 [1] : vector<48x8xf32> to vector<48xf32>
    %305 = vector.shape_cast %304 : vector<48xf32> to vector<48x1xf32>
    %cst_63 = arith.constant 8.000000e+00 : f32
    %306 = vector.broadcast %cst_63 : f32 to vector<48x1xf32>
    %307 = arith.divf %305, %306 : vector<48x1xf32>
    %308 = vector.broadcast %300 : vector<48x1xf32> to vector<48x8xf32>
    %309 = arith.subf %296, %308 : vector<48x8xf32>
    %cst_64 = arith.constant 9.99999974E-6 : f32
    %310 = vector.broadcast %cst_64 : f32 to vector<48x1xf32>
    %311 = arith.addf %307, %310 : vector<48x1xf32>
    %312 = math.rsqrt %311 : vector<48x1xf32>
    %313 = vector.broadcast %312 : vector<48x1xf32> to vector<48x8xf32>
    %314 = arith.mulf %309, %313 : vector<48x8xf32>
    %315 = vector.extract_strided_slice %0 {offsets = [26, 0], sizes = [1, 8], strides = [1, 1]} : vector<32x16xf32> to vector<1x8xf32>
    %316 = vector.broadcast %315 : vector<1x8xf32> to vector<48x8xf32>
    %317 = arith.mulf %314, %316 : vector<48x8xf32>
    %318 = vector.extract_strided_slice %0 {offsets = [27, 0], sizes = [1, 8], strides = [1, 1]} : vector<32x16xf32> to vector<1x8xf32>
    %319 = vector.broadcast %318 : vector<1x8xf32> to vector<48x8xf32>
    %320 = arith.addf %317, %319 : vector<48x8xf32>
    %321 = vector.extract_strided_slice %2 {offsets = [1, 0, 0], sizes = [1, 8, 16], strides = [1, 1, 1]} : vector<2x8x16xf32> to vector<1x8x16xf32>
    %322 = vector.shape_cast %321 : vector<1x8x16xf32> to vector<8x16xf32>
    %cst_65 = arith.constant dense<0.000000e+00> : vector<48x16xf32>
    %323 = tpu.matmul %320, %322, %cst_65 {dimension_numbers = #tpu.dot_dimension_numbers<[1], [0], [0], [1], [0, 0, 1, 1], [], []>} : vector<48x8xf32>, vector<8x16xf32>, vector<48x16xf32> -> vector<48x16xf32>
    %324 = vector.extract_strided_slice %0 {offsets = [18, 0], sizes = [1, 16], strides = [1, 1]} : vector<32x16xf32> to vector<1x16xf32>
    %325 = vector.broadcast %324 : vector<1x16xf32> to vector<48x16xf32>
    %326 = arith.addf %323, %325 : vector<48x16xf32>
    %cst_66 = arith.constant 0.000000e+00 : f32
    %327 = vector.broadcast %cst_66 : f32 to vector<48x16xf32>
    %328 = arith.maximumf %326, %327 : vector<48x16xf32>
    %329 = vector.extract_strided_slice %3 {offsets = [1, 0, 0], sizes = [1, 16, 8], strides = [1, 1, 1]} : vector<2x16x8xf32> to vector<1x16x8xf32>
    %330 = vector.shape_cast %329 : vector<1x16x8xf32> to vector<16x8xf32>
    %cst_67 = arith.constant dense<0.000000e+00> : vector<48x8xf32>
    %331 = tpu.matmul %328, %330, %cst_67 {dimension_numbers = #tpu.dot_dimension_numbers<[1], [0], [0], [1], [0, 0, 1, 1], [], []>} : vector<48x16xf32>, vector<16x8xf32>, vector<48x8xf32> -> vector<48x8xf32>
    %332 = vector.extract_strided_slice %0 {offsets = [19, 0], sizes = [1, 8], strides = [1, 1]} : vector<32x16xf32> to vector<1x8xf32>
    %333 = vector.broadcast %332 : vector<1x8xf32> to vector<48x8xf32>
    %334 = arith.addf %331, %333 : vector<48x8xf32>
    %335 = arith.addf %320, %334 : vector<48x8xf32>
    %cst_68 = arith.constant dense<0.000000e+00> : vector<48xf32>
    %336 = vector.multi_reduction <add>, %335, %cst_68 [1] : vector<48x8xf32> to vector<48xf32>
    %337 = vector.shape_cast %336 : vector<48xf32> to vector<48x1xf32>
    %cst_69 = arith.constant 8.000000e+00 : f32
    %338 = vector.broadcast %cst_69 : f32 to vector<48x1xf32>
    %339 = arith.divf %337, %338 : vector<48x1xf32>
    %340 = vector.broadcast %339 : vector<48x1xf32> to vector<48x8xf32>
    %341 = arith.subf %335, %340 : vector<48x8xf32>
    %342 = arith.mulf %341, %341 : vector<48x8xf32>
    %cst_70 = arith.constant dense<0.000000e+00> : vector<48xf32>
    %343 = vector.multi_reduction <add>, %342, %cst_70 [1] : vector<48x8xf32> to vector<48xf32>
    %344 = vector.shape_cast %343 : vector<48xf32> to vector<48x1xf32>
    %cst_71 = arith.constant 8.000000e+00 : f32
    %345 = vector.broadcast %cst_71 : f32 to vector<48x1xf32>
    %346 = arith.divf %344, %345 : vector<48x1xf32>
    %347 = vector.broadcast %339 : vector<48x1xf32> to vector<48x8xf32>
    %348 = arith.subf %335, %347 : vector<48x8xf32>
    %cst_72 = arith.constant 9.99999974E-6 : f32
    %349 = vector.broadcast %cst_72 : f32 to vector<48x1xf32>
    %350 = arith.addf %346, %349 : vector<48x1xf32>
    %351 = math.rsqrt %350 : vector<48x1xf32>
    %352 = vector.broadcast %351 : vector<48x1xf32> to vector<48x8xf32>
    %353 = arith.mulf %348, %352 : vector<48x8xf32>
    %354 = vector.extract_strided_slice %0 {offsets = [28, 0], sizes = [1, 8], strides = [1, 1]} : vector<32x16xf32> to vector<1x8xf32>
    %355 = vector.broadcast %354 : vector<1x8xf32> to vector<48x8xf32>
    %356 = arith.mulf %353, %355 : vector<48x8xf32>
    %357 = vector.extract_strided_slice %0 {offsets = [29, 0], sizes = [1, 8], strides = [1, 1]} : vector<32x16xf32> to vector<1x8xf32>
    %358 = vector.broadcast %357 : vector<1x8xf32> to vector<48x8xf32>
    %359 = arith.addf %356, %358 : vector<48x8xf32>
    %360 = vector.extract_strided_slice %0 {offsets = [2, 0], sizes = [1, 8], strides = [1, 1]} : vector<32x16xf32> to vector<1x8xf32>
    %361 = vector.extract_strided_slice %0 {offsets = [3, 0], sizes = [1, 1], strides = [1, 1]} : vector<32x16xf32> to vector<1x1xf32>
    %362 = vector.shape_cast %359 : vector<48x8xf32> to vector<2x24x8xf32>
    %363 = vector.shape_cast %360 : vector<1x8xf32> to vector<1x1x8xf32>
    %364 = vector.broadcast %363 : vector<1x1x8xf32> to vector<2x24x8xf32>
    %365 = arith.mulf %362, %364 : vector<2x24x8xf32>
    %cst_73 = arith.constant dense<0.000000e+00> : vector<2x24xf32>
    %366 = vector.multi_reduction <add>, %365, %cst_73 [2] : vector<2x24x8xf32> to vector<2x24xf32>
    %367 = vector.broadcast %361 : vector<1x1xf32> to vector<2x24xf32>
    %368 = arith.addf %366, %367 : vector<2x24xf32>
    %c0_74 = arith.constant 0 : index
    %c0_75 = arith.constant 0 : index
    %369 = vector.load %arg8[%c0_74, %c0_75] : memref<2x24xf32, #tpu.memory_space<vmem>>, vector<2x24xf32>
    tpu.vector_store %arg8[%c0_74, %c0_75], %368 {strides = array<i32>} : memref<2x24xf32, #tpu.memory_space<vmem>>, vector<2x24xf32>,
    return
  }
  func.func @transform_0(%arg0: i32) -> (i32, i32, i32) {
    %c0_i32 = arith.constant 0 : i32
    %c0_i32_0 = arith.constant 0 : i32
    %c0_i32_1 = arith.constant 0 : i32
    return %arg0, %c0_i32, %c0_i32_0 : i32, i32, i32
  }
  func.func @transform_1(%arg0: i32) -> (i32, i32, i32) {
    %c0_i32 = arith.constant 0 : i32
    %c0_i32_0 = arith.constant 0 : i32
    %c0_i32_1 = arith.constant 0 : i32
    return %arg0, %c0_i32, %c0_i32_0 : i32, i32, i32
  }
  func.func @transform_2(%arg0: i32) -> (i32, i32, i32) {
    %c0_i32 = arith.constant 0 : i32
    %c0_i32_0 = arith.constant 0 : i32
    %c0_i32_1 = arith.constant 0 : i32
    %c0_i32_2 = arith.constant 0 : i32
    return %c0_i32, %c0_i32_0, %c0_i32_1 : i32, i32, i32
  }
  func.func @transform_3(%arg0: i32) -> (i32, i32, i32) {
    %c0_i32 = arith.constant 0 : i32
    %c0_i32_0 = arith.constant 0 : i32
    %c0_i32_1 = arith.constant 0 : i32
    %c0_i32_2 = arith.constant 0 : i32
    return %c0_i32, %c0_i32_0, %c0_i32_1 : i32, i32, i32
  }
  func.func @transform_4(%arg0: i32) -> (i32, i32, i32) {
    %c0_i32 = arith.constant 0 : i32
    %c0_i32_0 = arith.constant 0 : i32
    %c0_i32_1 = arith.constant 0 : i32
    %c0_i32_2 = arith.constant 0 : i32
    return %c0_i32, %c0_i32_0, %c0_i32_1 : i32, i32, i32
  }
  func.func @transform_5(%arg0: i32) -> (i32, i32) {
    %c0_i32 = arith.constant 0 : i32
    %c0_i32_0 = arith.constant 0 : i32
    %c0_i32_1 = arith.constant 0 : i32
    return %c0_i32, %c0_i32_0 : i32, i32
  }
  func.func @transform_6(%arg0: i32) -> (i32, i32) {
    %c0_i32 = arith.constant 0 : i32
    %c0_i32_0 = arith.constant 0 : i32
    %c0_i32_1 = arith.constant 0 : i32
    return %c0_i32, %c0_i32_0 : i32, i32
  }
  func.func @transform_7(%arg0: i32) -> (i32, i32) {
    %c0_i32 = arith.constant 0 : i32
    %c0_i32_0 = arith.constant 0 : i32
    return %arg0, %c0_i32 : i32, i32
  }
}

</mosaic_0001>

<bundles_post_ra>
// kernel: run.1
= control target key start
LH: loop header
LB: loop body
LE: loop exit
PB: predicated region body
PF: predicated region fallthrough
CT: control target
= control target key end

     0   :  { %12 = vsyncpa [#allocation3], 0  ;;  %s6552_s0 = inlined_call_operand.vmem [shape: f32[2,24,1], index: 0, kind: input, shape index: {}]   ;;  %s6553_s1 = inlined_call_operand.vmem [shape: f32[2,24,1], index: 1, kind: input, shape index: {}]   ;;  %s6554_s2 = inlined_call_operand.hbm [shape: f32[3,8,32], index: 2, kind: input, shape index: {}]   ;;  %s6555_s3 = inlined_call_operand.vmem [shape: f32[2,8,16], index: 3, kind: input, shape index: {}]   ;;  %s6556_s4 = inlined_call_operand.hbm [shape: f32[2,16,8], index: 4, kind: input, shape index: {}]   ;;  %s6557_s5 = inlined_call_operand.vmem [shape: f32[32,16], index: 5, kind: input, shape index: {}]   ;;  %s6558_s6 = inlined_call_operand.vmem [shape: f32[48,8], index: 6, kind: input, shape index: {}]   ;;  %s6559_s7 = inlined_call_operand.hbm [shape: f32[2,24], index: 7, kind: output, shape index: {}]  }
   0x1   :  { %13 = vsyncpa [#allocation6], 0 }
   0x2   :  { %14 = vsyncpa [#allocation4], 0  ;;  %s5187_s24 = smov [#allocation2]  }
   0x3   :  { %s24_s25 = sshll.u32 %s5187_s24, 4  ;;  %s25_s25 = int_to_ptr.vmem [resolvable:$true] %s24_s25 }
   0x4   :  { %s5129_s26 = scalar_lea.vmem %s25_s25, 384  ;;  %p5134_p1 = scmp.lt.s32.totalorder %s25_s25, %s25_s25 }
   0x5   :  { %p5130_p0 = scmp.ne.s32.totalorder %s25_s25, %s5129_s26  ;;  %p5135_p2 = scmp.lt.s32.totalorder %s5129_s26, %s5129_s26 }
   0x7   :  { %p5136_p3 = por %p5135_p2, %p5134_p1 }
   0x9   :  { %p5137_p4 = pnand %p5136_p3, %p5130_p0 }
   0xb   :  { %5140 = shalt.err (!%p5137_p4)
}
   0xc   :  { %s5188_s27 = smov 128   ;;  %s5189_s28 = smov 8  }
   0xd   :  { %30 = dma.hbm_to_vmem [thread:$0]  %s6554_s2, 384, %s25_s25, [#allocation3], %s5188_s27, %s5188_s27, %s5189_s28  }
   0xe   :  { %s5190_s8 = smov [#allocation5]  }
   0xf   :  { %s38_s9 = sshll.u32 %s5190_s8, 4  ;;  %s39_s9 = int_to_ptr.vmem [resolvable:$true] %s38_s9 }
  0x10   :  { %s5149_s10 = scalar_lea.vmem %s39_s9, 512  ;;  %p5154_p6 = scmp.lt.s32.totalorder %s39_s9, %s39_s9 }
  0x11   :  { %p5150_p5 = scmp.ne.s32.totalorder %s39_s9, %s5149_s10  ;;  %p5155_p7 = scmp.lt.s32.totalorder %s5149_s10, %s5149_s10 }
  0x13   :  { %p5156_p8 = por %p5155_p7, %p5154_p6 }
  0x15   :  { %p5157_p9 = pnand %p5156_p8, %p5150_p5 }
  0x17   :  { %5160 = shalt.err (!%p5157_p9)
}
  0x18   :  { %44 = dma.hbm_to_vmem [thread:$0]  %s6556_s4, 512, %s39_s9, [#allocation6], %s5188_s27, %s5188_s27, %s5189_s28  }
  0x19   :  { %5181 = dma.done.wait [#allocation3], 384  }
  0x1a   :  { %5182 = vsyncadd [#allocation3], 4294966912 }
  0x1b   :  { %5183 = dma.done.wait [#allocation6], 512  }
  0x1c   :  { %5184 = vsyncadd [#allocation6], 4294966784  ;;  %v5191_v0 = vmov 0   ;;  %v85_v1 = vld [vmem:[%s6552_s0 + $0x10] sm:$0xff]  ;;  %v83_v2 = vld [vmem:[%s6552_s0] sm:$0xff]  ;;  %v71_v8 = vlaneseq  ;;  %vm209_vm0 = vcmask 64512  }
  0x1d   :  { %4908 = vset.pattern.permute.xlu1 %v5191_v0  ;;  %4907 = vset.pattern.permute.xlu0 %v5191_v0  ;;  %v86_v3 = vld [vmem:[%s6552_s0 + $0x18] sm:$0xff]  ;;  %v84_v4 = vld [vmem:[%s6552_s0 + $0x8] sm:$0xff]  ;;  %v5259_v5 = vld [vmem:[#allocation2] sm:$0xff]  ;;  %s5192_s8 = smov 120   ;;  %v5193_v57 = vmov 0.0   ;;  %vm635_vm5 = vcmask 195584  }
  0x1e   :  { %101 = vperm.xlu1 %4908, %v85_v1   ;;  %91 = vperm.xlu0 %4907, %v83_v2   ;;  %v88_v6 = vld [vmem:[%s6552_s0 + $0x28] sm:$0xff]  ;;  %v87_v7 = vld [vmem:[%s6552_s0 + $0x20] sm:$0xff]  ;;  %v5269_v9 = vshrl.u32 %v71_v8, 7  ;;  %v70_v26 = vld [vmem:[%s6558_s6 + $0x10] sm:$0xff]  ;;  %v5344_v46 = vand.u32 127, %v71_v8  ;;  %s5194_s9 = smov 16  }
  0x1f   :  { %4588 = vmatprep.subr.mxu0 %v5259_v5  ;;  %v5277_v11 = vld [vmem:[%s6557_s5] sm:$0xff]  ;;  %v69_v30 = vld [vmem:[%s6558_s6 + $0x8] sm:$0xff]  ;;  %s5195_s10 = smov 112   ;;  %s5196_s11 = smov 104   ;;  %vm1389_vm6 = vcmask 130048   ;;  %vm4199_vm10 = vcmask 130112  }
  0x20   :  { %4589 = vmatpush3.msra.mxu0 %v5259_v5  ;;  %v5272_v10 = vsub.s32 5, %v5269_v9  ;;  %v5283_v13 = vsub.s32 0, %v5269_v9  ;;  %v5286_v14 = vsub.s32 1, %v5269_v9  ;;  %v68_v21 = vld [vmem:[%s6558_s6] sm:$0xff]  ;;  %v5342_v44 = vsub.s32 4, %v5269_v9  ;;  %s5198_s19 = smov [#allocation7]  }
  0x21   :  { %vm74_vm1 = vcmp.lt.s32.totalorder %v5344_v46, 4  ;;  %vm78_vm2 = vcmp.ge.s32.totalorder %v5344_v46, 4  ;;  %vm79_vm3 = vcmp.lt.s32.totalorder %v5344_v46, 8  ;;  %vm203_vm8 = vcmp.le.s32.totalorder %v5344_v46, %v5269_v9  ;;  %s4233_s20 = sshll.u32 %s5198_s19, 4  ;;  %s4234_s20 = int_to_ptr.vmem [resolvable:$true] %s4233_s20 }
  0x22   :  { %106 = vperm.xlu1 %4908, %v86_v3   ;;  %96 = vperm.xlu0 %4907, %v84_v4   ;;  %v336_v12 = vrot.slane %v5277_v11, %v5272_v10  ;;  %v5290_v15 = vrot.slane %v5277_v11, %v5283_v13  ;;  %v5294_v16 = vrot.slane %v5277_v11, %v5286_v14  ;;  %v5362_v58 = vsel %vm74_vm1, 1.0, %v5193_v57  ;;  %vm80_vm4 = vmand %vm78_vm2, %vm79_vm3  ;;  %s5161_s21 = scalar_lea.vmem %s4234_s20, 32  ;;  %p5166_p11 = scmp.lt.s32.totalorder %s4234_s20, %s4234_s20 }
  0x23   :  { %v326_v48 = vrot.slane %v5277_v11, %v5342_v44  ;;  %vm4206_vm11 = vcmask 195712   ;;  %vm4222_vm12 = vcmask 1041409   ;;  %vm4225_vm13 = vcmask 189440   ;;  %p5162_p10 = scmp.ne.s32.totalorder %s4234_s20, %s5161_s21  ;;  %p5167_p12 = scmp.lt.s32.totalorder %s5161_s21, %s5161_s21 }
  0x25   :  { %p5168_p13 = por %p5167_p12, %p5166_p11 }
  0x26   :  { %116 = vperm.xlu1 %4908, %v88_v6   ;;  %111 = vperm.xlu0 %4907, %v87_v7  }
  0x27   :  { %p5169_p0 = pnand %p5168_p13, %p5162_p10 }
  0x2a   :  { %338 = vrot.lane.b32.xlu0 %v336_v12, %s5189_s28 }
  0x99   :  { %v102_v17 = vpop.permute.xlu1 %101  ;;  %v92_v18 = vpop.permute.xlu0 %91 }
  0x9a   :  { %v125_v19 = vmul.f32 %v5290_v15, %v102_v17  ;;  %v123_v20 = vmul.f32 %v5290_v15, %v92_v18 }
  0x9c   :  { %v133_v22 = vadd.f32 %v5294_v16, %v123_v20  ;;  %v135_v23 = vadd.f32 %v5294_v16, %v125_v19 }
  0x9d   :  { %v107_v24 = vpop.permute.xlu1 %106  ;;  %v97_v25 = vpop.permute.xlu0 %96 }
  0x9e   :  { %v126_v27 = vmul.f32 %v5290_v15, %v107_v24  ;;  %v124_v28 = vmul.f32 %v5290_v15, %v97_v25  ;;  %v5308_v29 = vadd.f32 %v133_v22, %v68_v21  ;;  %v5316_v32 = vadd.f32 %v135_v23, %v70_v26 }
  0xa0   :  { %v134_v31 = vadd.f32 %v5294_v16, %v124_v28  ;;  %4590 = vmatprep.mubr.msk.f32.mxu0 %vm209_vm0, %v5308_v29  ;;  %v136_v35 = vadd.f32 %v5294_v16, %v126_v27  ;;  %v5400_v28 = vsel %vm80_vm4, 1.0, %v5193_v57 }
  0xa1   :  { %v117_v33 = vpop.permute.xlu1 %116  ;;  %v112_v34 = vpop.permute.xlu0 %111 }
  0xa2   :  { %v5319_v36 = vadd.f32 %v134_v31, %v69_v30  ;;  %v128_v37 = vmul.f32 %v5290_v15, %v117_v33  ;;  %v127_v38 = vmul.f32 %v5290_v15, %v112_v34  ;;  %v5331_v42 = vadd.f32 %v136_v35, %v68_v21 }
  0xa4   :  { %v137_v39 = vadd.f32 %v5294_v16, %v127_v38  ;;  %4591 = vmatmul.mubr.msk.f32.vlgmr.msra.gmra.mxu0 %vm209_vm0, %v5319_v36  ;;  %v138_v40 = vadd.f32 %v5294_v16, %v128_v37 }
  0xa5   :  { %4593 = vmatprep.mubr.msk.f32.mxu0 %vm209_vm0, %v5316_v32  ;;  %v339_v45 = vpop.permute.xlu0 %338 }
  0xa6   :  { %v5329_v41 = vadd.f32 %v137_v39, %v69_v30  ;;  %v5337_v43 = vadd.f32 %v138_v40, %v70_v26 }
  0xa8   :  { %4594 = vmatmul.mubr.msk.f32.gmra.mxu0 %vm209_vm0, %v5331_v42 }
  0xa9   :  { %4596 = vmatprep.mubr.msk.f32.mxu0 %vm209_vm0, %v5329_v41 }
  0xac   :  { %4597 = vmatmul.mubr.msk.f32.gmra.mxu0 %vm209_vm0, %v5337_v43 }
 0x164   :  { %v5346_v47 = vpop.f32.mrf.mxu0 }
 0x165   :  { %v342_v49 = vadd.f32 %v5346_v47, %v339_v45  ;;  %v328_v7 = vadd.f32 %v5346_v47, %v326_v48 }
 0x166   :  { %v5351_v50 = vpop.f32.mrf.mxu0 }
 0x167   :  { %v327_v51 = vadd.f32 %v326_v48, %v5351_v50  ;;  %384 = vrot.lane.b32.xlu0 %v342_v49, %s5192_s8  ;;  %v341_v53 = vadd.f32 %v339_v45, %v5351_v50  ;;  %v362_v18 = vmul.f32 0.5, %v328_v7 }
 0x168   :  { %v5356_v52 = vpop.f32.mrf.mxu0 }
 0x169   :  { %v330_v54 = vadd.f32 %v5356_v52, %v326_v48  ;;  %v361_v56 = vmul.f32 0.5, %v327_v51  ;;  %v344_v63 = vadd.f32 %v5356_v52, %v339_v45  ;;  %v368_v24 = vmul.f32 %v5362_v58, %v362_v18 }
 0x16a   :  { %v5360_v55 = vpop.f32.mrf.mxu0  ;;  %v374_v33 = vmul.f32 %v5400_v28, %v362_v18 }
 0x16b   :  { %v364_v59 = vmul.f32 0.5, %v330_v54  ;;  %v343_v60 = vadd.f32 %v339_v45, %v5360_v55  ;;  %382 = vrot.lane.b32.xlu0 %v341_v53, %s5192_s8  ;;  %v367_v62 = vmul.f32 %v5362_v58, %v361_v56  ;;  %v329_v8 = vadd.f32 %v326_v48, %v5360_v55 }
 0x16c   :  { %v5366_v61 = vpop.f32.mrf.mxu0  ;;  %v373_v30 = vmul.f32 %v5400_v28, %v361_v56 }
 0x16d   :  { %v370_v0 = vmul.f32 %v5362_v58, %v364_v59  ;;  %386 = vrot.lane.b32.xlu1 %v343_v60, %s5192_s8  ;;  %4605 = vmatprep.mubr.msk.f32.mxu1 %vm209_vm0, %v367_v62  ;;  %v346_v1 = vadd.f32 %v5366_v61, %v339_v45  ;;  %v363_v20 = vmul.f32 0.5, %v329_v8  ;;  %v332_v21 = vadd.f32 %v5366_v61, %v326_v48 }
 0x16e   :  { %v5376_v2 = vpop.f32.mrf.mxu0  ;;  %v376_v35 = vmul.f32 %v5400_v28, %v364_v59 }
 0x16f   :  { %510 = vrot.lane.b32.xlu0 %v344_v63, %s5192_s8  ;;  %4620 = vmatprep.mubr.msk.f32.mxu0 %vm209_vm0, %v370_v0  ;;  %v345_v3 = vadd.f32 %v339_v45, %v5376_v2  ;;  %v331_v19 = vadd.f32 %v326_v48, %v5376_v2  ;;  %v369_v26 = vmul.f32 %v5362_v58, %v363_v20  ;;  %v366_v27 = vmul.f32 0.5, %v332_v21 }
 0x170   :  { %v375_v37 = vmul.f32 %v5400_v28, %v363_v20  ;;  %v5461_v20 = vsub.s32 6, %v5269_v9 }
 0x171   :  { %514 = vrot.lane.b32.xlu1 %v346_v1, %s5192_s8  ;;  %v365_v25 = vmul.f32 0.5, %v331_v19  ;;  %v372_v34 = vmul.f32 %v5362_v58, %v366_v27  ;;  %v378_v39 = vmul.f32 %v5400_v28, %v366_v27 }
 0x172   :  { %v350_v21 = vrot.slane %v5277_v11, %v5461_v20 }
 0x173   :  { %v371_v31 = vmul.f32 %v5362_v58, %v365_v25  ;;  %v377_v38 = vmul.f32 %v5400_v28, %v365_v25 }
 0x175   :  { %512 = vrot.lane.b32.xlu1 %v345_v3, %s5192_s8 }
 0x1d9   :  { %v385_v4 = vpop.permute.xlu0 %384 }
 0x1dd   :  { %v383_v12 = vpop.permute.xlu0 %382 }
 0x1df   :  { %v387_v6 = vpop.permute.xlu1 %386 }
 0x1e0   :  { %4599 = vmatprep.subr.msk.mxu1 %vm209_vm0, %v387_v6 }
 0x1e1   :  { %4600 = vmatpush3.xpose.msk.msra.mxu1 %vm209_vm0, %v387_v6  ;;  %v511_v23 = vpop.permute.xlu0 %510 }
 0x1e2   :  { %4601 = vmatprep.subr.msk.mxu1 %vm209_vm0, %v385_v4 }
 0x1e3   :  { %v515_v17 = vpop.permute.xlu1 %514 }
 0x1e4   :  { %4614 = vmatprep.subr.msk.mxu0 %vm209_vm0, %v515_v17 }
 0x1e5   :  { %4602 = vmatpush3.xpose.msk.msra.mxu1 %vm209_vm0, %v385_v4  ;;  %4615 = vmatpush3.xpose.msk.msra.mxu0 %vm209_vm0, %v515_v17 }
 0x1e6   :  { %4603 = vmatprep.subr.msk.mxu1 %vm209_vm0, %v383_v12 }
 0x1e7   :  { %v513_v22 = vpop.permute.xlu1 %512 }
 0x1e8   :  { %4616 = vmatprep.subr.msk.mxu0 %vm209_vm0, %v513_v22 }
 0x1e9   :  { %4604 = vmatpush3.xpose.msk.msra.mxu1 %vm209_vm0, %v383_v12  ;;  %4617 = vmatpush3.xpose.msk.msra.mxu0 %vm209_vm0, %v513_v22 }
 0x1ea   :  { %4618 = vmatprep.subr.msk.mxu0 %vm209_vm0, %v511_v23 }
 0x1ec   :  { %4606 = vmatmul.mubr.msk.f32.vlgmr.msra.gmra.mxu1 %vm209_vm0, %v368_v24 }
 0x1ed   :  { %4608 = vmatprep.mubr.msk.f32.mxu1 %vm209_vm0, %v369_v26  ;;  %4619 = vmatpush3.xpose.msk.msra.mxu0 %vm209_vm0, %v511_v23 }
 0x1f0   :  { %4609 = vmatmul.mubr.msk.f32.gmra.mxu1 %vm209_vm0, %v373_v30  ;;  %4621 = vmatmul.mubr.msk.f32.vlgmr.msra.gmra.mxu0 %vm209_vm0, %v371_v31 }
 0x1f1   :  { %4611 = vmatprep.mubr.msk.f32.mxu1 %vm209_vm0, %v374_v33  ;;  %4623 = vmatprep.mubr.msk.f32.mxu0 %vm209_vm0, %v372_v34 }
 0x1f4   :  { %4612 = vmatmul.mubr.msk.f32.gmra.mxu1 %vm209_vm0, %v375_v37  ;;  %4624 = vmatmul.mubr.msk.f32.gmra.mxu0 %vm209_vm0, %v376_v35 }
 0x1f5   :  { %4626 = vmatprep.mubr.msk.f32.mxu0 %vm209_vm0, %v377_v38 }
 0x1f8   :  { %4627 = vmatmul.mubr.msk.f32.gmra.mxu0 %vm209_vm0, %v378_v39 }
 0x2ac   :  { %v4607_v40 = vpop.f32.mrf.mxu1 }
 0x2ad   :  { %v639_v45 = vsel %vm635_vm5, %v4607_v40, -inf }
 0x2ae   :  { %640 = vmax.xlane.f32.xlu0 %v639_v45  ;;  %v478_v48 = vpop.f32.mrf.mxu1 }
 0x2af   :  { %v636_v49 = vsel %vm635_vm5, %v478_v48, -inf }
 0x2b0   :  { %v5423_v51 = vpop.f32.mrf.mxu1  ;;  %637 = vmax.xlane.f32.xlu1 %v636_v49  ;;  %v4622_v53 = vpop.f32.mrf.mxu0 }
 0x2b1   :  { %v645_v56 = vsel %vm635_vm5, %v5423_v51, -inf  ;;  %v657_v3 = vsel %vm635_vm5, %v4622_v53, -inf }
 0x2b2   :  { %v5425_v54 = vpop.f32.mrf.mxu0  ;;  %v5431_v59 = vpop.f32.mrf.mxu1 }
 0x2b3   :  { %v654_v57 = vsel %vm635_vm5, %v5425_v54, -inf  ;;  %v642_v62 = vsel %vm635_vm5, %v5431_v59, -inf }
 0x2b4   :  { %646 = vmax.xlane.f32.xlu1 %v645_v56  ;;  %655 = vmax.xlane.f32.xlu0 %v654_v57  ;;  %v5433_v60 = vpop.f32.mrf.mxu0  ;;  %v5439_v0 = vpop.f32.mrf.mxu1 }
 0x2b5   :  { %v663_v63 = vsel %vm635_vm5, %v5433_v60, -inf  ;;  %v651_v4 = vsel %vm635_vm5, %v5439_v0, -inf }
 0x2b6   :  { %v5441_v1 = vpop.f32.mrf.mxu0  ;;  %v5446_v6 = vpop.f32.mrf.mxu1 }
 0x2b7   :  { %v648_v8 = vsel %vm635_vm5, %v5446_v6, -inf  ;;  %v660_v12 = vsel %vm635_vm5, %v5441_v1, -inf }
 0x2b8   :  { %643 = vmax.xlane.f32.xlu0 %v642_v62  ;;  %664 = vmax.xlane.f32.xlu1 %v663_v63  ;;  %v5448_v7 = vpop.f32.mrf.mxu0 }
 0x2b9   :  { %v669_v18 = vsel %vm635_vm5, %v5448_v7, -inf }
 0x2ba   :  { %v5454_v17 = vpop.f32.mrf.mxu0 }
 0x2bb   :  { %v666_v19 = vsel %vm635_vm5, %v5454_v17, -inf }
 0x2bc   :  { %658 = vmax.xlane.f32.xlu0 %v657_v3  ;;  %652 = vmax.xlane.f32.xlu1 %v651_v4 }
 0x2c0   :  { %649 = vmax.xlane.f32.xlu1 %v648_v8  ;;  %661 = vmax.xlane.f32.xlu0 %v660_v12 }
 0x2c4   :  { %670 = vmax.xlane.f32.xlu1 %v669_v18  ;;  %667 = vmax.xlane.f32.xlu0 %v666_v19 }
 0x2da   :  { %352 = vrot.lane.b32.xlu0 %v350_v21, %s5194_s9 }
 0x337   :  { %v641_v22 = vpop.xlane.xlu0 %640 }
 0x338   :  { %v673_v38 = vsub.f32 %v4607_v40, %v641_v22 }
 0x339   :  { %v638_v39 = vpop.xlane.xlu1 %637 }
 0x33a   :  { %v686_v45 = vmul.f32 1.442695, %v673_v38  ;;  %v672_v49 = vsub.f32 %v478_v48, %v638_v39 }
 0x33d   :  { %v656_v23 = vpop.xlane.xlu0 %655  ;;  %v647_v3 = vpop.xlane.xlu1 %646 }
 0x33e   :  { %v675_v4 = vsub.f32 %v5423_v51, %v647_v3  ;;  %v678_v12 = vsub.f32 %v5425_v54, %v656_v23 }
 0x340   :  { %v690_v8 = vmul.f32 1.442695, %v675_v4 }
 0x341   :  { %v644_v24 = vpop.xlane.xlu0 %643  ;;  %v665_v18 = vpop.xlane.xlu1 %664 }
 0x342   :  { %v674_v19 = vsub.f32 %v5431_v59, %v644_v24  ;;  %v681_v21 = vsub.f32 %v5433_v60, %v665_v18 }
 0x345   :  { %v659_v25 = vpop.xlane.xlu0 %658  ;;  %v653_v22 = vpop.xlane.xlu1 %652 }
 0x346   :  { %v679_v26 = vsub.f32 %v4622_v53, %v659_v25  ;;  %v684_v53 = vmul.f32 1.442695, %v672_v49  ;;  %v677_v25 = vsub.f32 %v5439_v0, %v653_v22 }
 0x348   :  { %v698_v27 = vmul.f32 1.442695, %v679_v26  ;;  %v694_v51 = vmul.f32 1.442695, %v677_v25 }
 0x349   :  { %v662_v30 = vpop.xlane.xlu0 %661  ;;  %v650_v26 = vpop.xlane.xlu1 %649 }
 0x34a   :  { %4909 = vpow2.f32 %v698_v27  ;;  %v680_v27 = vsub.f32 %v5441_v1, %v662_v30  ;;  %v676_v23 = vsub.f32 %v5446_v6, %v650_v26 }
 0x34b   :  { %4911 = vpow2.f32 %v686_v45 }
 0x34c   :  { %4913 = vpow2.f32 %v684_v53  ;;  %v700_v59 = vmul.f32 1.442695, %v680_v27 }
 0x34d   :  { %v5466_v31 = vpop.xlane.xlu0 %667  ;;  %4915 = vpow2.f32 %v690_v8 }
 0x34e   :  { %v682_v38 = vsub.f32 %v5454_v17, %v5466_v31 }
 0x350   :  { %v704_v49 = vmul.f32 1.442695, %v682_v38 }
 0x351   :  { %v5468_v33 = vpop.permute.xlu0 %352 }
 0x352   :  { %v357_v34 = vadd.f32 %v5468_v33, %v5360_v55  ;;  %v356_v56 = vadd.f32 %v5346_v47, %v5468_v33  ;;  %v355_v48 = vadd.f32 %v5468_v33, %v5351_v50  ;;  %v360_v47 = vadd.f32 %v5366_v61, %v5468_v33 }
 0x353   :  { %v359_v63 = vadd.f32 %v5468_v33, %v5376_v2  ;;  %v696_v50 = vmul.f32 1.442695, %v678_v12  ;;  %v688_v61 = vmul.f32 1.442695, %v674_v19  ;;  %v702_v2 = vmul.f32 1.442695, %v681_v21 }
 0x354   :  { %775 = vrot.lane.b32.xlu1 %v357_v34, %s5195_s10  ;;  %v671_v34 = vpop.xlane.xlu1 %670  ;;  %v358_v18 = vadd.f32 %v5356_v52, %v5468_v33 }
 0x355   :  { %4917 = vpow2.f32 %v696_v50  ;;  %v683_v0 = vsub.f32 %v5448_v7, %v671_v34 }
 0x356   :  { %4919 = vpow2.f32 %v688_v61 }
 0x357   :  { %v5473_v35 = vpop.eup %4909  ;;  %4921 = vpow2.f32 %v702_v2  ;;  %v706_v6 = vmul.f32 1.442695, %v683_v0 }
 0x358   :  { %v729_v37 = vsel %vm635_vm5, %v5473_v35, 0.0  ;;  %v5480_v55 = vpop.eup %4911  ;;  %4923 = vpow2.f32 %v694_v51 }
 0x359   :  { %730 = vadd.xlane.f32.xlu0 %v729_v37  ;;  %v711_v57 = vsel %vm635_vm5, %v5480_v55, 0.0  ;;  %v5484_v62 = vpop.eup %4913  ;;  %v692_v37 = vmul.f32 1.442695, %v676_v23  ;;  %4925 = vpow2.f32 %v700_v59 }
 0x35a   :  { %v708_v40 = vsel %vm635_vm5, %v5484_v62, 0.0  ;;  %v5503_v54 = vpop.eup %4915 }
 0x35b   :  { %v717_v24 = vsel %vm635_vm5, %v5503_v54, 0.0  ;;  %4927 = vpow2.f32 %v692_v37 }
 0x35c   :  { %4929 = vpow2.f32 %v706_v6 }
 0x35d   :  { %4931 = vpow2.f32 %v704_v49 }
 0x362   :  { %v5508_v60 = vpop.eup %4917 }
 0x363   :  { %v726_v1 = vsel %vm635_vm5, %v5508_v60, 0.0  ;;  %v5513_v30 = vpop.eup %4919 }
 0x364   :  { %v714_v39 = vsel %vm635_vm5, %v5513_v30, 0.0  ;;  %v5519_v45 = vpop.eup %4921 }
 0x365   :  { %v735_v7 = vsel %vm635_vm5, %v5519_v45, 0.0  ;;  %v5523_v53 = vpop.eup %4923 }
 0x366   :  { %v723_v17 = vsel %vm635_vm5, %v5523_v53, 0.0  ;;  %v5527_v31 = vpop.eup %4925 }
 0x36f   :  { %773 = vrot.lane.b32.xlu0 %v356_v56, %s5195_s10 }
 0x373   :  { %1041 = vrot.lane.b32.xlu0 %v5259_v5, %s5196_s11 }
 0x378   :  { %712 = vadd.xlane.f32.xlu1 %v711_v57  ;;  %v732_v57 = vsel %vm635_vm5, %v5527_v31, 0.0 }
 0x37c   :  { %709 = vadd.xlane.f32.xlu1 %v708_v40  ;;  %v5531_v40 = vpop.eup %4927 }
 0x38d   :  { %771 = vrot.lane.b32.xlu1 %v355_v48, %s5195_s10  ;;  %v720_v48 = vsel %vm635_vm5, %v5531_v40, 0.0 }
 0x391   :  { %900 = vrot.lane.b32.xlu1 %v360_v47, %s5195_s10  ;;  %v5535_v47 = vpop.eup %4929 }
 0x392   :  { %v5539_v3 = vpop.eup %4931 }
 0x393   :  { %v738_v4 = vsel %vm635_vm5, %v5539_v3, 0.0 }
 0x395   :  { %898 = vrot.lane.b32.xlu1 %v359_v63, %s5195_s10  ;;  %v741_v63 = vsel %vm635_vm5, %v5535_v47, 0.0 }
 0x3b9   :  { %718 = vadd.xlane.f32.xlu1 %v717_v24 }
 0x3bd   :  { %727 = vadd.xlane.f32.xlu1 %v726_v1 }
 0x3c1   :  { %715 = vadd.xlane.f32.xlu1 %v714_v39 }
 0x3c5   :  { %736 = vadd.xlane.f32.xlu1 %v735_v7 }
 0x3c6   :  { %v776_v56 = vpop.permute.xlu1 %775 }
 0x3c7   :  { %4629 = vmatprep.subr.mxu1 %v776_v56 }
 0x3c8   :  { %4630 = vmatpush3.msra.mxu1 %v776_v56 }
 0x3c9   :  { %724 = vadd.xlane.f32.xlu1 %v723_v17 }
 0x3cd   :  { %733 = vadd.xlane.f32.xlu1 %v732_v57 }
 0x3d1   :  { %721 = vadd.xlane.f32.xlu1 %v720_v48 }
 0x3d5   :  { %742 = vadd.xlane.f32.xlu1 %v741_v63 }
 0x3d9   :  { %739 = vadd.xlane.f32.xlu1 %v738_v4 }
 0x3e2   :  { %v731_v8 = vpop.xlane.xlu0 %730 }
 0x3e6   :  { %v774_v12 = vpop.permute.xlu0 %773 }
 0x3e7   :  { %4631 = vmatprep.subr.mxu1 %v774_v12 }
 0x3e8   :  { %4632 = vmatpush3.msra.mxu1 %v774_v12 }
 0x3ea   :  { %896 = vrot.lane.b32.xlu1 %v358_v18, %s5195_s10 }
 0x401   :  { %v713_v50 = vpop.xlane.xlu1 %712 }
 0x402   :  { %4933 = vrcp.f32 %v713_v50 }
 0x405   :  { %v710_v19 = vpop.xlane.xlu1 %709 }
 0x406   :  { %4935 = vrcp.f32 %v710_v19 }
 0x409   :  { %v772_v61 = vpop.permute.xlu1 %771 }
 0x40a   :  { %4633 = vmatprep.subr.mxu1 %v772_v61 }
 0x40b   :  { %4634 = vmatpush3.msra.mxu1 %v772_v61 }
 0x40d   :  { %v901_v21 = vpop.permute.xlu1 %900 }
 0x40e   :  { %4644 = vmatprep.subr.mxu0 %v901_v21 }
 0x40f   :  { %4645 = vmatpush3.msra.mxu0 %v901_v21  ;;  %v4934_v2 = vpop.eup %4933 }
 0x410   :  { %v747_v25 = vmul.f32 %v4934_v2, %v5480_v55 }
 0x411   :  { %v899_v22 = vpop.permute.xlu1 %898 }
 0x412   :  { %4646 = vmatprep.subr.mxu0 %v899_v22 }
 0x413   :  { %v4936_v52 = vpop.eup %4935  ;;  %4647 = vmatpush3.msra.mxu0 %v899_v22 }
 0x414   :  { %v745_v33 = vmul.f32 %v4936_v52, %v5484_v62 }
 0x416   :  { %4635 = vmatprep.mubr.msk.f32.mxu1 %vm635_vm5, %v745_v33 }
 0x417   :  { %4636 = vmatmul.mubr.msk.f32.vlgmr.msra.gmra.mxu1 %vm635_vm5, %v747_v25 }
 0x442   :  { %v719_v5 = vpop.xlane.xlu1 %718 }
 0x446   :  { %v728_v26 = vpop.xlane.xlu1 %727 }
 0x447   :  { %4937 = vrcp.f32 %v728_v26 }
 0x448   :  { %4939 = vrcp.f32 %v719_v5 }
 0x44a   :  { %v716_v51 = vpop.xlane.xlu1 %715 }
 0x44b   :  { %4941 = vrcp.f32 %v716_v51 }
 0x44c   :  { %4943 = vrcp.f32 %v731_v8 }
 0x44e   :  { %v737_v27 = vpop.xlane.xlu1 %736 }
 0x452   :  { %v725_v23 = vpop.xlane.xlu1 %724 }
 0x454   :  { %v4938_v59 = vpop.eup %4937 }
 0x455   :  { %v757_v24 = vmul.f32 %v4938_v59, %v5508_v60  ;;  %v4940_v37 = vpop.eup %4939 }
 0x456   :  { %v734_v34 = vpop.xlane.xlu1 %733  ;;  %v751_v1 = vmul.f32 %v4940_v37, %v5503_v54 }
 0x457   :  { %4650 = vmatprep.mubr.msk.f32.mxu0 %vm635_vm5, %v757_v24  ;;  %4945 = vrcp.f32 %v734_v34 }
 0x458   :  { %v4942_v55 = vpop.eup %4941  ;;  %4947 = vrcp.f32 %v737_v27 }
 0x459   :  { %v749_v62 = vmul.f32 %v4942_v55, %v5513_v30  ;;  %4949 = vrcp.f32 %v725_v23  ;;  %v4944_v38 = vpop.eup %4943 }
 0x45a   :  { %v722_v0 = vpop.xlane.xlu1 %721  ;;  %v759_v30 = vmul.f32 %v4944_v38, %v5473_v35  ;;  %v5591_v38 = vsub.s32 7, %v5269_v9 }
 0x45b   :  { %4951 = vrcp.f32 %v722_v0  ;;  %4638 = vmatprep.mubr.msk.f32.mxu1 %vm635_vm5, %v749_v62 }
 0x45c   :  { %4639 = vmatmul.mubr.msk.f32.gmra.mxu1 %vm635_vm5, %v751_v1 }
 0x45e   :  { %v743_v60 = vpop.xlane.xlu1 %742 }
 0x45f   :  { %4953 = vrcp.f32 %v743_v60 }
 0x462   :  { %v740_v6 = vpop.xlane.xlu1 %739 }
 0x463   :  { %4955 = vrcp.f32 %v740_v6 }
 0x464   :  { %v4946_v39 = vpop.eup %4945 }
 0x465   :  { %v4948_v49 = vpop.eup %4947  ;;  %v761_v54 = vmul.f32 %v4946_v39, %v5527_v31  ;;  %v1039_v39 = vrot.slane %v5277_v11, %v5591_v38 }
 0x466   :  { %v897_v7 = vpop.permute.xlu1 %896  ;;  %v4950_v56 = vpop.eup %4949  ;;  %v763_v63 = vmul.f32 %v4948_v49, %v5519_v45 }
 0x467   :  { %4648 = vmatprep.subr.mxu0 %v897_v7  ;;  %v755_v48 = vmul.f32 %v4950_v56, %v5523_v53 }
 0x468   :  { %v4952_v17 = vpop.eup %4951  ;;  %4649 = vmatpush3.msra.mxu0 %v897_v7 }
 0x469   :  { %4651 = vmatmul.mubr.msk.f32.vlgmr.msra.gmra.mxu0 %vm635_vm5, %v759_v30  ;;  %v753_v57 = vmul.f32 %v4952_v17, %v5531_v40  ;;  %v1042_v40 = vpop.permute.xlu0 %1041 }
 0x46a   :  { %4653 = vmatprep.mubr.msk.f32.mxu0 %vm635_vm5, %v761_v54  ;;  %4659 = vmatprep.subr.mxu1 %v1042_v40 }
 0x46b   :  { %4641 = vmatprep.mubr.msk.f32.mxu1 %vm635_vm5, %v753_v57  ;;  %4660 = vmatpush3.msra.mxu1 %v1042_v40 }
 0x46c   :  { %4642 = vmatmul.mubr.msk.f32.gmra.mxu1 %vm635_vm5, %v755_v48  ;;  %v4954_v35 = vpop.eup %4953 }
 0x46d   :  { %4654 = vmatmul.mubr.msk.f32.gmra.mxu0 %vm635_vm5, %v763_v63  ;;  %v767_v8 = vmul.f32 %v4954_v35, %v5535_v47 }
 0x470   :  { %v4956_v4 = vpop.eup %4955 }
 0x471   :  { %v765_v31 = vmul.f32 %v4956_v4, %v5539_v3 }
 0x473   :  { %4656 = vmatprep.mubr.msk.f32.mxu0 %vm635_vm5, %v765_v31 }
 0x474   :  { %4657 = vmatmul.mubr.msk.f32.gmra.mxu0 %vm635_vm5, %v767_v8 }
 0x4d7   :  { %v4637_v53 = vpop.f32.mrf.mxu1 }
 0x4d8   :  { %v1019_v33 = vmul.f32 %v4637_v53, %v5362_v58 }
 0x4d9   :  { %v864_v12 = vpop.f32.mrf.mxu1 }
 0x4da   :  { %v1018_v18 = vmul.f32 %v5362_v58, %v864_v12 }
 0x51c   :  { %v4640_v45 = vpop.f32.mrf.mxu1 }
 0x51d   :  { %v1024_v50 = vmul.f32 %v4640_v45, %v5400_v28 }
 0x51e   :  { %v874_v61 = vpop.f32.mrf.mxu1 }
 0x51f   :  { %v1030_v19 = vadd.f32 %v1024_v50, %v1018_v18  ;;  %v1020_v5 = vmul.f32 %v5362_v58, %v874_v61 }
 0x521   :  { %4661 = vmatprep.mubr.msk.f32.mxu1 %vm209_vm0, %v1030_v19 }
 0x529   :  { %v4652_v3 = vpop.f32.mrf.mxu0 }
 0x52a   :  { %v1022_v62 = vmul.f32 %v4652_v3, %v5362_v58  ;;  %v145_v3 = vld [vmem:[%s6553_s1] sm:$0xff] }
 0x52b   :  { %v989_v47 = vpop.f32.mrf.mxu0 }
 0x52c   :  { %v4643_v21 = vpop.f32.mrf.mxu1  ;;  %v1021_v59 = vmul.f32 %v5362_v58, %v989_v47 }
 0x52d   :  { %v1026_v22 = vmul.f32 %v4643_v21, %v5400_v28  ;;  %v4655_v2 = vpop.f32.mrf.mxu0 }
 0x52e   :  { %v884_v52 = vpop.f32.mrf.mxu1  ;;  %v1027_v26 = vmul.f32 %v4655_v2, %v5400_v28 }
 0x52f   :  { %v1025_v25 = vmul.f32 %v5400_v28, %v884_v52  ;;  %v1032_v27 = vadd.f32 %v1026_v22, %v1020_v5  ;;  %v999_v23 = vpop.f32.mrf.mxu0 }
 0x530   :  { %v1033_v34 = vadd.f32 %v1027_v26, %v1021_v59  ;;  %v1023_v1 = vmul.f32 %v5362_v58, %v999_v23 }
 0x531   :  { %v1031_v51 = vadd.f32 %v1025_v25, %v1019_v33 }
 0x533   :  { %4662 = vmatmul.mubr.msk.f32.vlgmr.msra.gmra.mxu1 %vm209_vm0, %v1031_v51 }
 0x534   :  { %v4658_v24 = vpop.f32.mrf.mxu0  ;;  %4664 = vmatprep.mubr.msk.f32.mxu1 %vm209_vm0, %v1032_v27 }
 0x535   :  { %v1029_v37 = vmul.f32 %v4658_v24, %v5400_v28 }
 0x536   :  { %v1009_v55 = vpop.f32.mrf.mxu0 }
 0x537   :  { %v1028_v0 = vmul.f32 %v5400_v28, %v1009_v55  ;;  %4665 = vmatmul.mubr.msk.f32.gmra.mxu1 %vm209_vm0, %v1033_v34  ;;  %v1035_v6 = vadd.f32 %v1029_v37, %v1023_v1 }
 0x539   :  { %v1034_v60 = vadd.f32 %v1028_v0, %v1022_v62 }
 0x53b   :  { %4667 = vmatprep.mubr.msk.f32.mxu1 %vm209_vm0, %v1034_v60 }
 0x53c   :  { %4668 = vmatmul.mubr.msk.f32.gmra.mxu1 %vm209_vm0, %v1035_v6  ;;  %v147_v6 = vld [vmem:[%s6553_s1 + $0x10] sm:$0xff] }
 0x5f3   :  { %v4663_v49 = vpop.f32.mrf.mxu1 }
 0x5f4   :  { %v1134_v7 = vadd.f32 %v4663_v49, %v1039_v39  ;;  %v62_v49 = vld [vmem:[%s6555_s3] sm:$0xff] }
 0x5f5   :  { %v1128_v56 = vpop.f32.mrf.mxu1  ;;  %4670 = vmatprep.subr.mxu0 %v62_v49 }
 0x5f6   :  { %v1129_v30 = vadd.f32 %v1128_v56, %v1039_v39  ;;  %v1158_v17 = vadd.f32 %v1134_v7, %v5319_v36  ;;  %v150_v7 = vld [vmem:[%s6553_s1 + $0x28] sm:$0xff]  ;;  %4671 = vmatpush3.msra.mxu0 %v62_v49 }
 0x5f7   :  { %v4666_v54 = vpop.f32.mrf.mxu1 }
 0x5f8   :  { %v1166_v57 = vsel %vm209_vm0, %v1158_v17, 0.0  ;;  %v1157_v48 = vadd.f32 %v1129_v30, %v5308_v29  ;;  %v1144_v35 = vadd.f32 %v4666_v54, %v1039_v39 }
 0x5f9   :  { %1167 = vadd.xlane.f32.xlu0 %v1166_v57  ;;  %v1138_v63 = vpop.f32.mrf.mxu1 }
 0x5fa   :  { %v1139_v4 = vadd.f32 %v1138_v63, %v1039_v39  ;;  %v1163_v31 = vsel %vm209_vm0, %v1157_v48, 0.0  ;;  %v1160_v36 = vadd.f32 %v1144_v35, %v5331_v42  ;;  %v149_v63 = vld [vmem:[%s6553_s1 + $0x20] sm:$0xff]  ;;  %v5658_v35 = vld [vmem:[#allocation2 + $0x8] sm:$0xff] }
 0x5fb   :  { %1164 = vadd.xlane.f32.xlu1 %v1163_v31  ;;  %4694 = vmatprep.subr.mxu0 %v5658_v35 }
 0x5fc   :  { %v4669_v8 = vpop.f32.mrf.mxu1  ;;  %v1159_v11 = vadd.f32 %v1139_v4, %v5316_v32  ;;  %v1172_v18 = vsel %vm209_vm0, %v1160_v36, 0.0  ;;  %v5664_v4 = vld [vmem:[%s6557_s5 + $0x8] sm:$0xff] }
 0x5fd   :  { %v1154_v40 = vadd.f32 %v4669_v8, %v1039_v39  ;;  %v1733_v31 = vrot.slane %v5664_v4, %v5286_v14 }
 0x5fe   :  { %v1148_v53 = vpop.f32.mrf.mxu1  ;;  %v1169_v12 = vsel %vm209_vm0, %v1159_v11, 0.0 }
 0x5ff   :  { %v1149_v45 = vadd.f32 %v1148_v53, %v1039_v39  ;;  %1170 = vadd.xlane.f32.xlu0 %v1169_v12  ;;  %v1162_v50 = vadd.f32 %v1154_v40, %v5337_v43  ;;  %v146_v39 = vld [vmem:[%s6553_s1 + $0x8] sm:$0xff] }
 0x601   :  { %v1161_v29 = vadd.f32 %v1149_v45, %v5329_v41  ;;  %v1178_v32 = vsel %vm209_vm0, %v1162_v50, 0.0 }
 0x603   :  { %1173 = vadd.xlane.f32.xlu0 %v1172_v18  ;;  %v1175_v19 = vsel %vm209_vm0, %v1161_v29, 0.0 }
 0x604   :  { %1176 = vadd.xlane.f32.xlu1 %v1175_v19 }
 0x607   :  { %1179 = vadd.xlane.f32.xlu0 %v1178_v32 }
 0x615   :  { %153 = vperm.xlu1 %4908, %v145_v3  }
 0x682   :  { %v1168_v42 = vpop.xlane.xlu0 %1167 }
 0x683   :  { %v1183_v61 = vmul.f32 0.125, %v1168_v42  ;;  %v5672_v42 = vld [vmem:[%s6557_s5 + $0x10] sm:$0xff] }
 0x684   :  { %v1165_v47 = vpop.xlane.xlu1 %1164 }
 0x685   :  { %v5610_v41 = vsub.f32 %v1158_v17, %v1183_v61  ;;  %v1182_v21 = vmul.f32 0.125, %v1165_v47  ;;  %v1245_v47 = vrot.slane %v5672_v42, %v5342_v44 }
 0x687   :  { %v5612_v22 = vsub.f32 %v1157_v48, %v1182_v21  ;;  %v1195_v43 = vmul.f32 %v5610_v41, %v5610_v41  ;;  %v148_v48 = vld [vmem:[%s6553_s1 + $0x18] sm:$0xff] }
 0x688   :  { %v1171_v2 = vpop.xlane.xlu0 %1170 }
 0x689   :  { %v1184_v52 = vmul.f32 0.125, %v1171_v2  ;;  %v1203_v33 = vsel %vm209_vm0, %v1195_v43, 0.0  ;;  %v1194_v25 = vmul.f32 %v5612_v22, %v5612_v22 }
 0x68a   :  { %1204 = vadd.xlane.f32.xlu0 %v1203_v33 }
 0x68b   :  { %v5619_v5 = vsub.f32 %v1159_v11, %v1184_v52  ;;  %v1200_v26 = vsel %vm209_vm0, %v1194_v25, 0.0  ;;  %v1255_v52 = vrot.slane %v5672_v42, %v5272_v10 }
 0x68c   :  { %v1174_v51 = vpop.xlane.xlu0 %1173  ;;  %1201 = vadd.xlane.f32.xlu1 %v1200_v26 }
 0x68d   :  { %v1185_v27 = vmul.f32 0.125, %v1174_v51  ;;  %v1196_v23 = vmul.f32 %v5619_v5, %v5619_v5  ;;  %v1177_v56 = vpop.xlane.xlu1 %1176 }
 0x68e   :  { %v1186_v30 = vmul.f32 0.125, %v1177_v56 }
 0x68f   :  { %v5624_v59 = vsub.f32 %v1160_v36, %v1185_v27  ;;  %v1206_v24 = vsel %vm209_vm0, %v1196_v23, 0.0 }
 0x690   :  { %v1180_v34 = vpop.xlane.xlu0 %1179  ;;  %1207 = vadd.xlane.f32.xlu1 %v1206_v24  ;;  %v5647_v17 = vsub.f32 %v1161_v29, %v1186_v30 }
 0x691   :  { %v1187_v37 = vmul.f32 0.125, %v1180_v34  ;;  %v1197_v55 = vmul.f32 %v5624_v59, %v5624_v59  ;;  %v154_v8 = vpop.permute.xlu1 %153 }
 0x692   :  { %v1198_v54 = vmul.f32 %v5647_v17, %v5647_v17  ;;  %v181_v30 = vmul.f32 %v154_v8, %v5290_v15 }
 0x693   :  { %v5629_v62 = vsub.f32 %v1162_v50, %v1187_v37  ;;  %v1209_v0 = vsel %vm209_vm0, %v1197_v55, 0.0 }
 0x694   :  { %1210 = vadd.xlane.f32.xlu0 %v1209_v0  ;;  %v1212_v57 = vsel %vm209_vm0, %v1198_v54, 0.0 }
 0x695   :  { %v1199_v1 = vmul.f32 %v5629_v62, %v5629_v62 }
 0x697   :  { %v1215_v60 = vsel %vm209_vm0, %v1199_v1, 0.0 }
 0x698   :  { %1216 = vadd.xlane.f32.xlu0 %v1215_v60 }
 0x6a1   :  { %163 = vperm.xlu1 %4908, %v147_v6  }
 0x6ae   :  { %158 = vperm.xlu0 %4907, %v146_v39  }
 0x6b2   :  { %178 = vperm.xlu0 %4907, %v150_v7  }
 0x6c5   :  { %1213 = vadd.xlane.f32.xlu1 %v1212_v57 }
 0x6d6   :  { %168 = vperm.xlu1 %4908, %v148_v48  }
 0x6da   :  { %173 = vperm.xlu1 %4908, %v149_v63  }
 0x6de   :  { %1735 = vrot.lane.b32.xlu1 %v1733_v31, %s5189_s28 }
 0x713   :  { %v1205_v11 = vpop.xlane.xlu0 %1204 }
 0x714   :  { %v1219_v40 = vmul.f32 0.125, %v1205_v11  ;;  %v187_v11 = vadd.f32 %v181_v30, %v5294_v16 }
 0x715   :  { %v1202_v53 = vpop.xlane.xlu1 %1201 }
 0x716   :  { %v1225_v12 = vadd.f32 1e-05, %v1219_v40  ;;  %v1218_v36 = vmul.f32 0.125, %v1202_v53 }
 0x718   :  { %4957 = vrsqrt.f32 %v1225_v12  ;;  %v1224_v45 = vadd.f32 1e-05, %v1218_v36 }
 0x719   :  { %v1208_v29 = vpop.xlane.xlu1 %1207 }
 0x71a   :  { %4959 = vrsqrt.f32 %v1224_v45  ;;  %v1220_v18 = vmul.f32 0.125, %v1208_v29 }
 0x71c   :  { %v1226_v50 = vadd.f32 1e-05, %v1220_v18 }
 0x71d   :  { %v1211_v19 = vpop.xlane.xlu0 %1210  ;;  %v164_v1 = vpop.permute.xlu1 %163 }
 0x71e   :  { %4961 = vrsqrt.f32 %v1226_v50  ;;  %v1221_v32 = vmul.f32 0.125, %v1211_v19  ;;  %v183_v40 = vmul.f32 %v164_v1, %v5290_v15 }
 0x720   :  { %v1227_v3 = vadd.f32 1e-05, %v1221_v32  ;;  %v189_v18 = vadd.f32 %v183_v40, %v5294_v16  ;;  %v5114_v32 = vld [vmem:[%s6558_s6 + $0x8] sm:$0xff] }
 0x721   :  { %v1217_v55 = vpop.xlane.xlu0 %1216 }
 0x722   :  { %4963 = vrsqrt.f32 %v1227_v3  ;;  %v1223_v0 = vmul.f32 0.125, %v1217_v55 }
 0x724   :  { %v1229_v60 = vadd.f32 1e-05, %v1223_v0 }
 0x725   :  { %v4958_v61 = vpop.eup %4957 }
 0x726   :  { %v1237_v21 = vmul.f32 %v4958_v61, %v5610_v41  ;;  %4965 = vrsqrt.f32 %v1229_v60 }
 0x727   :  { %v4960_v43 = vpop.eup %4959 }
 0x728   :  { %v1236_v2 = vmul.f32 %v4960_v43, %v5612_v22  ;;  %v1247_v33 = vmul.f32 %v1245_v47, %v1237_v21  ;;  %v5115_v21 = vld [vmem:[%s6558_s6 + $0x10] sm:$0xff] }
 0x729   :  { %v159_v54 = vpop.permute.xlu0 %158  ;;  %v5734_v43 = vadd.f32 %v5115_v21, %v189_v18 }
 0x72a   :  { %v1246_v25 = vmul.f32 %v1245_v47, %v1236_v2  ;;  %v5683_v23 = vadd.f32 %v1255_v52, %v1247_v33  ;;  %v182_v63 = vmul.f32 %v159_v54, %v5290_v15 }
 0x72b   :  { %v4962_v26 = vpop.eup %4961 }
 0x72c   :  { %v5680_v51 = vadd.f32 %v1255_v52, %v1246_v25  ;;  %v1238_v27 = vmul.f32 %v4962_v26, %v5619_v5  ;;  %v188_v45 = vadd.f32 %v182_v63, %v5294_v16  ;;  %v65_v26 = vld [vmem:[#allocation5 + $0x8] sm:$0xff] }
 0x72d   :  { %v179_v50 = vpop.permute.xlu0 %178  ;;  %4681 = vmatprep.subr.mxu1 %v65_v26 }
 0x72e   :  { %4672 = vmatprep.mubr.msk.f32.mxu0 %vm209_vm0, %v5680_v51  ;;  %v1248_v24 = vmul.f32 %v1245_v47, %v1238_v27  ;;  %v5727_v3 = vadd.f32 %v5114_v32, %v188_v45  ;;  %v186_v61 = vmul.f32 %v179_v50, %v5290_v15  ;;  %v64_v27 = vld [vmem:[#allocation5] sm:$0xff]  ;;  %4682 = vmatpush3.msra.mxu1 %v65_v26 }
 0x72f   :  { %v4964_v41 = vpop.eup %4963  ;;  %4673 = vmatmul.mubr.msk.f32.vlgmr.msra.gmra.mxu0 %vm209_vm0, %v5683_v23  ;;  %4683 = vmatprep.subr.mxu1 %v64_v27 }
 0x730   :  { %v5689_v22 = vadd.f32 %v1255_v52, %v1248_v24  ;;  %v1239_v34 = vmul.f32 %v4964_v41, %v5624_v59  ;;  %4695 = vmatpush3.msra.mxu0 %v5658_v35  ;;  %4684 = vmatpush3.msra.mxu1 %v64_v27 }
 0x732   :  { %4675 = vmatprep.mubr.msk.f32.mxu0 %vm209_vm0, %v5689_v22  ;;  %v1249_v5 = vmul.f32 %v1245_v47, %v1239_v34 }
 0x733   :  { %v4966_v59 = vpop.eup %4965 }
 0x734   :  { %v5695_v37 = vadd.f32 %v1255_v52, %v1249_v5  ;;  %v1241_v56 = vmul.f32 %v4966_v59, %v5629_v62 }
 0x736   :  { %4676 = vmatmul.mubr.msk.f32.gmra.mxu0 %vm209_vm0, %v5695_v37  ;;  %v1251_v31 = vmul.f32 %v1245_v47, %v1241_v56 }
 0x738   :  { %v5709_v8 = vadd.f32 %v1255_v52, %v1251_v31  ;;  %v1723_v31 = vrot.slane %v5664_v4, %v5283_v13 }
 0x74e   :  { %v1214_v6 = vpop.xlane.xlu1 %1213 }
 0x74f   :  { %v1222_v39 = vmul.f32 0.125, %v1214_v6 }
 0x751   :  { %v1228_v49 = vadd.f32 1e-05, %v1222_v39 }
 0x752   :  { %v169_v7 = vpop.permute.xlu1 %168 }
 0x753   :  { %4967 = vrsqrt.f32 %v1228_v49  ;;  %v184_v62 = vmul.f32 %v169_v7, %v5290_v15 }
 0x756   :  { %v174_v12 = vpop.permute.xlu1 %173 }
 0x757   :  { %v185_v19 = vmul.f32 %v174_v12, %v5290_v15 }
 0x759   :  { %v191_v2 = vadd.f32 %v185_v19, %v5294_v16 }
 0x75a   :  { %v1736_v54 = vpop.permute.xlu1 %1735 }
 0x75b   :  { %v5744_v15 = vadd.f32 %v5114_v32, %v191_v2 }
 0x760   :  { %v4968_v57 = vpop.eup %4967 }
 0x761   :  { %v1240_v48 = vmul.f32 %v4968_v57, %v5647_v17  ;;  %v5113_v17 = vld [vmem:[%s6558_s6] sm:$0xff] }
 0x762   :  { %v5714_v29 = vadd.f32 %v5113_v17, %v187_v11 }
 0x763   :  { %v1250_v53 = vmul.f32 %v1245_v47, %v1240_v48  ;;  %v190_v47 = vadd.f32 %v184_v62, %v5294_v16 }
 0x765   :  { %v5705_v36 = vadd.f32 %v1255_v52, %v1250_v53  ;;  %v192_v52 = vadd.f32 %v186_v61, %v5294_v16  ;;  %v5742_v33 = vadd.f32 %v5113_v17, %v190_v47  ;;  %v1265_v16 = vrot.slane %v5672_v42, %v5283_v13 }
 0x767   :  { %4678 = vmatprep.mubr.msk.f32.mxu0 %vm209_vm0, %v5705_v36  ;;  %v5750_v25 = vadd.f32 %v5115_v21, %v192_v52 }
 0x768   :  { %4679 = vmatmul.mubr.msk.f32.gmra.mxu0 %vm209_vm0, %v5709_v8 }
 0x769   :  { %4696 = vmatprep.mubr.msk.f32.mxu0 %vm209_vm0, %v5714_v29 }
 0x76c   :  { %4697 = vmatmul.mubr.msk.f32.vlgmr.msra.gmra.mxu0 %vm209_vm0, %v5727_v3 }
 0x76d   :  { %4699 = vmatprep.mubr.msk.f32.mxu0 %vm209_vm0, %v5734_v43 }
 0x770   :  { %4700 = vmatmul.mubr.msk.f32.gmra.mxu0 %vm209_vm0, %v5742_v33 }
 0x771   :  { %4702 = vmatprep.mubr.msk.f32.mxu0 %vm209_vm0, %v5744_v15 }
 0x774   :  { %4703 = vmatmul.mubr.msk.f32.gmra.mxu0 %vm209_vm0, %v5750_v25 }
 0x7ef   :  { %v4674_v24 = vpop.f32.mrf.mxu0 }
 0x7f0   :  { %v1356_v41 = vadd.f32 %v4674_v24, %v1265_v16 }
 0x7f1   :  { %v1350_v34 = vpop.f32.mrf.mxu0 }
 0x7f2   :  { %v1351_v5 = vadd.f32 %v1350_v34, %v1265_v16  ;;  %v1380_v0 = vmax.f32 %v1356_v41, 0.0 }
 0x7f4   :  { %v1379_v55 = vmax.f32 %v1351_v5, 0.0 }
 0x7f6   :  { %v4677_v1 = vpop.f32.mrf.mxu0  ;;  %4685 = vmatprep.mubr.msk.f32.mxu1 %vm1389_vm6, %v1379_v55 }
 0x7f7   :  { %4686 = vmatmul.mubr.msk.f32.vlgmr.msra.gmra.mxu1 %vm1389_vm6, %v1380_v0  ;;  %v1366_v60 = vadd.f32 %v4677_v1, %v1265_v16 }
 0x7f8   :  { %v1360_v6 = vpop.f32.mrf.mxu0 }
 0x7f9   :  { %v1361_v39 = vadd.f32 %v1360_v6, %v1265_v16  ;;  %v1382_v59 = vmax.f32 %v1366_v60, 0.0 }
 0x7fb   :  { %v1381_v49 = vmax.f32 %v1361_v39, 0.0 }
 0x7fd   :  { %4688 = vmatprep.mubr.msk.f32.mxu1 %vm1389_vm6, %v1381_v49 }
 0x7fe   :  { %4689 = vmatmul.mubr.msk.f32.gmra.mxu1 %vm1389_vm6, %v1382_v59 }
 0x828   :  { %v4680_v7 = vpop.f32.mrf.mxu0 }
 0x829   :  { %v1376_v56 = vadd.f32 %v4680_v7, %v1265_v16 }
 0x82a   :  { %v1370_v30 = vpop.f32.mrf.mxu0 }
 0x82b   :  { %v1371_v57 = vadd.f32 %v1370_v30, %v1265_v16  ;;  %v1384_v40 = vmax.f32 %v1376_v56, 0.0 }
 0x82c   :  { %v5760_v48 = vpop.f32.mrf.mxu0 }
 0x82d   :  { %v1383_v63 = vmax.f32 %v1371_v57, 0.0  ;;  %v1739_v11 = vadd.f32 %v5760_v48, %v1736_v54  ;;  %v1725_v41 = vadd.f32 %v5760_v48, %v1723_v31 }
 0x82e   :  { %v5765_v53 = vpop.f32.mrf.mxu0 }
 0x82f   :  { %v1724_v12 = vadd.f32 %v1723_v31, %v5765_v53  ;;  %4691 = vmatprep.mubr.msk.f32.mxu1 %vm1389_vm6, %v1383_v63  ;;  %1781 = vrot.lane.b32.xlu1 %v1739_v11, %s5192_s8  ;;  %v1738_v62 = vadd.f32 %v1736_v54, %v5765_v53  ;;  %v1759_v0 = vmul.f32 0.5, %v1725_v41 }
 0x830   :  { %4692 = vmatmul.mubr.msk.f32.gmra.mxu1 %vm1389_vm6, %v1384_v40  ;;  %v5771_v45 = vpop.f32.mrf.mxu0  ;;  %v5822_v40 = vrot.slane %v5672_v42, %v5286_v14 }
 0x831   :  { %v1758_v17 = vmul.f32 0.5, %v1724_v12  ;;  %v1727_v18 = vadd.f32 %v5771_v45, %v1723_v31  ;;  %v1741_v47 = vadd.f32 %v5771_v45, %v1736_v54  ;;  %v1765_v59 = vmul.f32 %v5362_v58, %v1759_v0 }
 0x832   :  { %v5775_v50 = vpop.f32.mrf.mxu0 }
 0x833   :  { %v1764_v19 = vmul.f32 %v5362_v58, %v1758_v17  ;;  %v1761_v32 = vmul.f32 0.5, %v1727_v18  ;;  %1779 = vrot.lane.b32.xlu1 %v1738_v62, %s5192_s8  ;;  %v1740_v61 = vadd.f32 %v1736_v54, %v5775_v50  ;;  %v1726_v34 = vadd.f32 %v1723_v31, %v5775_v50 }
 0x834   :  { %v5782_v2 = vpop.f32.mrf.mxu0 }
 0x835   :  { %v1767_v21 = vmul.f32 %v5362_v58, %v1761_v32  ;;  %4711 = vmatprep.mubr.msk.f32.mxu1 %vm209_vm0, %v1764_v19  ;;  %1783 = vrot.lane.b32.xlu0 %v1740_v61, %s5192_s8  ;;  %v1743_v52 = vadd.f32 %v5782_v2, %v1736_v54  ;;  %v1760_v60 = vmul.f32 0.5, %v1726_v34  ;;  %v1729_v6 = vadd.f32 %v5782_v2, %v1723_v31 }
 0x836   :  { %v5789_v26 = vpop.f32.mrf.mxu0 }
 0x837   :  { %4726 = vmatprep.mubr.msk.f32.mxu0 %vm209_vm0, %v1767_v21  ;;  %1907 = vrot.lane.b32.xlu1 %v1741_v47, %s5192_s8  ;;  %v1742_v27 = vadd.f32 %v1736_v54, %v5789_v26  ;;  %v1728_v1 = vadd.f32 %v1723_v31, %v5789_v26  ;;  %v1766_v56 = vmul.f32 %v5362_v58, %v1760_v60  ;;  %v1763_v30 = vmul.f32 0.5, %v1729_v6 }
 0x838   :  { %v1770_v54 = vmul.f32 %v5400_v28, %v1758_v17  ;;  %v1771_v31 = vmul.f32 %v5400_v28, %v1759_v0  ;;  %v1773_v17 = vmul.f32 %v5400_v28, %v1761_v32  ;;  %v1772_v18 = vmul.f32 %v5400_v28, %v1760_v60 }
 0x839   :  { %1911 = vrot.lane.b32.xlu0 %v1743_v52, %s5192_s8  ;;  %v1762_v7 = vmul.f32 0.5, %v1728_v1  ;;  %v1769_v11 = vmul.f32 %v5362_v58, %v1763_v30  ;;  %v1775_v61 = vmul.f32 %v5400_v28, %v1763_v30  ;;  %v202_v6 = vadd.s32 16, %v5269_v9 }
 0x83b   :  { %v1768_v57 = vmul.f32 %v5362_v58, %v1762_v7  ;;  %v1774_v19 = vmul.f32 %v5400_v28, %v1762_v7  ;;  %vm205_vm9 = vcmp.le.s32.totalorder %v5344_v46, %v202_v6 }
 0x83d   :  { %1909 = vrot.lane.b32.xlu0 %v1742_v27, %s5192_s8  ;;  %v201_v27 = vadd.s32 8, %v5269_v9 }
 0x83f   :  { %vm204_vm7 = vcmp.le.s32.totalorder %v5344_v46, %v201_v27 }
 0x8a1   :  { %v1782_v16 = vpop.permute.xlu1 %1781 }
 0x8a5   :  { %v1780_v5 = vpop.permute.xlu1 %1779 }
 0x8a7   :  { %v1784_v24 = vpop.permute.xlu0 %1783 }
 0x8a8   :  { %4705 = vmatprep.subr.msk.mxu1 %vm209_vm0, %v1784_v24 }
 0x8a9   :  { %4706 = vmatpush3.xpose.msk.msra.mxu1 %vm209_vm0, %v1784_v24  ;;  %v1908_v49 = vpop.permute.xlu1 %1907  ;;  %v5197_v24 = vmov -1e+30  }
 0x8aa   :  { %4707 = vmatprep.subr.msk.mxu1 %vm209_vm0, %v1782_v16  ;;  %v207_v41 = vsel %vm204_vm7, 0.0, %v5197_v24 }
 0x8ab   :  { %v1912_v55 = vpop.permute.xlu0 %1911 }
 0x8ac   :  { %4720 = vmatprep.subr.msk.mxu0 %vm209_vm0, %v1912_v55 }
 0x8ad   :  { %4708 = vmatpush3.xpose.msk.msra.mxu1 %vm209_vm0, %v1782_v16  ;;  %4721 = vmatpush3.xpose.msk.msra.mxu0 %vm209_vm0, %v1912_v55 }
 0x8ae   :  { %4709 = vmatprep.subr.msk.mxu1 %vm209_vm0, %v1780_v5 }
 0x8af   :  { %v1910_v39 = vpop.permute.xlu0 %1909 }
 0x8b0   :  { %4722 = vmatprep.subr.msk.mxu0 %vm209_vm0, %v1910_v39 }
 0x8b1   :  { %4710 = vmatpush3.xpose.msk.msra.mxu1 %vm209_vm0, %v1780_v5  ;;  %4723 = vmatpush3.xpose.msk.msra.mxu0 %vm209_vm0, %v1910_v39  ;;  %v206_v5 = vsel %vm203_vm8, 0.0, %v5197_v24 }
 0x8b2   :  { %4724 = vmatprep.subr.msk.mxu0 %vm209_vm0, %v1908_v49 }
 0x8b4   :  { %4712 = vmatmul.mubr.msk.f32.vlgmr.msra.gmra.mxu1 %vm209_vm0, %v1765_v59 }
 0x8b5   :  { %4714 = vmatprep.mubr.msk.f32.mxu1 %vm209_vm0, %v1766_v56  ;;  %4725 = vmatpush3.xpose.msk.msra.mxu0 %vm209_vm0, %v1908_v49 }
 0x8b7   :  { %v5816_v63 = vpop.f32.mrf.mxu1 }
 0x8b8   :  { %4715 = vmatmul.mubr.msk.f32.gmra.mxu1 %vm209_vm0, %v1770_v54  ;;  %4727 = vmatmul.mubr.msk.f32.vlgmr.msra.gmra.mxu0 %vm209_vm0, %v1768_v57 }
 0x8b9   :  { %v1474_v12 = vpop.f32.mrf.mxu1  ;;  %4717 = vmatprep.mubr.msk.f32.mxu1 %vm209_vm0, %v1771_v31  ;;  %4729 = vmatprep.mubr.msk.f32.mxu0 %vm209_vm0, %v1769_v11 }
 0x8ba   :  { %v5827_v62 = vadd.f32 %v1474_v12, %v5822_v40 }
 0x8bc   :  { %4718 = vmatmul.mubr.msk.f32.gmra.mxu1 %vm209_vm0, %v1772_v18  ;;  %4730 = vmatmul.mubr.msk.f32.gmra.mxu0 %vm209_vm0, %v1773_v17  ;;  %v208_v17 = vsel %vm205_vm9, 0.0, %v5197_v24 }
 0x8bd   :  { %4732 = vmatprep.mubr.msk.f32.mxu0 %vm209_vm0, %v1774_v19 }
 0x8be   :  { %v4690_v42 = vpop.f32.mrf.mxu1 }
 0x8bf   :  { %v5839_v47 = vadd.f32 %v4690_v42, %v5822_v40 }
 0x8c0   :  { %4733 = vmatmul.mubr.msk.f32.gmra.mxu0 %vm209_vm0, %v1775_v61  ;;  %v5842_v21 = vpop.f32.mrf.mxu1 }
 0x8f0   :  { %v4693_v32 = vpop.f32.mrf.mxu1 }
 0x8f1   :  { %v5845_v52 = vadd.f32 %v4693_v32, %v5822_v40 }
 0x8f2   :  { %v5851_v16 = vpop.f32.mrf.mxu1 }
 0x974   :  { %v4713_v34 = vpop.f32.mrf.mxu1 }
 0x975   :  { %v5853_v55 = vadd.f32 %v4713_v34, %v207_v41 }
 0x976   :  { %v1875_v0 = vpop.f32.mrf.mxu1 }
 0x977   :  { %v5855_v1 = vadd.f32 %v1875_v0, %v206_v5  ;;  %v2035_v60 = vsel %vm635_vm5, %v5853_v55, -inf }
 0x978   :  { %2036 = vmax.xlane.f32.xlu1 %v2035_v60  ;;  %v4716_v39 = vpop.f32.mrf.mxu1  ;;  %v4728_v49 = vpop.f32.mrf.mxu0 }
 0x979   :  { %v5860_v59 = vadd.f32 %v4716_v39, %v206_v5  ;;  %v2032_v7 = vsel %vm635_vm5, %v5855_v1, -inf  ;;  %v2009_v0 = vadd.f32 %v4728_v49, %v207_v41 }
 0x97a   :  { %v1885_v56 = vpop.f32.mrf.mxu1  ;;  %2033 = vmax.xlane.f32.xlu0 %v2032_v7  ;;  %v2003_v30 = vpop.f32.mrf.mxu0 }
 0x97b   :  { %v5865_v31 = vadd.f32 %v2003_v30, %v206_v5  ;;  %v2041_v12 = vsel %vm635_vm5, %v5860_v59, -inf  ;;  %v5875_v32 = vadd.f32 %v1885_v56, %v208_v17  ;;  %v2053_v56 = vsel %vm635_vm5, %v2009_v0, -inf }
 0x97c   :  { %v4719_v54 = vpop.f32.mrf.mxu1  ;;  %v4731_v57 = vpop.f32.mrf.mxu0 }
 0x97d   :  { %v5867_v11 = vadd.f32 %v4731_v57, %v206_v5  ;;  %v5871_v18 = vadd.f32 %v4719_v54, %v208_v17  ;;  %v2050_v27 = vsel %vm635_vm5, %v5865_v31, -inf  ;;  %v2038_v60 = vsel %vm635_vm5, %v5875_v32, -inf }
 0x97e   :  { %2042 = vmax.xlane.f32.xlu0 %v2041_v12  ;;  %v1895_v42 = vpop.f32.mrf.mxu1  ;;  %v2013_v61 = vpop.f32.mrf.mxu0 }
 0x97f   :  { %v2059_v19 = vsel %vm635_vm5, %v5867_v11, -inf  ;;  %v5879_v34 = vadd.f32 %v1895_v42, %v207_v41  ;;  %v2047_v24 = vsel %vm635_vm5, %v5871_v18, -inf  ;;  %v5889_v7 = vadd.f32 %v2013_v61, %v208_v17 }
 0x980   :  { %2060 = vmax.xlane.f32.xlu1 %v2059_v19  ;;  %v4734_v5 = vpop.f32.mrf.mxu0 }
 0x981   :  { %v5885_v6 = vadd.f32 %v4734_v5, %v208_v17  ;;  %v2044_v39 = vsel %vm635_vm5, %v5879_v34, -inf  ;;  %v2056_v57 = vsel %vm635_vm5, %v5889_v7, -inf  ;;  %v5901_v17 = vsub.s32 2, %v5269_v9 }
 0x982   :  { %2051 = vmax.xlane.f32.xlu0 %v2050_v27  ;;  %v2023_v30 = vpop.f32.mrf.mxu0 }
 0x983   :  { %v2065_v54 = vsel %vm635_vm5, %v5885_v6, -inf  ;;  %v5894_v49 = vadd.f32 %v2023_v30, %v207_v41  ;;  %v1747_v19 = vrot.slane %v5664_v4, %v5901_v17 }
 0x984   :  { %2048 = vmax.xlane.f32.xlu1 %v2047_v24 }
 0x985   :  { %v2062_v12 = vsel %vm635_vm5, %v5894_v49, -inf }
 0x986   :  { %2039 = vmax.xlane.f32.xlu0 %v2038_v60 }
 0x988   :  { %2045 = vmax.xlane.f32.xlu1 %v2044_v39 }
 0x98a   :  { %2054 = vmax.xlane.f32.xlu0 %v2053_v56 }
 0x98c   :  { %2066 = vmax.xlane.f32.xlu1 %v2065_v54 }
 0x98e   :  { %2057 = vmax.xlane.f32.xlu0 %v2056_v57 }
 0x992   :  { %2063 = vmax.xlane.f32.xlu0 %v2062_v12 }
 0x9a8   :  { %1749 = vrot.lane.b32.xlu0 %v1747_v19, %s5194_s9 }
 0xa03   :  { %v2034_v42 = vpop.xlane.xlu0 %2033 }
 0xa07   :  { %v2043_v61 = vpop.xlane.xlu0 %2042 }
 0xa0b   :  { %v2052_v41 = vpop.xlane.xlu0 %2051 }
 0xa0f   :  { %v2040_v27 = vpop.xlane.xlu0 %2039 }
 0xa13   :  { %v2055_v24 = vpop.xlane.xlu0 %2054 }
 0xa14   :  { %v2075_v5 = vsub.f32 %v2009_v0, %v2055_v24  ;;  %v2037_v0 = vpop.xlane.xlu1 %2036 }
 0xa15   :  { %v2069_v19 = vsub.f32 %v5853_v55, %v2037_v0 }
 0xa16   :  { %v2094_v60 = vmul.f32 1.442695, %v2075_v5  ;;  %v2068_v5 = vsub.f32 %v5855_v1, %v2034_v42 }
 0xa17   :  { %v5906_v39 = vpop.xlane.xlu0 %2057  ;;  %v2082_v24 = vmul.f32 1.442695, %v2069_v19 }
 0xa18   :  { %4969 = vpow2.f32 %v2094_v60  ;;  %v2080_v60 = vmul.f32 1.442695, %v2068_v5  ;;  %v2074_v5 = vsub.f32 %v5865_v31, %v2052_v41  ;;  %v2076_v31 = vsub.f32 %v5889_v7, %v5906_v39 }
 0xa19   :  { %4971 = vpow2.f32 %v2082_v24  ;;  %v1495_v24 = vadd.f32 %v5851_v16, %v5822_v40 }
 0xa1a   :  { %4973 = vpow2.f32 %v2080_v60  ;;  %v2061_v60 = vpop.xlane.xlu1 %2060  ;;  %v2096_v41 = vmul.f32 1.442695, %v2076_v31 }
 0xa1b   :  { %v5908_v56 = vpop.xlane.xlu0 %2063 }
 0xa1f   :  { %v5910_v30 = vpop.permute.xlu0 %1749 }
 0xa20   :  { %v1754_v54 = vadd.f32 %v5910_v30, %v5775_v50  ;;  %v1753_v50 = vadd.f32 %v5760_v48, %v5910_v30  ;;  %v1480_v48 = vadd.f32 %v5816_v63, %v5822_v40  ;;  %v1752_v42 = vadd.f32 %v5910_v30, %v5765_v53 }
 0xa21   :  { %v1757_v19 = vadd.f32 %v5782_v2, %v5910_v30  ;;  %v5960_v2 = vadd.f32 %v1495_v24, %v5705_v36 }
 0xa22   :  { %2171 = vrot.lane.b32.xlu1 %v1754_v54, %s5195_s10  ;;  %v5942_v0 = vadd.f32 %v1480_v48, %v5683_v23 }
 0xa24   :  { %v1512_v63 = vsel %vm209_vm0, %v5942_v0, 0.0 }
 0xa25   :  { %v5915_v57 = vpop.eup %4969 }
 0xa26   :  { %v2125_v12 = vsel %vm635_vm5, %v5915_v57, 0.0  ;;  %v5926_v54 = vpop.eup %4971 }
 0xa27   :  { %2126 = vadd.xlane.f32.xlu0 %v2125_v12  ;;  %v2107_v12 = vsel %vm635_vm5, %v5926_v54, 0.0  ;;  %v5930_v55 = vpop.eup %4973 }
 0xa28   :  { %v2104_v1 = vsel %vm635_vm5, %v5930_v55, 0.0 }
 0xa3d   :  { %2169 = vrot.lane.b32.xlu0 %v1753_v50, %s5195_s10  ;;  %v2070_v50 = vsub.f32 %v5875_v32, %v2040_v27 }
 0xa3f   :  { %v2084_v36 = vmul.f32 1.442695, %v2070_v50 }
 0xa41   :  { %2437 = vrot.lane.b32.xlu0 %v5658_v35, %s5196_s11  ;;  %v1485_v35 = vadd.f32 %v5842_v21, %v5822_v40  ;;  %v1756_v21 = vadd.f32 %v5910_v30, %v5789_v26  ;;  %v1521_v40 = vsel %vm209_vm0, %v5960_v2, 0.0  ;;  %v2092_v26 = vmul.f32 1.442695, %v2074_v5 }
 0xa43   :  { %v5952_v53 = vadd.f32 %v1485_v35, %v5689_v22  ;;  %v2071_v22 = vsub.f32 %v5860_v59, %v2043_v61 }
 0xa45   :  { %v1515_v23 = vsel %vm209_vm0, %v5952_v53, 0.0  ;;  %v2086_v16 = vmul.f32 1.442695, %v2071_v22 }
 0xa46   :  { %2108 = vadd.xlane.f32.xlu1 %v2107_v12  ;;  %v2077_v12 = vsub.f32 %v5867_v11, %v2061_v60 }
 0xa47   :  { %4975 = vpow2.f32 %v2086_v16 }
 0xa48   :  { %4977 = vpow2.f32 %v2092_v26  ;;  %v2098_v48 = vmul.f32 1.442695, %v2077_v12 }
 0xa49   :  { %4979 = vpow2.f32 %v2084_v36 }
 0xa4a   :  { %2105 = vadd.xlane.f32.xlu1 %v2104_v1  ;;  %v2049_v1 = vpop.xlane.xlu1 %2048  ;;  %4981 = vpow2.f32 %v2098_v48 }
 0xa4e   :  { %v2046_v35 = vpop.xlane.xlu1 %2045 }
 0xa4f   :  { %v2072_v32 = vsub.f32 %v5879_v34, %v2046_v35  ;;  %v1755_v35 = vadd.f32 %v5771_v45, %v5910_v30 }
 0xa54   :  { %v5971_v61 = vpop.eup %4975 }
 0xa55   :  { %v2113_v11 = vsel %vm635_vm5, %v5971_v61, 0.0  ;;  %v5976_v27 = vpop.eup %4977 }
 0xa56   :  { %v2122_v7 = vsel %vm635_vm5, %v5976_v27, 0.0  ;;  %v5981_v39 = vpop.eup %4979 }
 0xa5b   :  { %2167 = vrot.lane.b32.xlu1 %v1752_v42, %s5195_s10  ;;  %v2073_v42 = vsub.f32 %v5871_v18, %v2049_v1  ;;  %v2088_v18 = vmul.f32 1.442695, %v2072_v32  ;;  %v6016_v32 = vadd.f32 %v5827_v62, %v5680_v51  ;;  %v6026_v51 = vadd.f32 %v5845_v52, %v5709_v8 }
 0xa5d   :  { %v2090_v59 = vmul.f32 1.442695, %v2073_v42  ;;  %v1509_v30 = vsel %vm209_vm0, %v6016_v32, 0.0 }
 0xa5f   :  { %2296 = vrot.lane.b32.xlu1 %v1757_v19, %s5195_s10  ;;  %4983 = vpow2.f32 %v2090_v59  ;;  %v2067_v19 = vpop.xlane.xlu1 %2066 }
 0xa60   :  { %1513 = vadd.xlane.f32.xlu0 %v1512_v63  ;;  %v2079_v24 = vsub.f32 %v5885_v6, %v2067_v19  ;;  %4985 = vpow2.f32 %v2096_v41  ;;  %v2078_v63 = vsub.f32 %v5894_v49, %v5908_v56  ;;  %v6020_v19 = vadd.f32 %v5839_v47, %v5695_v37 }
 0xa61   :  { %4987 = vpow2.f32 %v2088_v18 }
 0xa62   :  { %v2102_v34 = vmul.f32 1.442695, %v2079_v24  ;;  %v2100_v6 = vmul.f32 1.442695, %v2078_v63  ;;  %v1518_v18 = vsel %vm209_vm0, %v6020_v19, 0.0 }
 0xa63   :  { %2294 = vrot.lane.b32.xlu1 %v1756_v21, %s5195_s10  ;;  %v2110_v21 = vsel %vm635_vm5, %v5981_v39, 0.0 }
 0xa64   :  { %1516 = vadd.xlane.f32.xlu0 %v1515_v23  ;;  %v5987_v23 = vpop.eup %4981  ;;  %4989 = vpow2.f32 %v2102_v34  ;;  %v1524_v34 = vsel %vm209_vm0, %v6026_v51, 0.0 }
 0xa65   :  { %4991 = vpow2.f32 %v2100_v6 }
 0xa68   :  { %1522 = vadd.xlane.f32.xlu0 %v1521_v40  ;;  %v2131_v40 = vsel %vm635_vm5, %v5987_v23, 0.0 }
 0xa6c   :  { %v5991_v22 = vpop.eup %4983 }
 0xa6d   :  { %v2119_v49 = vsel %vm635_vm5, %v5991_v22, 0.0  ;;  %v5995_v56 = vpop.eup %4985 }
 0xa6e   :  { %v2128_v5 = vsel %vm635_vm5, %v5995_v56, 0.0  ;;  %v5999_v60 = vpop.eup %4987 }
 0xa6f   :  { %v2116_v26 = vsel %vm635_vm5, %v5999_v60, 0.0 }
 0xa71   :  { %v6003_v50 = vpop.eup %4989 }
 0xa72   :  { %v2137_v12 = vsel %vm635_vm5, %v6003_v50, 0.0  ;;  %v6007_v36 = vpop.eup %4991 }
 0xa73   :  { %v2134_v1 = vsel %vm635_vm5, %v6007_v36, 0.0 }
 0xa87   :  { %2114 = vadd.xlane.f32.xlu1 %v2113_v11 }
 0xa8b   :  { %2123 = vadd.xlane.f32.xlu1 %v2122_v7 }
 0xa8f   :  { %2111 = vadd.xlane.f32.xlu1 %v2110_v21 }
 0xa93   :  { %2132 = vadd.xlane.f32.xlu1 %v2131_v40 }
 0xa94   :  { %v2172_v16 = vpop.permute.xlu1 %2171 }
 0xa95   :  { %4735 = vmatprep.subr.mxu1 %v2172_v16 }
 0xa96   :  { %4736 = vmatpush3.msra.mxu1 %v2172_v16 }
 0xa97   :  { %2120 = vadd.xlane.f32.xlu1 %v2119_v49 }
 0xa9b   :  { %2129 = vadd.xlane.f32.xlu1 %v2128_v5 }
 0xa9f   :  { %2117 = vadd.xlane.f32.xlu1 %v2116_v26 }
 0xaa3   :  { %2138 = vadd.xlane.f32.xlu1 %v2137_v12 }
 0xaa7   :  { %2135 = vadd.xlane.f32.xlu1 %v2134_v1 }
 0xab0   :  { %v2127_v48 = vpop.xlane.xlu0 %2126 }
 0xab4   :  { %v2170_v42 = vpop.permute.xlu0 %2169 }
 0xab5   :  { %4737 = vmatprep.subr.mxu1 %v2170_v42 }
 0xab6   :  { %4738 = vmatpush3.msra.mxu1 %v2170_v42 }
 0xab8   :  { %2292 = vrot.lane.b32.xlu1 %v1755_v35, %s5195_s10  ;;  %v2438_v11 = vpop.permute.xlu0 %2437 }
 0xacf   :  { %v2109_v59 = vpop.xlane.xlu1 %2108 }
 0xad0   :  { %4993 = vrcp.f32 %v2109_v59 }
 0xad3   :  { %v2106_v31 = vpop.xlane.xlu1 %2105 }
 0xad4   :  { %4995 = vrcp.f32 %v2106_v31 }
 0xad7   :  { %v2168_v41 = vpop.permute.xlu1 %2167 }
 0xad8   :  { %4739 = vmatprep.subr.mxu1 %v2168_v41 }
 0xad9   :  { %4740 = vmatpush3.msra.mxu1 %v2168_v41 }
 0xada   :  { %4765 = vmatprep.subr.mxu1 %v2438_v11 }
 0xadb   :  { %v2297_v45 = vpop.permute.xlu1 %2296 }
 0xadc   :  { %1510 = vadd.xlane.f32.xlu1 %v1509_v30  ;;  %4750 = vmatprep.subr.mxu0 %v2297_v45 }
 0xadd   :  { %4751 = vmatpush3.msra.mxu0 %v2297_v45  ;;  %v4994_v24 = vpop.eup %4993 }
 0xade   :  { %v2143_v7 = vmul.f32 %v4994_v24, %v5926_v54 }
 0xadf   :  { %v2295_v62 = vpop.permute.xlu1 %2294 }
 0xae0   :  { %1519 = vadd.xlane.f32.xlu1 %v1518_v18  ;;  %4752 = vmatprep.subr.mxu0 %v2295_v62 }
 0xae1   :  { %v4996_v37 = vpop.eup %4995  ;;  %4753 = vmatpush3.msra.mxu0 %v2295_v62 }
 0xae2   :  { %v2141_v47 = vmul.f32 %v4996_v37, %v5930_v55 }
 0xae4   :  { %1525 = vadd.xlane.f32.xlu1 %v1524_v34  ;;  %4741 = vmatprep.mubr.msk.f32.mxu1 %vm635_vm5, %v2141_v47 }
 0xae5   :  { %4742 = vmatmul.mubr.msk.f32.vlgmr.msra.gmra.mxu1 %vm635_vm5, %v2143_v7 }
 0xae6   :  { %4766 = vmatpush3.msra.mxu1 %v2438_v11 }
 0xb10   :  { %v2115_v8 = vpop.xlane.xlu1 %2114 }
 0xb14   :  { %v2124_v52 = vpop.xlane.xlu1 %2123 }
 0xb15   :  { %4997 = vrcp.f32 %v2124_v52 }
 0xb16   :  { %4999 = vrcp.f32 %v2115_v8 }
 0xb18   :  { %v2112_v63 = vpop.xlane.xlu1 %2111 }
 0xb19   :  { %5001 = vrcp.f32 %v2112_v63 }
 0xb1a   :  { %5003 = vrcp.f32 %v2127_v48 }
 0xb1c   :  { %v2133_v21 = vpop.xlane.xlu1 %2132 }
 0xb20   :  { %v2121_v6 = vpop.xlane.xlu1 %2120 }
 0xb22   :  { %v4998_v55 = vpop.eup %4997 }
 0xb23   :  { %v2153_v54 = vmul.f32 %v4998_v55, %v5976_v27  ;;  %v5000_v16 = vpop.eup %4999 }
 0xb24   :  { %v2130_v40 = vpop.xlane.xlu1 %2129  ;;  %v2147_v12 = vmul.f32 %v5000_v16, %v5971_v61 }
 0xb25   :  { %4756 = vmatprep.mubr.msk.f32.mxu0 %vm635_vm5, %v2153_v54  ;;  %5005 = vrcp.f32 %v2130_v40 }
 0xb26   :  { %v5002_v49 = vpop.eup %5001  ;;  %5007 = vrcp.f32 %v2133_v21 }
 0xb27   :  { %v2145_v5 = vmul.f32 %v5002_v49, %v5981_v39  ;;  %5009 = vrcp.f32 %v2121_v6  ;;  %v5004_v48 = vpop.eup %5003 }
 0xb28   :  { %v2118_v26 = vpop.xlane.xlu1 %2117  ;;  %v2155_v39 = vmul.f32 %v5004_v48, %v5915_v57 }
 0xb29   :  { %5011 = vrcp.f32 %v2118_v26  ;;  %4744 = vmatprep.mubr.msk.f32.mxu1 %vm635_vm5, %v2145_v5 }
 0xb2a   :  { %4745 = vmatmul.mubr.msk.f32.gmra.mxu1 %vm635_vm5, %v2147_v12 }
 0xb2c   :  { %v2139_v27 = vpop.xlane.xlu1 %2138 }
 0xb2d   :  { %5013 = vrcp.f32 %v2139_v27 }
 0xb30   :  { %v2136_v1 = vpop.xlane.xlu1 %2135 }
 0xb31   :  { %5015 = vrcp.f32 %v2136_v1 }
 0xb32   :  { %v5006_v42 = vpop.eup %5005 }
 0xb33   :  { %v5008_v35 = vpop.eup %5007  ;;  %v2157_v61 = vmul.f32 %v5006_v42, %v5995_v56 }
 0xb34   :  { %v2293_v59 = vpop.permute.xlu1 %2292  ;;  %v5010_v31 = vpop.eup %5009  ;;  %v2159_v30 = vmul.f32 %v5008_v35, %v5987_v23 }
 0xb35   :  { %4754 = vmatprep.subr.mxu0 %v2293_v59  ;;  %v2151_v45 = vmul.f32 %v5010_v31, %v5991_v22 }
 0xb36   :  { %v5012_v41 = vpop.eup %5011  ;;  %4755 = vmatpush3.msra.mxu0 %v2293_v59 }
 0xb37   :  { %4757 = vmatmul.mubr.msk.f32.vlgmr.msra.gmra.mxu0 %vm635_vm5, %v2155_v39  ;;  %v2149_v11 = vmul.f32 %v5012_v41, %v5999_v60  ;;  %v6075_v39 = vsub.s32 3, %v5269_v9 }
 0xb38   :  { %4759 = vmatprep.mubr.msk.f32.mxu0 %vm635_vm5, %v2157_v61 }
 0xb39   :  { %4747 = vmatprep.mubr.msk.f32.mxu1 %vm635_vm5, %v2149_v11  ;;  %v2435_v41 = vrot.slane %v5664_v4, %v6075_v39 }
 0xb3a   :  { %4748 = vmatmul.mubr.msk.f32.gmra.mxu1 %vm635_vm5, %v2151_v45  ;;  %v5014_v57 = vpop.eup %5013  ;;  %v1514_v45 = vpop.xlane.xlu0 %1513 }
 0xb3b   :  { %4760 = vmatmul.mubr.msk.f32.gmra.mxu0 %vm635_vm5, %v2159_v30  ;;  %v2163_v18 = vmul.f32 %v5014_v57, %v6003_v50 }
 0xb3e   :  { %v5016_v62 = vpop.eup %5015 }
 0xb3f   :  { %v2161_v56 = vmul.f32 %v5016_v62, %v6007_v36 }
 0xb41   :  { %4762 = vmatprep.mubr.msk.f32.mxu0 %vm635_vm5, %v2161_v56 }
 0xb42   :  { %4763 = vmatmul.mubr.msk.f32.gmra.mxu0 %vm635_vm5, %v2163_v18 }
 0xb65   :  { %v1511_v61 = vpop.xlane.xlu1 %1510 }
 0xba5   :  { %v4743_v60 = vpop.f32.mrf.mxu1 }
 0xba6   :  { %v2415_v21 = vmul.f32 %v4743_v60, %v5362_v58  ;;  %v1528_v60 = vmul.f32 0.125, %v1514_v45  ;;  %v6136_v45 = vld [vmem:[#allocation2 + $0x10] sm:$0xff] }
 0xba7   :  { %v2260_v22 = vpop.f32.mrf.mxu1  ;;  %4776 = vmatprep.subr.mxu0 %v6136_v45 }
 0xba8   :  { %v2414_v37 = vmul.f32 %v5362_v58, %v2260_v22  ;;  %v1520_v22 = vpop.xlane.xlu1 %1519  ;;  %4777 = vmatpush3.msra.mxu0 %v6136_v45 }
 0xbea   :  { %v4746_v24 = vpop.f32.mrf.mxu1 }
 0xbeb   :  { %v2420_v23 = vmul.f32 %v4746_v24, %v5400_v28 }
 0xbec   :  { %v2270_v34 = vpop.f32.mrf.mxu1 }
 0xbed   :  { %v2426_v47 = vadd.f32 %v2420_v23, %v2414_v37  ;;  %v2416_v55 = vmul.f32 %v5362_v58, %v2270_v34 }
 0xbef   :  { %4767 = vmatprep.mubr.msk.f32.mxu1 %vm209_vm0, %v2426_v47  ;;  %v1517_v47 = vpop.xlane.xlu0 %1516 }
 0xbf7   :  { %v4758_v7 = vpop.f32.mrf.mxu0 }
 0xbf8   :  { %v2418_v48 = vmul.f32 %v4758_v7, %v5362_v58 }
 0xbf9   :  { %v2385_v8 = vpop.f32.mrf.mxu0 }
 0xbfa   :  { %v4749_v36 = vpop.f32.mrf.mxu1  ;;  %v2417_v5 = vmul.f32 %v5362_v58, %v2385_v8  ;;  %v1527_v8 = vmul.f32 0.125, %v1511_v61 }
 0xbfb   :  { %v2422_v50 = vmul.f32 %v4749_v36, %v5400_v28  ;;  %v4761_v52 = vpop.f32.mrf.mxu0  ;;  %v6093_v36 = vsub.f32 %v5942_v0, %v1528_v60 }
 0xbfc   :  { %v2280_v63 = vpop.f32.mrf.mxu1  ;;  %v2423_v54 = vmul.f32 %v4761_v52, %v5400_v28 }
 0xbfd   :  { %v2421_v6 = vmul.f32 %v5400_v28, %v2280_v63  ;;  %v2428_v16 = vadd.f32 %v2422_v50, %v2416_v55  ;;  %v2395_v49 = vpop.f32.mrf.mxu0  ;;  %v1530_v63 = vmul.f32 0.125, %v1520_v22 }
 0xbfe   :  { %v2429_v12 = vadd.f32 %v2423_v54, %v2417_v5  ;;  %v2419_v35 = vmul.f32 %v5362_v58, %v2395_v49  ;;  %v1529_v54 = vmul.f32 0.125, %v1517_v47  ;;  %v1523_v49 = vpop.xlane.xlu0 %1522  ;;  %v1540_v5 = vmul.f32 %v6093_v36, %v6093_v36 }
 0xbff   :  { %v2427_v40 = vadd.f32 %v2421_v6, %v2415_v21 }
 0xc01   :  { %4768 = vmatmul.mubr.msk.f32.vlgmr.msra.gmra.mxu1 %vm209_vm0, %v2427_v40  ;;  %v6100_v40 = vsub.f32 %v6016_v32, %v1527_v8  ;;  %v6111_v32 = vsub.f32 %v5952_v53, %v1529_v54 }
 0xc02   :  { %v4764_v26 = vpop.f32.mrf.mxu0  ;;  %4770 = vmatprep.mubr.msk.f32.mxu1 %vm209_vm0, %v2428_v16 }
 0xc03   :  { %v2425_v27 = vmul.f32 %v4764_v26, %v5400_v28 }
 0xc04   :  { %v2405_v1 = vpop.f32.mrf.mxu0 }
 0xc05   :  { %v2424_v42 = vmul.f32 %v5400_v28, %v2405_v1  ;;  %4771 = vmatmul.mubr.msk.f32.gmra.mxu1 %vm209_vm0, %v2429_v12  ;;  %v2431_v31 = vadd.f32 %v2425_v27, %v2419_v35  ;;  %v1531_v1 = vmul.f32 0.125, %v1523_v49 }
 0xc07   :  { %v2430_v59 = vadd.f32 %v2424_v42, %v2418_v48  ;;  %v1539_v48 = vmul.f32 %v6100_v40, %v6100_v40 }
 0xc09   :  { %4773 = vmatprep.mubr.msk.f32.mxu1 %vm209_vm0, %v2430_v59  ;;  %v1545_v53 = vsel %vm209_vm0, %v1539_v48, 0.0  ;;  %v1541_v59 = vmul.f32 %v6111_v32, %v6111_v32 }
 0xc0a   :  { %4774 = vmatmul.mubr.msk.f32.gmra.mxu1 %vm209_vm0, %v2431_v31 }
 0xcc1   :  { %v4769_v11 = vpop.f32.mrf.mxu1 }
 0xcc2   :  { %v2530_v30 = vadd.f32 %v4769_v11, %v2435_v41 }
 0xcc3   :  { %v2524_v57 = vpop.f32.mrf.mxu1 }
 0xcc4   :  { %v6080_v62 = vadd.f32 %v2530_v30, %v5727_v3  ;;  %v2525_v56 = vadd.f32 %v2524_v57, %v2435_v41 }
 0xcc5   :  { %v4772_v18 = vpop.f32.mrf.mxu1 }
 0xcc6   :  { %v2540_v24 = vadd.f32 %v4772_v18, %v2435_v41  ;;  %v2562_v37 = vsel %vm209_vm0, %v6080_v62, 0.0  ;;  %v6085_v23 = vadd.f32 %v2525_v56, %v5714_v29 }
 0xcc7   :  { %2563 = vadd.xlane.f32.xlu1 %v2562_v37  ;;  %v2534_v4 = vpop.f32.mrf.mxu1 }
 0xcc8   :  { %v6088_v7 = vadd.f32 %v2540_v24, %v5742_v33  ;;  %v2535_v34 = vadd.f32 %v2534_v4, %v2435_v41  ;;  %v2559_v3 = vsel %vm209_vm0, %v6085_v23, 0.0  ;;  %v1526_v33 = vpop.xlane.xlu1 %1525 }
 0xcc9   :  { %2560 = vadd.xlane.f32.xlu0 %v2559_v3  ;;  %v1532_v26 = vmul.f32 0.125, %v1526_v33 }
 0xcca   :  { %v4775_v50 = vpop.f32.mrf.mxu1  ;;  %v2568_v29 = vsel %vm209_vm0, %v6088_v7, 0.0  ;;  %v2555_v52 = vadd.f32 %v2535_v34, %v5734_v43  ;;  %v6106_v43 = vsub.f32 %v6020_v19, %v1530_v63  ;;  %v1548_v19 = vsel %vm209_vm0, %v1540_v5, 0.0 }
 0xccb   :  { %v2550_v21 = vadd.f32 %v4775_v50, %v2435_v41  ;;  %2569 = vadd.xlane.f32.xlu1 %v2568_v29  ;;  %v6117_v42 = vsub.f32 %v6026_v51, %v1532_v26 }
 0xccc   :  { %v2544_v6 = vpop.f32.mrf.mxu1  ;;  %v2565_v55 = vsel %vm209_vm0, %v2555_v52, 0.0  ;;  %v1542_v35 = vmul.f32 %v6106_v43, %v6106_v43 }
 0xccd   :  { %v2558_v0 = vadd.f32 %v2550_v21, %v5750_v25  ;;  %v2545_v16 = vadd.f32 %v2544_v6, %v2435_v41  ;;  %2566 = vadd.xlane.f32.xlu0 %v2565_v55  ;;  %v1544_v51 = vmul.f32 %v6117_v42, %v6117_v42  ;;  %v1551_v41 = vsel %vm209_vm0, %v1541_v59, 0.0 }
 0xcce   :  { %v1554_v31 = vsel %vm209_vm0, %v1542_v35, 0.0 }
 0xccf   :  { %v2574_v12 = vsel %vm209_vm0, %v2558_v0, 0.0  ;;  %v2557_v27 = vadd.f32 %v2545_v16, %v5744_v15  ;;  %v6123_v15 = vsub.f32 %v5960_v2, %v1531_v1  ;;  %v1560_v2 = vsel %vm209_vm0, %v1544_v51, 0.0 }
 0xcd0   :  { %2575 = vadd.xlane.f32.xlu1 %v2574_v12 }
 0xcd1   :  { %v2571_v25 = vsel %vm209_vm0, %v2557_v27, 0.0  ;;  %v1543_v61 = vmul.f32 %v6123_v15, %v6123_v15 }
 0xcd2   :  { %2572 = vadd.xlane.f32.xlu0 %v2571_v25 }
 0xcd3   :  { %v1557_v11 = vsel %vm209_vm0, %v1543_v61, 0.0 }
 0xcd4   :  { %1549 = vadd.xlane.f32.xlu1 %v1548_v19 }
 0xcd6   :  { %1546 = vadd.xlane.f32.xlu0 %v1545_v53 }
 0xcd8   :  { %1555 = vadd.xlane.f32.xlu1 %v1554_v31 }
 0xcda   :  { %1552 = vadd.xlane.f32.xlu0 %v1551_v41 }
 0xcdc   :  { %1561 = vadd.xlane.f32.xlu1 %v1560_v2 }
 0xcde   :  { %1558 = vadd.xlane.f32.xlu0 %v1557_v11 }
 0xd50   :  { %v2564_v30 = vpop.xlane.xlu1 %2563 }
 0xd51   :  { %v2578_v57 = vmul.f32 0.125, %v2564_v30 }
 0xd52   :  { %v2561_v56 = vpop.xlane.xlu0 %2560 }
 0xd53   :  { %v6141_v18 = vsub.f32 %v6080_v62, %v2578_v57  ;;  %v2577_v60 = vmul.f32 0.125, %v2561_v56 }
 0xd54   :  { %v2570_v22 = vpop.xlane.xlu1 %2569 }
 0xd55   :  { %v6144_v24 = vsub.f32 %v6085_v23, %v2577_v60  ;;  %v2580_v37 = vmul.f32 0.125, %v2570_v22  ;;  %v2590_v4 = vmul.f32 %v6141_v18, %v6141_v18  ;;  %v5116_v60 = vld [vmem:[%s6557_s5 + $0x10] sm:$0xff] }
 0xd56   :  { %v2567_v47 = vpop.xlane.xlu0 %2566  ;;  %v1590_v22 = vrot.slane %v5116_v60, %v5461_v20 }
 0xd57   :  { %v6149_v34 = vsub.f32 %v6088_v7, %v2580_v37  ;;  %v2579_v3 = vmul.f32 0.125, %v2567_v47  ;;  %v2598_v8 = vsel %vm209_vm0, %v2590_v4, 0.0  ;;  %v2589_v62 = vmul.f32 %v6144_v24, %v6144_v24 }
 0xd58   :  { %2599 = vadd.xlane.f32.xlu1 %v2598_v8  ;;  %v1600_v47 = vrot.slane %v5116_v60, %v5591_v38  ;;  %v6190_v60 = vld [vmem:[%s6557_s5 + $0x18] sm:$0xff] }
 0xd59   :  { %v6154_v50 = vsub.f32 %v2555_v52, %v2579_v3  ;;  %v2576_v29 = vpop.xlane.xlu1 %2575  ;;  %v2595_v23 = vsel %vm209_vm0, %v2589_v62, 0.0  ;;  %v2592_v63 = vmul.f32 %v6149_v34, %v6149_v34 }
 0xd5a   :  { %v2582_v21 = vmul.f32 0.125, %v2576_v29  ;;  %2596 = vadd.xlane.f32.xlu0 %v2595_v23 }
 0xd5b   :  { %v2573_v33 = vpop.xlane.xlu0 %2572  ;;  %v2604_v7 = vsel %vm209_vm0, %v2592_v63, 0.0  ;;  %v2591_v6 = vmul.f32 %v6154_v50, %v6154_v50 }
 0xd5c   :  { %v6162_v55 = vsub.f32 %v2558_v0, %v2582_v21  ;;  %v2581_v54 = vmul.f32 0.125, %v2573_v33  ;;  %2605 = vadd.xlane.f32.xlu1 %v2604_v7 }
 0xd5d   :  { %v1550_v52 = vpop.xlane.xlu1 %1549  ;;  %v2601_v16 = vsel %vm209_vm0, %v2591_v6, 0.0 }
 0xd5e   :  { %v6165_v49 = vsub.f32 %v2557_v27, %v2581_v54  ;;  %v1564_v5 = vmul.f32 0.125, %v1550_v52  ;;  %2602 = vadd.xlane.f32.xlu0 %v2601_v16  ;;  %v2594_v26 = vmul.f32 %v6162_v55, %v6162_v55 }
 0xd5f   :  { %v1547_v12 = vpop.xlane.xlu0 %1546 }
 0xd60   :  { %v1570_v1 = vadd.f32 1e-05, %v1564_v5  ;;  %v1563_v25 = vmul.f32 0.125, %v1547_v12  ;;  %v2610_v48 = vsel %vm209_vm0, %v2594_v26, 0.0  ;;  %v2593_v0 = vmul.f32 %v6165_v49, %v6165_v49 }
 0xd61   :  { %2611 = vadd.xlane.f32.xlu1 %v2610_v48  ;;  %v1556_v19 = vpop.xlane.xlu1 %1555 }
 0xd62   :  { %5017 = vrsqrt.f32 %v1570_v1  ;;  %v1569_v35 = vadd.f32 1e-05, %v1563_v25  ;;  %v1566_v53 = vmul.f32 0.125, %v1556_v19  ;;  %v2607_v27 = vsel %vm209_vm0, %v2593_v0, 0.0 }
 0xd63   :  { %2608 = vadd.xlane.f32.xlu0 %v2607_v27  ;;  %v1553_v59 = vpop.xlane.xlu0 %1552 }
 0xd64   :  { %5019 = vrsqrt.f32 %v1569_v35  ;;  %v1572_v31 = vadd.f32 1e-05, %v1566_v53  ;;  %v1565_v51 = vmul.f32 0.125, %v1553_v59 }
 0xd65   :  { %v1562_v41 = vpop.xlane.xlu1 %1561 }
 0xd66   :  { %5021 = vrsqrt.f32 %v1572_v31  ;;  %v1571_v61 = vadd.f32 1e-05, %v1565_v51  ;;  %v1568_v2 = vmul.f32 0.125, %v1562_v41 }
 0xd67   :  { %v1559_v11 = vpop.xlane.xlu0 %1558 }
 0xd68   :  { %5023 = vrsqrt.f32 %v1571_v61  ;;  %v1574_v30 = vadd.f32 1e-05, %v1568_v2  ;;  %v1567_v57 = vmul.f32 0.125, %v1559_v11 }
 0xd6a   :  { %5025 = vrsqrt.f32 %v1574_v30  ;;  %v1573_v56 = vadd.f32 1e-05, %v1567_v57 }
 0xd6c   :  { %5027 = vrsqrt.f32 %v1573_v56 }
 0xd6f   :  { %v5018_v37 = vpop.eup %5017 }
 0xd70   :  { %v1582_v4 = vmul.f32 %v5018_v37, %v6093_v36 }
 0xd71   :  { %v5020_v3 = vpop.eup %5019 }
 0xd72   :  { %v1592_v8 = vmul.f32 %v1590_v22, %v1582_v4  ;;  %v1581_v62 = vmul.f32 %v5020_v3, %v6100_v40  ;;  %v2640_v4 = vrot.slane %v6190_v60, %v5283_v13 }
 0xd73   :  { %v5022_v29 = vpop.eup %5021 }
 0xd74   :  { %v1591_v23 = vmul.f32 %v1590_v22, %v1581_v62  ;;  %v1602_v63 = vadd.f32 %v1600_v47, %v1592_v8  ;;  %v1584_v21 = vmul.f32 %v5022_v29, %v6106_v43 }
 0xd75   :  { %v5024_v33 = vpop.eup %5023 }
 0xd76   :  { %v1601_v7 = vadd.f32 %v1600_v47, %v1591_v23  ;;  %v1583_v6 = vmul.f32 %v5024_v33, %v6111_v32  ;;  %v1594_v54 = vmul.f32 %v1590_v22, %v1584_v21  ;;  %v2650_v23 = vrot.slane %v6190_v60, %v5286_v14 }
 0xd77   :  { %v5026_v52 = vpop.eup %5025 }
 0xd78   :  { %4789 = vmatprep.mubr.msk.f32.mxu1 %vm209_vm0, %v1601_v7  ;;  %v1593_v36 = vmul.f32 %v1590_v22, %v1583_v6  ;;  %v1604_v16 = vadd.f32 %v1600_v47, %v1594_v54  ;;  %v1586_v5 = vmul.f32 %v5026_v52, %v6117_v42 }
 0xd79   :  { %v5028_v26 = vpop.eup %5027  ;;  %2775 = vrot.lane.b32.xlu0 %v6136_v45, %s5192_s8 }
 0xd7a   :  { %v1603_v40 = vadd.f32 %v1600_v47, %v1593_v36  ;;  %v1585_v12 = vmul.f32 %v5028_v26, %v6123_v15  ;;  %v1596_v43 = vmul.f32 %v1590_v22, %v1586_v5 }
 0xd7c   :  { %v1595_v1 = vmul.f32 %v1590_v22, %v1585_v12  ;;  %v1606_v25 = vadd.f32 %v1600_v47, %v1596_v43  ;;  %v6240_v43 = vld [vmem:[%s6557_s5 + $0x8] sm:$0xff] }
 0xd7e   :  { %v1605_v48 = vadd.f32 %v1600_v47, %v1595_v1  ;;  %v2894_v1 = vrot.slane %v6240_v43, %v5272_v10 }
 0xde1   :  { %v2600_v32 = vpop.xlane.xlu1 %2599 }
 0xde2   :  { %v2614_v0 = vmul.f32 0.125, %v2600_v32  ;;  %v2660_v32 = vrot.slane %v6240_v43, %v5342_v44 }
 0xde3   :  { %v2597_v19 = vpop.xlane.xlu0 %2596 }
 0xde4   :  { %v2620_v35 = vadd.f32 1e-05, %v2614_v0  ;;  %v2613_v53 = vmul.f32 0.125, %v2597_v19 }
 0xde5   :  { %v2606_v27 = vpop.xlane.xlu1 %2605 }
 0xde6   :  { %5029 = vrsqrt.f32 %v2620_v35  ;;  %v2619_v59 = vadd.f32 1e-05, %v2613_v53  ;;  %v2616_v42 = vmul.f32 0.125, %v2606_v27 }
 0xde7   :  { %v2603_v31 = vpop.xlane.xlu0 %2602 }
 0xde8   :  { %5031 = vrsqrt.f32 %v2619_v59  ;;  %v2622_v51 = vadd.f32 1e-05, %v2616_v42  ;;  %v2615_v41 = vmul.f32 0.125, %v2603_v31 }
 0xdea   :  { %5033 = vrsqrt.f32 %v2622_v51  ;;  %v2621_v61 = vadd.f32 1e-05, %v2615_v41  ;;  %v2612_v15 = vpop.xlane.xlu1 %2611 }
 0xdeb   :  { %v2618_v2 = vmul.f32 0.125, %v2612_v15 }
 0xdec   :  { %5035 = vrsqrt.f32 %v2621_v61  ;;  %v2609_v11 = vpop.xlane.xlu0 %2608 }
 0xded   :  { %v2624_v30 = vadd.f32 1e-05, %v2618_v2  ;;  %v2617_v57 = vmul.f32 0.125, %v2609_v11 }
 0xdef   :  { %5037 = vrsqrt.f32 %v2624_v30  ;;  %v2623_v56 = vadd.f32 1e-05, %v2617_v57 }
 0xdf0   :  { %v2776_v22 = vpop.permute.xlu0 %2775 }
 0xdf1   :  { %5039 = vrsqrt.f32 %v2623_v56  ;;  %4787 = vmatprep.subr.mxu1 %v2776_v22 }
 0xdf2   :  { %4788 = vmatpush3.msra.mxu1 %v2776_v22 }
 0xdf3   :  { %v5030_v37 = vpop.eup %5029  ;;  %4790 = vmatmul.mubr.msk.f32.vlgmr.msra.gmra.mxu1 %vm209_vm0, %v1602_v63 }
 0xdf4   :  { %v2632_v47 = vmul.f32 %v5030_v37, %v6141_v18  ;;  %4792 = vmatprep.mubr.msk.f32.mxu1 %vm209_vm0, %v1603_v40 }
 0xdf5   :  { %v5032_v3 = vpop.eup %5031 }
 0xdf6   :  { %v2631_v8 = vmul.f32 %v5032_v3, %v6144_v24  ;;  %v2642_v29 = vmul.f32 %v2640_v4, %v2632_v47 }
 0xdf7   :  { %v5034_v62 = vpop.eup %5033  ;;  %4793 = vmatmul.mubr.msk.f32.gmra.mxu1 %vm209_vm0, %v1604_v16 }
 0xdf8   :  { %4795 = vmatprep.mubr.msk.f32.mxu1 %vm209_vm0, %v1605_v48  ;;  %v2641_v21 = vmul.f32 %v2640_v4, %v2631_v8  ;;  %v2634_v13 = vmul.f32 %v5034_v62, %v6149_v34  ;;  %v6207_v24 = vadd.f32 %v2650_v23, %v2642_v29 }
 0xdf9   :  { %v5036_v63 = vpop.eup %5035 }
 0xdfa   :  { %v6203_v33 = vadd.f32 %v2650_v23, %v2641_v21  ;;  %v2633_v18 = vmul.f32 %v5036_v63, %v6154_v50  ;;  %v2644_v7 = vmul.f32 %v2640_v4, %v2634_v13 }
 0xdfb   :  { %4796 = vmatmul.mubr.msk.f32.gmra.mxu1 %vm209_vm0, %v1606_v25 }
 0xdfc   :  { %v5038_v6 = vpop.eup %5037  ;;  %4778 = vmatprep.mubr.msk.f32.mxu0 %vm209_vm0, %v6203_v33  ;;  %v2643_v14 = vmul.f32 %v2640_v4, %v2633_v18  ;;  %v6216_v36 = vadd.f32 %v2650_v23, %v2644_v7 }
 0xdfd   :  { %4779 = vmatmul.mubr.msk.f32.vlgmr.msra.gmra.mxu0 %vm209_vm0, %v6207_v24  ;;  %v2636_v34 = vmul.f32 %v5038_v6, %v6162_v55 }
 0xdfe   :  { %v5040_v54 = vpop.eup %5039  ;;  %v6214_v52 = vadd.f32 %v2650_v23, %v2643_v14 }
 0xdff   :  { %v2635_v50 = vmul.f32 %v5040_v54, %v6165_v49  ;;  %v2646_v16 = vmul.f32 %v2640_v4, %v2636_v34 }
 0xe00   :  { %4781 = vmatprep.mubr.msk.f32.mxu0 %vm209_vm0, %v6214_v52 }
 0xe01   :  { %4782 = vmatmul.mubr.msk.f32.gmra.mxu0 %vm209_vm0, %v6216_v36  ;;  %v2645_v5 = vmul.f32 %v2640_v4, %v2635_v50  ;;  %v6225_v40 = vadd.f32 %v2650_v23, %v2646_v16 }
 0xe03   :  { %v6223_v26 = vadd.f32 %v2650_v23, %v2645_v5 }
 0xe05   :  { %4784 = vmatprep.mubr.msk.f32.mxu0 %vm209_vm0, %v6223_v26 }
 0xe06   :  { %4785 = vmatmul.mubr.msk.f32.gmra.mxu0 %vm209_vm0, %v6225_v40 }
 0xeb3   :  { %v6231_v55 = vpop.f32.mrf.mxu1 }
 0xeb4   :  { %v2896_v19 = vadd.f32 %v6231_v55, %v2894_v1 }
 0xeb5   :  { %v6233_v49 = vpop.f32.mrf.mxu1 }
 0xeb6   :  { %v2895_v51 = vadd.f32 %v2894_v1, %v6233_v49 }
 0xeb7   :  { %v6235_v12 = vpop.f32.mrf.mxu1 }
 0xeb8   :  { %v2898_v15 = vadd.f32 %v6235_v12, %v2894_v1 }
 0xeb9   :  { %v6244_v25 = vpop.f32.mrf.mxu1 }
 0xeba   :  { %v2897_v48 = vadd.f32 %v2894_v1, %v6244_v25 }
 0xebb   :  { %v6249_v0 = vpop.f32.mrf.mxu1 }
 0xebc   :  { %v2900_v35 = vadd.f32 %v6249_v0, %v2894_v1  ;;  %4798 = vmatprep.subr.msk.mxu0 %vm209_vm0, %v2897_v48 }
 0xebd   :  { %v4780_v53 = vpop.f32.mrf.mxu0  ;;  %v6254_v27 = vpop.f32.mrf.mxu1  ;;  %4799 = vmatpush3.xpose.msk.msra.mxu0 %vm209_vm0, %v2897_v48 }
 0xebe   :  { %v2751_v59 = vadd.f32 %v4780_v53, %v2660_v32  ;;  %v2899_v42 = vadd.f32 %v2894_v1, %v6254_v27  ;;  %4800 = vmatprep.subr.msk.mxu0 %vm209_vm0, %v2896_v19  ;;  %4813 = vmatprep.subr.msk.mxu1 %vm209_vm0, %v2900_v35 }
 0xebf   :  { %v2745_v31 = vpop.f32.mrf.mxu0  ;;  %4814 = vmatpush3.xpose.msk.msra.mxu1 %vm209_vm0, %v2900_v35 }
 0xec0   :  { %v2746_v41 = vadd.f32 %v2745_v31, %v2660_v32  ;;  %4815 = vmatprep.subr.msk.mxu1 %vm209_vm0, %v2899_v42  ;;  %v2916_v2 = vmul.f32 0.5, %v2751_v59 }
 0xec1   :  { %v4783_v61 = vpop.f32.mrf.mxu0  ;;  %4801 = vmatpush3.xpose.msk.msra.mxu0 %vm209_vm0, %v2896_v19 }
 0xec2   :  { %v2915_v11 = vmul.f32 0.5, %v2746_v41  ;;  %v2761_v30 = vadd.f32 %v4783_v61, %v2660_v32  ;;  %4802 = vmatprep.subr.msk.mxu0 %vm209_vm0, %v2895_v51  ;;  %v2922_v4 = vmul.f32 %v5362_v58, %v2916_v2  ;;  %v2928_v18 = vmul.f32 %v5400_v28, %v2916_v2 }
 0xec3   :  { %v2755_v57 = vpop.f32.mrf.mxu0  ;;  %4816 = vmatpush3.xpose.msk.msra.mxu1 %vm209_vm0, %v2899_v42 }
 0xec4   :  { %v2921_v56 = vmul.f32 %v5362_v58, %v2915_v11  ;;  %v2918_v22 = vmul.f32 0.5, %v2761_v30  ;;  %v2756_v37 = vadd.f32 %v2755_v57, %v2660_v32  ;;  %4817 = vmatprep.subr.msk.mxu1 %vm209_vm0, %v2898_v15  ;;  %v2927_v13 = vmul.f32 %v5400_v28, %v2915_v11 }
 0xec5   :  { %4803 = vmatpush3.xpose.msk.msra.mxu0 %vm209_vm0, %v2895_v51 }
 0xec6   :  { %v2924_v47 = vmul.f32 %v5362_v58, %v2918_v22  ;;  %v2917_v3 = vmul.f32 0.5, %v2756_v37  ;;  %v4786_v8 = vpop.f32.mrf.mxu0  ;;  %4804 = vmatprep.mubr.msk.f32.mxu0 %vm209_vm0, %v2921_v56  ;;  %v2930_v54 = vmul.f32 %v5400_v28, %v2918_v22 }
 0xec7   :  { %v2771_v62 = vadd.f32 %v4786_v8, %v2660_v32  ;;  %4818 = vmatpush3.xpose.msk.msra.mxu1 %vm209_vm0, %v2898_v15  ;;  %v2904_v8 = vrot.slane %v6240_v43, %v5461_v20 }
 0xec8   :  { %v2923_v29 = vmul.f32 %v5362_v58, %v2917_v3  ;;  %v2765_v23 = vpop.f32.mrf.mxu0  ;;  %4805 = vmatmul.mubr.msk.f32.vlgmr.msra.gmra.mxu0 %vm209_vm0, %v2922_v4  ;;  %4819 = vmatprep.mubr.msk.f32.mxu1 %vm209_vm0, %v2924_v47  ;;  %v2929_v14 = vmul.f32 %v5400_v28, %v2917_v3 }
 0xec9   :  { %v2766_v21 = vadd.f32 %v2765_v23, %v2660_v32  ;;  %v2920_v63 = vmul.f32 0.5, %v2771_v62 }
 0xeca   :  { %4807 = vmatprep.mubr.msk.f32.mxu0 %vm209_vm0, %v2923_v29 }
 0xecb   :  { %v2919_v7 = vmul.f32 0.5, %v2766_v21  ;;  %v2926_v34 = vmul.f32 %v5362_v58, %v2920_v63  ;;  %v2932_v16 = vmul.f32 %v5400_v28, %v2920_v63 }
 0xecc   :  { %4808 = vmatmul.mubr.msk.f32.gmra.mxu0 %vm209_vm0, %v2927_v13 }
 0xecd   :  { %v2925_v6 = vmul.f32 %v5362_v58, %v2919_v7  ;;  %4810 = vmatprep.mubr.msk.f32.mxu0 %vm209_vm0, %v2928_v18  ;;  %v2931_v50 = vmul.f32 %v5400_v28, %v2919_v7 }
 0xecf   :  { %4820 = vmatmul.mubr.msk.f32.vlgmr.msra.gmra.mxu1 %vm209_vm0, %v2925_v6 }
 0xed0   :  { %4811 = vmatmul.mubr.msk.f32.gmra.mxu0 %vm209_vm0, %v2929_v14  ;;  %4822 = vmatprep.mubr.msk.f32.mxu1 %vm209_vm0, %v2926_v34 }
 0xed3   :  { %4823 = vmatmul.mubr.msk.f32.gmra.mxu1 %vm209_vm0, %v2930_v54 }
 0xed4   :  { %4825 = vmatprep.mubr.msk.f32.mxu1 %vm209_vm0, %v2931_v50 }
 0xed7   :  { %4826 = vmatmul.mubr.msk.f32.gmra.mxu1 %vm209_vm0, %v2932_v16 }
 0xf88   :  { %v4806_v5 = vpop.f32.mrf.mxu0 }
 0xf89   :  { %v3180_v1 = vsel %vm635_vm5, %v4806_v5, -inf }
 0xf8a   :  { %3181 = vmax.xlane.f32.xlu1 %v3180_v1  ;;  %v3026_v48 = vpop.f32.mrf.mxu0 }
 0xf8b   :  { %v3177_v19 = vsel %vm635_vm5, %v3026_v48, -inf }
 0xf8c   :  { %v4809_v32 = vpop.f32.mrf.mxu0 }
 0xf8d   :  { %v3186_v59 = vsel %vm635_vm5, %v4809_v32, -inf }
 0xf8e   :  { %3178 = vmax.xlane.f32.xlu1 %v3177_v19  ;;  %v3036_v35 = vpop.f32.mrf.mxu0 }
 0xf8f   :  { %v3183_v51 = vsel %vm635_vm5, %v3036_v35, -inf  ;;  %v4821_v41 = vpop.f32.mrf.mxu1 }
 0xf90   :  { %v6296_v53 = vpop.f32.mrf.mxu0  ;;  %v3198_v61 = vsel %vm635_vm5, %v4821_v41, -inf }
 0xf91   :  { %v3148_v15 = vpop.f32.mrf.mxu1  ;;  %v3192_v2 = vsel %vm635_vm5, %v6296_v53, -inf }
 0xf92   :  { %3187 = vmax.xlane.f32.xlu1 %v3186_v59  ;;  %v6299_v42 = vpop.f32.mrf.mxu0  ;;  %v3195_v30 = vsel %vm635_vm5, %v3148_v15, -inf }
 0xf93   :  { %v3189_v31 = vsel %vm635_vm5, %v6299_v42, -inf  ;;  %v6307_v11 = vpop.f32.mrf.mxu1 }
 0xf94   :  { %3190 = vmax.xlane.f32.xlu0 %v3189_v31  ;;  %v3204_v56 = vsel %vm635_vm5, %v6307_v11, -inf }
 0xf95   :  { %v6310_v57 = vpop.f32.mrf.mxu1 }
 0xf96   :  { %3184 = vmax.xlane.f32.xlu1 %v3183_v51  ;;  %v3201_v37 = vsel %vm635_vm5, %v6310_v57, -inf }
 0xf97   :  { %v6314_v22 = vpop.f32.mrf.mxu1 }
 0xf98   :  { %v3210_v3 = vsel %vm635_vm5, %v6314_v22, -inf }
 0xf99   :  { %v6318_v4 = vpop.f32.mrf.mxu1 }
 0xf9a   :  { %3199 = vmax.xlane.f32.xlu1 %v3198_v61  ;;  %v3207_v47 = vsel %vm635_vm5, %v6318_v4, -inf }
 0xf9e   :  { %3193 = vmax.xlane.f32.xlu1 %v3192_v2 }
 0xfa2   :  { %3196 = vmax.xlane.f32.xlu1 %v3195_v30 }
 0xfa6   :  { %3205 = vmax.xlane.f32.xlu1 %v3204_v56 }
 0xfaa   :  { %3202 = vmax.xlane.f32.xlu1 %v3201_v37 }
 0xfae   :  { %3208 = vmax.xlane.f32.xlu1 %v3207_v47 }
 0xfb2   :  { %3211 = vmax.xlane.f32.xlu1 %v3210_v3 }
 0xfc3   :  { %2906 = vrot.lane.b32.xlu1 %v2904_v8, %s5189_s28 }
0x1013   :  { %v3182_v62 = vpop.xlane.xlu1 %3181 }
0x1014   :  { %v3214_v19 = vsub.f32 %v4806_v5, %v3182_v62 }
0x1016   :  { %v3227_v59 = vmul.f32 1.442695, %v3214_v19 }
0x1017   :  { %v3179_v29 = vpop.xlane.xlu1 %3178 }
0x1018   :  { %5041 = vpow2.f32 %v3227_v59 }
0x101b   :  { %v3188_v23 = vpop.xlane.xlu1 %3187 }
0x101c   :  { %v3216_v31 = vsub.f32 %v4809_v32, %v3188_v23 }
0x101d   :  { %v3191_v5 = vpop.xlane.xlu0 %3190 }
0x101e   :  { %v3231_v61 = vmul.f32 1.442695, %v3216_v31 }
0x101f   :  { %v3185_v21 = vpop.xlane.xlu1 %3184 }
0x1020   :  { %v3215_v51 = vsub.f32 %v3036_v35, %v3185_v21 }
0x1022   :  { %v3229_v2 = vmul.f32 1.442695, %v3215_v51 }
0x1023   :  { %v3200_v13 = vpop.xlane.xlu1 %3199 }
0x1024   :  { %v3220_v30 = vsub.f32 %v4821_v41, %v3200_v13 }
0x1025   :  { %v6344_v47 = vpop.eup %5041 }
0x1026   :  { %v3252_v35 = vsel %vm635_vm5, %v6344_v47, 0.0 }
0x1027   :  { %v3194_v63 = vpop.xlane.xlu1 %3193 }
0x102b   :  { %v3197_v18 = vpop.xlane.xlu1 %3196 }
0x102c   :  { %v3219_v37 = vsub.f32 %v3148_v15, %v3197_v18 }
0x102e   :  { %v3237_v32 = vmul.f32 1.442695, %v3219_v37 }
0x102f   :  { %v3206_v7 = vpop.xlane.xlu1 %3205 }
0x1033   :  { %v3203_v6 = vpop.xlane.xlu1 %3202 }
0x1034   :  { %v3221_v23 = vsub.f32 %v6310_v57, %v3203_v6 }
0x1037   :  { %v6327_v14 = vpop.xlane.xlu1 %3208 }
0x1038   :  { %v3223_v57 = vsub.f32 %v6318_v4, %v6327_v14 }
0x103b   :  { %v3212_v34 = vpop.xlane.xlu1 %3211 }
0x103f   :  { %v6329_v54 = vpop.permute.xlu1 %2906 }
0x1040   :  { %v2910_v50 = vadd.f32 %v6231_v55, %v6329_v54  ;;  %v2911_v20 = vadd.f32 %v6329_v54, %v6244_v25  ;;  %v2914_v16 = vadd.f32 %v6249_v0, %v6329_v54  ;;  %v2909_v1 = vadd.f32 %v6329_v54, %v6233_v49 }
0x1041   :  { %v3213_v55 = vsub.f32 %v3026_v48, %v3179_v29  ;;  %v3239_v0 = vmul.f32 1.442695, %v3220_v30  ;;  %v3218_v49 = vsub.f32 %v6296_v53, %v3194_v63  ;;  %v3217_v48 = vsub.f32 %v6299_v42, %v3191_v5 }
0x1042   :  { %3314 = vrot.lane.b32.xlu1 %v2910_v50, %s5192_s8  ;;  %3316 = vrot.lane.b32.xlu0 %v2911_v20, %s5192_s8  ;;  %v3222_v53 = vsub.f32 %v6307_v11, %v3206_v7  ;;  %v3241_v11 = vmul.f32 1.442695, %v3221_v23  ;;  %v3224_v63 = vsub.f32 %v6314_v22, %v3212_v34  ;;  %v2912_v51 = vadd.f32 %v6235_v12, %v6329_v54 }
0x1043   :  { %v3225_v25 = vmul.f32 1.442695, %v3213_v55  ;;  %v3235_v56 = vmul.f32 1.442695, %v3218_v49  ;;  %v3233_v8 = vmul.f32 1.442695, %v3217_v48 }
0x1044   :  { %v3243_v29 = vmul.f32 1.442695, %v3222_v53  ;;  %v3247_v6 = vmul.f32 1.442695, %v3224_v63 }
0x1045   :  { %5043 = vpow2.f32 %v3225_v25 }
0x1046   :  { %3441 = vrot.lane.b32.xlu0 %v2914_v16, %s5192_s8  ;;  %3312 = vrot.lane.b32.xlu1 %v2909_v1, %s5192_s8  ;;  %5045 = vpow2.f32 %v3231_v61  ;;  %v3245_v16 = vmul.f32 1.442695, %v3223_v57  ;;  %v2913_v1 = vadd.f32 %v6329_v54, %v6254_v27 }
0x1047   :  { %5047 = vpow2.f32 %v3229_v2 }
0x1048   :  { %5049 = vpow2.f32 %v3239_v0 }
0x1049   :  { %5051 = vpow2.f32 %v3235_v56 }
0x104a   :  { %5053 = vpow2.f32 %v3237_v32 }
0x104b   :  { %5055 = vpow2.f32 %v3233_v8 }
0x104c   :  { %5057 = vpow2.f32 %v3243_v29 }
0x104d   :  { %5059 = vpow2.f32 %v3241_v11 }
0x104e   :  { %5061 = vpow2.f32 %v3247_v6 }
0x104f   :  { %5063 = vpow2.f32 %v3245_v16 }
0x1052   :  { %v6349_v3 = vpop.eup %5043 }
0x1053   :  { %v6351_v41 = vpop.eup %5045  ;;  %v3249_v15 = vsel %vm635_vm5, %v6349_v3, 0.0 }
0x1054   :  { %v6356_v62 = vpop.eup %5047  ;;  %v3258_v42 = vsel %vm635_vm5, %v6351_v41, 0.0 }
0x1055   :  { %v3255_v21 = vsel %vm635_vm5, %v6356_v62, 0.0  ;;  %v6363_v13 = vpop.eup %5049 }
0x1056   :  { %v3270_v18 = vsel %vm635_vm5, %v6363_v13, 0.0  ;;  %v6368_v7 = vpop.eup %5051 }
0x1057   :  { %v3264_v50 = vsel %vm635_vm5, %v6368_v7, 0.0  ;;  %v6374_v20 = vpop.eup %5053 }
0x1058   :  { %v3267_v22 = vsel %vm635_vm5, %v6374_v20, 0.0  ;;  %v6378_v34 = vpop.eup %5055 }
0x1059   :  { %v3261_v4 = vsel %vm635_vm5, %v6378_v34, 0.0  ;;  %v6385_v14 = vpop.eup %5057 }
0x105a   :  { %v3276_v19 = vsel %vm635_vm5, %v6385_v14, 0.0  ;;  %v6391_v59 = vpop.eup %5059 }
0x105b   :  { %v3273_v27 = vsel %vm635_vm5, %v6391_v59, 0.0  ;;  %v6395_v55 = vpop.eup %5061 }
0x105c   :  { %v3282_v31 = vsel %vm635_vm5, %v6395_v55, 0.0  ;;  %v6399_v25 = vpop.eup %5063 }
0x1065   :  { %3253 = vadd.xlane.f32.xlu0 %v3252_v35 }
0x1069   :  { %3250 = vadd.xlane.f32.xlu0 %v3249_v15 }
0x106a   :  { %3259 = vadd.xlane.f32.xlu1 %v3258_v42 }
0x106d   :  { %3256 = vadd.xlane.f32.xlu0 %v3255_v21 }
0x1071   :  { %3271 = vadd.xlane.f32.xlu0 %v3270_v18 }
0x1075   :  { %3265 = vadd.xlane.f32.xlu0 %v3264_v50 }
0x1079   :  { %3268 = vadd.xlane.f32.xlu0 %v3267_v22 }
0x107b   :  { %3439 = vrot.lane.b32.xlu1 %v2913_v1, %s5192_s8 }
0x107d   :  { %3262 = vadd.xlane.f32.xlu0 %v3261_v4 }
0x107f   :  { %3581 = vrot.lane.b32.xlu1 %v6136_v45, %s5196_s11  ;;  %v3279_v45 = vsel %vm635_vm5, %v6399_v25, 0.0 }
0x1081   :  { %3277 = vadd.xlane.f32.xlu0 %v3276_v19 }
0x1085   :  { %3274 = vadd.xlane.f32.xlu0 %v3273_v27 }
0x1089   :  { %3283 = vadd.xlane.f32.xlu0 %v3282_v31 }
0x108d   :  { %3280 = vadd.xlane.f32.xlu0 %v3279_v45 }
0x10a3   :  { %3437 = vrot.lane.b32.xlu0 %v2912_v51, %s5192_s8 }
0x10b4   :  { %v3315_v61 = vpop.permute.xlu1 %3314  ;;  %v3317_v2 = vpop.permute.xlu0 %3316 }
0x10b5   :  { %4828 = vmatprep.subr.mxu0 %v3317_v2 }
0x10b6   :  { %4829 = vmatpush3.msra.mxu0 %v3317_v2 }
0x10b7   :  { %4830 = vmatprep.subr.mxu0 %v3315_v61 }
0x10b8   :  { %4831 = vmatpush3.msra.mxu0 %v3315_v61  ;;  %v3442_v30 = vpop.permute.xlu0 %3441  ;;  %v3313_v0 = vpop.permute.xlu1 %3312 }
0x10b9   :  { %4832 = vmatprep.subr.mxu0 %v3313_v0  ;;  %4843 = vmatprep.subr.mxu1 %v3442_v30 }
0x10ba   :  { %4833 = vmatpush3.msra.mxu0 %v3313_v0  ;;  %4844 = vmatpush3.msra.mxu1 %v3442_v30 }
0x10ee   :  { %v3254_v49 = vpop.xlane.xlu0 %3253 }
0x10ef   :  { %5065 = vrcp.f32 %v3254_v49 }
0x10f2   :  { %v3251_v56 = vpop.xlane.xlu0 %3250 }
0x10f3   :  { %5067 = vrcp.f32 %v3251_v56  ;;  %v3260_v37 = vpop.xlane.xlu1 %3259 }
0x10f4   :  { %5069 = vrcp.f32 %v3260_v37 }
0x10f6   :  { %v3257_v12 = vpop.xlane.xlu0 %3256 }
0x10f7   :  { %5071 = vrcp.f32 %v3257_v12  ;;  %v3440_v54 = vpop.permute.xlu1 %3439 }
0x10f8   :  { %4845 = vmatprep.subr.mxu1 %v3440_v54 }
0x10f9   :  { %4846 = vmatpush3.msra.mxu1 %v3440_v54 }
0x10fa   :  { %v3272_v5 = vpop.xlane.xlu0 %3271 }
0x10fc   :  { %v5066_v32 = vpop.eup %5065 }
0x10fd   :  { %v3288_v53 = vmul.f32 %v5066_v32, %v6344_v47 }
0x10fe   :  { %v3266_v48 = vpop.xlane.xlu0 %3265 }
0x1100   :  { %v5068_v35 = vpop.eup %5067 }
0x1101   :  { %v3286_v8 = vmul.f32 %v5068_v35, %v6349_v3  ;;  %v5070_v42 = vpop.eup %5069 }
0x1102   :  { %v3269_v15 = vpop.xlane.xlu0 %3268  ;;  %v3292_v11 = vmul.f32 %v5070_v42, %v6351_v41 }
0x1103   :  { %5073 = vrcp.f32 %v3269_v15  ;;  %4834 = vmatprep.mubr.msk.f32.mxu0 %vm635_vm5, %v3286_v8 }
0x1104   :  { %v5072_v29 = vpop.eup %5071  ;;  %4835 = vmatmul.mubr.msk.f32.vlgmr.msra.gmra.mxu0 %vm635_vm5, %v3288_v53  ;;  %5075 = vrcp.f32 %v3266_v48 }
0x1105   :  { %v3290_v23 = vmul.f32 %v5072_v29, %v6356_v62 }
0x1106   :  { %v3263_v21 = vpop.xlane.xlu0 %3262 }
0x1107   :  { %5077 = vrcp.f32 %v3263_v21  ;;  %4837 = vmatprep.mubr.msk.f32.mxu0 %vm635_vm5, %v3290_v23 }
0x1108   :  { %4838 = vmatmul.mubr.msk.f32.gmra.mxu0 %vm635_vm5, %v3292_v11  ;;  %5079 = vrcp.f32 %v3272_v5 }
0x110a   :  { %v3278_v47 = vpop.xlane.xlu0 %3277 }
0x110b   :  { %5081 = vrcp.f32 %v3278_v47 }
0x110e   :  { %v3275_v3 = vpop.xlane.xlu0 %3274 }
0x110f   :  { %5083 = vrcp.f32 %v3275_v3 }
0x1110   :  { %v5074_v63 = vpop.eup %5073 }
0x1111   :  { %v3298_v18 = vmul.f32 %v5074_v63, %v6374_v20  ;;  %v5076_v6 = vpop.eup %5075 }
0x1112   :  { %v3284_v57 = vpop.xlane.xlu0 %3283  ;;  %v3296_v16 = vmul.f32 %v5076_v6, %v6368_v7  ;;  %v3580_v6 = vrot.slane %v6240_v43, %v5591_v38 }
0x1113   :  { %4849 = vmatprep.mubr.msk.f32.mxu1 %vm635_vm5, %v3298_v18  ;;  %5085 = vrcp.f32 %v3284_v57 }
0x1114   :  { %v5078_v62 = vpop.eup %5077 }
0x1115   :  { %v3294_v41 = vmul.f32 %v5078_v62, %v6378_v34  ;;  %v5080_v22 = vpop.eup %5079 }
0x1116   :  { %v3281_v50 = vpop.xlane.xlu0 %3280  ;;  %v3300_v20 = vmul.f32 %v5080_v22, %v6363_v13  ;;  %v3582_v13 = vpop.permute.xlu1 %3581 }
0x1117   :  { %5087 = vrcp.f32 %v3281_v50  ;;  %4840 = vmatprep.mubr.msk.f32.mxu0 %vm635_vm5, %v3294_v41  ;;  %4858 = vmatprep.subr.mxu0 %v3582_v13 }
0x1118   :  { %4841 = vmatmul.mubr.msk.f32.gmra.mxu0 %vm635_vm5, %v3296_v16  ;;  %v5082_v4 = vpop.eup %5081 }
0x1119   :  { %v3304_v7 = vmul.f32 %v5082_v4, %v6385_v14  ;;  %4859 = vmatpush3.msra.mxu0 %v3582_v13 }
0x111a   :  { %v3438_v1 = vpop.permute.xlu0 %3437 }
0x111b   :  { %4847 = vmatprep.subr.mxu1 %v3438_v1 }
0x111c   :  { %v5084_v19 = vpop.eup %5083  ;;  %4848 = vmatpush3.msra.mxu1 %v3438_v1 }
0x111d   :  { %4850 = vmatmul.mubr.msk.f32.vlgmr.msra.gmra.mxu1 %vm635_vm5, %v3300_v20  ;;  %v3302_v34 = vmul.f32 %v5084_v19, %v6391_v59 }
0x111f   :  { %4852 = vmatprep.mubr.msk.f32.mxu1 %vm635_vm5, %v3302_v34 }
0x1120   :  { %v5086_v27 = vpop.eup %5085 }
0x1121   :  { %4853 = vmatmul.mubr.msk.f32.gmra.mxu1 %vm635_vm5, %v3304_v7  ;;  %v3308_v51 = vmul.f32 %v5086_v27, %v6395_v55 }
0x1124   :  { %v5088_v31 = vpop.eup %5087 }
0x1125   :  { %v3306_v45 = vmul.f32 %v5088_v31, %v6399_v25 }
0x1127   :  { %4855 = vmatprep.mubr.msk.f32.mxu1 %vm635_vm5, %v3306_v45 }
0x1128   :  { %4856 = vmatmul.mubr.msk.f32.gmra.mxu1 %vm635_vm5, %v3308_v51 }
0x11c4   :  { %v4836_v59 = vpop.f32.mrf.mxu0 }
0x11c5   :  { %v3560_v37 = vmul.f32 %v4836_v59, %v5362_v58 }
0x11c6   :  { %v3405_v61 = vpop.f32.mrf.mxu0 }
0x11c7   :  { %v3559_v14 = vmul.f32 %v5362_v58, %v3405_v61 }
0x11c8   :  { %v4839_v2 = vpop.f32.mrf.mxu0 }
0x11c9   :  { %v3565_v30 = vmul.f32 %v4839_v2, %v5400_v28 }
0x11ca   :  { %v3415_v25 = vpop.f32.mrf.mxu0 }
0x11cb   :  { %v3571_v0 = vadd.f32 %v3565_v30, %v3559_v14  ;;  %v3561_v54 = vmul.f32 %v5362_v58, %v3415_v25 }
0x11cd   :  { %4860 = vmatprep.mubr.msk.f32.mxu0 %vm209_vm0, %v3571_v0 }
0x11d8   :  { %v4842_v49 = vpop.f32.mrf.mxu0 }
0x11d9   :  { %v3567_v55 = vmul.f32 %v4842_v49, %v5400_v28 }
0x11da   :  { %v3425_v56 = vpop.f32.mrf.mxu0 }
0x11db   :  { %v3566_v12 = vmul.f32 %v5400_v28, %v3425_v56  ;;  %v3573_v32 = vadd.f32 %v3567_v55, %v3561_v54 }
0x11dd   :  { %v3572_v5 = vadd.f32 %v3566_v12, %v3560_v37  ;;  %v4851_v48 = vpop.f32.mrf.mxu1 }
0x11de   :  { %v3563_v47 = vmul.f32 %v4851_v48, %v5362_v58 }
0x11df   :  { %v3530_v35 = vpop.f32.mrf.mxu1  ;;  %4861 = vmatmul.mubr.msk.f32.vlgmr.msra.gmra.mxu0 %vm209_vm0, %v3572_v5 }
0x11e0   :  { %4863 = vmatprep.mubr.msk.f32.mxu0 %vm209_vm0, %v3573_v32  ;;  %v3562_v53 = vmul.f32 %v5362_v58, %v3530_v35 }
0x11e1   :  { %v4854_v8 = vpop.f32.mrf.mxu1 }
0x11e2   :  { %v3568_v15 = vmul.f32 %v4854_v8, %v5400_v28 }
0x11e3   :  { %v3540_v29 = vpop.f32.mrf.mxu1 }
0x11e4   :  { %v3574_v42 = vadd.f32 %v3568_v15, %v3562_v53  ;;  %v3564_v63 = vmul.f32 %v5362_v58, %v3540_v29 }
0x11e6   :  { %4864 = vmatmul.mubr.msk.f32.gmra.mxu0 %vm209_vm0, %v3574_v42 }
0x11e8   :  { %v4857_v23 = vpop.f32.mrf.mxu1 }
0x11e9   :  { %v3570_v21 = vmul.f32 %v4857_v23, %v5400_v28 }
0x11ea   :  { %v3550_v11 = vpop.f32.mrf.mxu1 }
0x11eb   :  { %v3569_v3 = vmul.f32 %v5400_v28, %v3550_v11  ;;  %v3576_v57 = vadd.f32 %v3570_v21, %v3564_v63 }
0x11ed   :  { %v3575_v18 = vadd.f32 %v3569_v3, %v3563_v47 }
0x11ef   :  { %4866 = vmatprep.mubr.msk.f32.mxu0 %vm209_vm0, %v3575_v18  ;;  %v63_v18 = vld [vmem:[%s6555_s3 + $0x8] sm:$0xff] }
0x11f0   :  { %4867 = vmatmul.mubr.msk.f32.gmra.mxu0 %vm209_vm0, %v3576_v57  ;;  %4869 = vmatprep.subr.mxu1 %v63_v18 }
0x11f1   :  { %4870 = vmatpush3.msra.mxu1 %v63_v18 }
0x129f   :  { %v4862_v62 = vpop.f32.mrf.mxu0 }
0x12a0   :  { %v3674_v41 = vadd.f32 %v4862_v62, %v3580_v6 }
0x12a1   :  { %v3668_v50 = vpop.f32.mrf.mxu0 }
0x12a2   :  { %v3698_v16 = vadd.f32 %v3674_v41, %v6207_v24  ;;  %v3669_v22 = vadd.f32 %v3668_v50, %v3580_v6 }
0x12a4   :  { %v3697_v1 = vadd.f32 %v3669_v22, %v6203_v33  ;;  %v3706_v28 = vsel %vm209_vm0, %v3698_v16, 0.0 }
0x12a5   :  { %3707 = vadd.xlane.f32.xlu1 %v3706_v28 }
0x12a6   :  { %v4865_v58 = vpop.f32.mrf.mxu0  ;;  %v3703_v4 = vsel %vm209_vm0, %v3697_v1, 0.0 }
0x12a7   :  { %3704 = vadd.xlane.f32.xlu0 %v3703_v4  ;;  %v3684_v19 = vadd.f32 %v4865_v58, %v3580_v6 }
0x12a8   :  { %v3678_v20 = vpop.f32.mrf.mxu0 }
0x12a9   :  { %v3679_v34 = vadd.f32 %v3678_v20, %v3580_v6  ;;  %v3700_v43 = vadd.f32 %v3684_v19, %v6216_v36 }
0x12ab   :  { %v3699_v38 = vadd.f32 %v3679_v34, %v6214_v52  ;;  %v3712_v33 = vsel %vm209_vm0, %v3700_v43, 0.0 }
0x12ad   :  { %v3709_v7 = vsel %vm209_vm0, %v3699_v38, 0.0 }
0x12ae   :  { %3710 = vadd.xlane.f32.xlu0 %v3709_v7 }
0x12b0   :  { %v4868_v24 = vpop.f32.mrf.mxu0 }
0x12b1   :  { %v3694_v27 = vadd.f32 %v4868_v24, %v3580_v6 }
0x12b2   :  { %v3688_v31 = vpop.f32.mrf.mxu0  ;;  %3713 = vadd.xlane.f32.xlu0 %v3712_v33 }
0x12b3   :  { %v3702_v45 = vadd.f32 %v3694_v27, %v6225_v40  ;;  %v3689_v51 = vadd.f32 %v3688_v31, %v3580_v6 }
0x12b5   :  { %v3701_v13 = vadd.f32 %v3689_v51, %v6223_v26  ;;  %v3718_v59 = vsel %vm209_vm0, %v3702_v45, 0.0 }
0x12b6   :  { %3719 = vadd.xlane.f32.xlu0 %v3718_v59  ;;  %v3794_v59 = vrot.slane %v6190_v60, %v6075_v39 }
0x12b7   :  { %v3715_v52 = vsel %vm209_vm0, %v3701_v13, 0.0 }
0x12b8   :  { %3716 = vadd.xlane.f32.xlu1 %v3715_v52 }
0x132e   :  { %v3708_v36 = vpop.xlane.xlu1 %3707 }
0x132f   :  { %v3722_v61 = vmul.f32 0.125, %v3708_v36 }
0x1330   :  { %v3705_v2 = vpop.xlane.xlu0 %3704 }
0x1331   :  { %v3728_v14 = vsub.f32 %v3698_v16, %v3722_v61  ;;  %v3721_v30 = vmul.f32 0.125, %v3705_v2 }
0x1333   :  { %v3727_v0 = vsub.f32 %v3697_v1, %v3721_v30  ;;  %v3734_v25 = vmul.f32 %v3728_v14, %v3728_v14 }
0x1335   :  { %v3742_v49 = vsel %vm209_vm0, %v3734_v25, 0.0  ;;  %v3733_v55 = vmul.f32 %v3727_v0, %v3727_v0 }
0x1336   :  { %3743 = vadd.xlane.f32.xlu0 %v3742_v49 }
0x1337   :  { %v3711_v40 = vpop.xlane.xlu0 %3710  ;;  %v3739_v26 = vsel %vm209_vm0, %v3733_v55, 0.0 }
0x1338   :  { %v3723_v56 = vmul.f32 0.125, %v3711_v40  ;;  %3740 = vadd.xlane.f32.xlu1 %v3739_v26 }
0x133a   :  { %v3729_v37 = vsub.f32 %v3699_v38, %v3723_v56  ;;  %v3784_v38 = vrot.slane %v6190_v60, %v5901_v17 }
0x133b   :  { %v3714_v12 = vpop.xlane.xlu0 %3713 }
0x133c   :  { %v3724_v54 = vmul.f32 0.125, %v3714_v12  ;;  %v3735_v5 = vmul.f32 %v3729_v37, %v3729_v37 }
0x133e   :  { %v3730_v48 = vsub.f32 %v3700_v43, %v3724_v54  ;;  %v3745_v32 = vsel %vm209_vm0, %v3735_v5, 0.0 }
0x133f   :  { %3746 = vadd.xlane.f32.xlu1 %v3745_v32  ;;  %v3720_v35 = vpop.xlane.xlu0 %3719 }
0x1340   :  { %v3726_v8 = vmul.f32 0.125, %v3720_v35  ;;  %v3736_v53 = vmul.f32 %v3730_v48, %v3730_v48  ;;  %v66_v35 = vld [vmem:[#allocation5 + $0x10] sm:$0xff] }
0x1341   :  { %v3717_v15 = vpop.xlane.xlu1 %3716 }
0x1342   :  { %v3732_v42 = vsub.f32 %v3702_v45, %v3726_v8  ;;  %v3725_v29 = vmul.f32 0.125, %v3717_v15  ;;  %v3748_v23 = vsel %vm209_vm0, %v3736_v53, 0.0  ;;  %v5118_v8 = vld [vmem:[%s6557_s5 + $0x10] sm:$0xff] }
0x1343   :  { %3749 = vadd.xlane.f32.xlu0 %v3748_v23  ;;  %v3804_v53 = vrot.slane %v5118_v8, %v5901_v17 }
0x1344   :  { %v3731_v21 = vsub.f32 %v3701_v13, %v3725_v29  ;;  %v3738_v11 = vmul.f32 %v3732_v42, %v3732_v42 }
0x1346   :  { %v3754_v47 = vsel %vm209_vm0, %v3738_v11, 0.0  ;;  %v3737_v3 = vmul.f32 %v3731_v21, %v3731_v21 }
0x1347   :  { %3755 = vadd.xlane.f32.xlu0 %v3754_v47 }
0x1348   :  { %v3751_v63 = vsel %vm209_vm0, %v3737_v3, 0.0 }
0x1349   :  { %3752 = vadd.xlane.f32.xlu1 %v3751_v63 }
0x13bf   :  { %v3744_v57 = vpop.xlane.xlu0 %3743 }
0x13c0   :  { %v3758_v6 = vmul.f32 0.125, %v3744_v57 }
0x13c1   :  { %v3741_v62 = vpop.xlane.xlu1 %3740 }
0x13c2   :  { %v3764_v41 = vadd.f32 1e-05, %v3758_v6  ;;  %v3757_v50 = vmul.f32 0.125, %v3741_v62 }
0x13c4   :  { %5089 = vrsqrt.f32 %v3764_v41  ;;  %v3763_v16 = vadd.f32 1e-05, %v3757_v50 }
0x13c6   :  { %5091 = vrsqrt.f32 %v3763_v16 }
0x13c8   :  { %v3747_v22 = vpop.xlane.xlu1 %3746 }
0x13c9   :  { %v3759_v1 = vmul.f32 0.125, %v3747_v22 }
0x13cb   :  { %v3765_v28 = vadd.f32 1e-05, %v3759_v1 }
0x13cc   :  { %v3750_v58 = vpop.xlane.xlu0 %3749 }
0x13cd   :  { %5093 = vrsqrt.f32 %v3765_v28  ;;  %v3760_v4 = vmul.f32 0.125, %v3750_v58  ;;  %v3927_v28 = vrot.slane %v5118_v8, %v6075_v39 }
0x13cf   :  { %v3766_v20 = vadd.f32 1e-05, %v3760_v4 }
0x13d0   :  { %v3756_v19 = vpop.xlane.xlu0 %3755 }
0x13d1   :  { %v5090_v34 = vpop.eup %5089  ;;  %5095 = vrsqrt.f32 %v3766_v20  ;;  %v3762_v43 = vmul.f32 0.125, %v3756_v19 }
0x13d2   :  { %v3776_v7 = vmul.f32 %v5090_v34, %v3728_v14  ;;  %v3753_v24 = vpop.xlane.xlu1 %3752 }
0x13d3   :  { %v5092_v27 = vpop.eup %5091  ;;  %v3768_v33 = vadd.f32 1e-05, %v3762_v43  ;;  %v3761_v31 = vmul.f32 0.125, %v3753_v24 }
0x13d4   :  { %v3775_v45 = vmul.f32 %v5092_v27, %v3727_v0  ;;  %v3786_v51 = vmul.f32 %v3784_v38, %v3776_v7 }
0x13d5   :  { %5097 = vrsqrt.f32 %v3768_v33  ;;  %v3767_v13 = vadd.f32 1e-05, %v3761_v31 }
0x13d6   :  { %v3785_v52 = vmul.f32 %v3784_v38, %v3775_v45  ;;  %v3796_v61 = vadd.f32 %v3794_v59, %v3786_v51 }
0x13d7   :  { %5099 = vrsqrt.f32 %v3767_v13 }
0x13d8   :  { %v3795_v36 = vadd.f32 %v3794_v59, %v3785_v52 }
0x13da   :  { %v5094_v2 = vpop.eup %5093  ;;  %4871 = vmatprep.mubr.msk.f32.mxu1 %vm209_vm0, %v3795_v36 }
0x13db   :  { %4872 = vmatmul.mubr.msk.f32.vlgmr.msra.gmra.mxu1 %vm209_vm0, %v3796_v61  ;;  %v3777_v14 = vmul.f32 %v5094_v2, %v3729_v37 }
0x13dd   :  { %v3787_v30 = vmul.f32 %v3784_v38, %v3777_v14 }
0x13de   :  { %v5096_v25 = vpop.eup %5095 }
0x13df   :  { %v6477_v49 = vadd.f32 %v3794_v59, %v3787_v30  ;;  %v3778_v0 = vmul.f32 %v5096_v25, %v3730_v48  ;;  %v67_v48 = vld [vmem:[#allocation5 + $0x18] sm:$0xff] }
0x13e0   :  { %4880 = vmatprep.subr.mxu0 %v67_v48 }
0x13e1   :  { %4874 = vmatprep.mubr.msk.f32.mxu1 %vm209_vm0, %v6477_v49  ;;  %v3788_v55 = vmul.f32 %v3784_v38, %v3778_v0  ;;  %4881 = vmatpush3.msra.mxu0 %v67_v48 }
0x13e2   :  { %v5098_v60 = vpop.eup %5097  ;;  %4882 = vmatprep.subr.mxu0 %v66_v35 }
0x13e3   :  { %v3798_v40 = vadd.f32 %v3794_v59, %v3788_v55  ;;  %v3780_v26 = vmul.f32 %v5098_v60, %v3732_v42  ;;  %4883 = vmatpush3.msra.mxu0 %v66_v35 }
0x13e4   :  { %v5100_v56 = vpop.eup %5099 }
0x13e5   :  { %4875 = vmatmul.mubr.msk.f32.gmra.mxu1 %vm209_vm0, %v3798_v40  ;;  %v3779_v12 = vmul.f32 %v5100_v56, %v3731_v21  ;;  %v3790_v54 = vmul.f32 %v3784_v38, %v3780_v26 }
0x13e7   :  { %v3789_v5 = vmul.f32 %v3784_v38, %v3779_v12  ;;  %v3800_v37 = vadd.f32 %v3794_v59, %v3790_v54 }
0x13e9   :  { %v3799_v32 = vadd.f32 %v3794_v59, %v3789_v5 }
0x13eb   :  { %4877 = vmatprep.mubr.msk.f32.mxu1 %vm209_vm0, %v3799_v32 }
0x13ec   :  { %4878 = vmatmul.mubr.msk.f32.gmra.mxu1 %vm209_vm0, %v3800_v37 }
0x149b   :  { %v4873_v15 = vpop.f32.mrf.mxu1 }
0x149c   :  { %v3895_v42 = vadd.f32 %v4873_v15, %v3804_v53 }
0x149d   :  { %v3889_v29 = vpop.f32.mrf.mxu1 }
0x149e   :  { %v3890_v23 = vadd.f32 %v3889_v29, %v3804_v53  ;;  %v3919_v11 = vmax.f32 %v3895_v42, 0.0 }
0x14a0   :  { %v3918_v21 = vmax.f32 %v3890_v23, 0.0 }
0x14a2   :  { %4884 = vmatprep.mubr.msk.f32.mxu0 %vm1389_vm6, %v3918_v21 }
0x14a3   :  { %4885 = vmatmul.mubr.msk.f32.vlgmr.msra.gmra.mxu0 %vm1389_vm6, %v3919_v11 }
0x14a5   :  { %v4876_v47 = vpop.f32.mrf.mxu1 }
0x14a6   :  { %v3905_v3 = vadd.f32 %v4876_v47, %v3804_v53 }
0x14a7   :  { %v3899_v63 = vpop.f32.mrf.mxu1 }
0x14a8   :  { %v3900_v18 = vadd.f32 %v3899_v63, %v3804_v53  ;;  %v3921_v6 = vmax.f32 %v3905_v3, 0.0 }
0x14aa   :  { %v3920_v57 = vmax.f32 %v3900_v18, 0.0 }
0x14ac   :  { %v4879_v62 = vpop.f32.mrf.mxu1  ;;  %4887 = vmatprep.mubr.msk.f32.mxu0 %vm1389_vm6, %v3920_v57 }
0x14ad   :  { %4888 = vmatmul.mubr.msk.f32.gmra.mxu0 %vm1389_vm6, %v3921_v6  ;;  %v3915_v41 = vadd.f32 %v4879_v62, %v3804_v53 }
0x14ae   :  { %v3909_v50 = vpop.f32.mrf.mxu1 }
0x14af   :  { %v3910_v16 = vadd.f32 %v3909_v50, %v3804_v53  ;;  %v3923_v1 = vmax.f32 %v3915_v41, 0.0  ;;  %v5119_v50 = vld [vmem:[%s6557_s5] sm:$0xff] }
0x14b1   :  { %v3922_v22 = vmax.f32 %v3910_v16, 0.0  ;;  %v4174_v16 = vrot.slane %v5119_v50, 3 }
0x14b3   :  { %4890 = vmatprep.mubr.msk.f32.mxu0 %vm1389_vm6, %v3922_v22  ;;  %4893 = vpush %v4174_v16 }
0x14b4   :  { %4891 = vmatmul.mubr.msk.f32.gmra.mxu0 %vm1389_vm6, %v3923_v1 }
0x1563   :  { %v4886_v58 = vpop.f32.mrf.mxu0 }
0x1564   :  { %v4018_v4 = vadd.f32 %v4886_v58, %v3927_v28 }
0x1565   :  { %v4012_v20 = vpop.f32.mrf.mxu0 }
0x1566   :  { %v4042_v19 = vadd.f32 %v4018_v4, %v3796_v61  ;;  %v4013_v34 = vadd.f32 %v4012_v20, %v3927_v28 }
0x1568   :  { %v4041_v38 = vadd.f32 %v4013_v34, %v3795_v36  ;;  %v4050_v43 = vsel %vm209_vm0, %v4042_v19, 0.0 }
0x1569   :  { %4051 = vadd.xlane.f32.xlu0 %v4050_v43 }
0x156a   :  { %v4047_v7 = vsel %vm209_vm0, %v4041_v38, 0.0 }
0x156b   :  { %4048 = vadd.xlane.f32.xlu1 %v4047_v7 }
0x156d   :  { %v4889_v24 = vpop.f32.mrf.mxu0 }
0x156e   :  { %v4028_v27 = vadd.f32 %v4889_v24, %v3927_v28 }
0x156f   :  { %v4022_v33 = vpop.f32.mrf.mxu0 }
0x1570   :  { %v4044_v31 = vadd.f32 %v4028_v27, %v3798_v40  ;;  %v4023_v45 = vadd.f32 %v4022_v33, %v3927_v28  ;;  %v5120_v27 = vld [vmem:[%s6557_s5 + $0x18] sm:$0xff]  ;;  %s4894_s5 = spop %4893 }
0x1571   :  { %v4128_v33 = vrot.slane %v5120_v27, %v5342_v44 }
0x1572   :  { %v4043_v51 = vadd.f32 %v4023_v45, %v6477_v49  ;;  %v4056_v39 = vsel %vm209_vm0, %v4044_v31, 0.0  ;;  %v4138_v45 = vrot.slane %v5120_v27, %v5272_v10 }
0x1573   :  { %4057 = vadd.xlane.f32.xlu1 %v4056_v39 }
0x1574   :  { %v4892_v13 = vpop.f32.mrf.mxu0  ;;  %v4053_v52 = vsel %vm209_vm0, %v4043_v51, 0.0 }
0x1575   :  { %v4038_v36 = vadd.f32 %v4892_v13, %v3927_v28 }
0x1576   :  { %v4032_v59 = vpop.f32.mrf.mxu0 }
0x1577   :  { %v4033_v61 = vadd.f32 %v4032_v59, %v3927_v28  ;;  %4054 = vadd.xlane.f32.xlu1 %v4053_v52  ;;  %v4046_v14 = vadd.f32 %v4038_v36, %v3800_v37  ;;  %v4148_v52 = vrot.slane %v5119_v50, %v5901_v17 }
0x1579   :  { %v4045_v2 = vadd.f32 %v4033_v61, %v3799_v32  ;;  %v4062_v25 = vsel %vm209_vm0, %v4046_v14, 0.0 }
0x157b   :  { %v4059_v30 = vsel %vm209_vm0, %v4045_v2, 0.0 }
0x157c   :  { %4060 = vadd.xlane.f32.xlu0 %v4059_v30 }
0x1580   :  { %4063 = vadd.xlane.f32.xlu0 %v4062_v25 }
0x15f2   :  { %v4052_v0 = vpop.xlane.xlu0 %4051 }
0x15f3   :  { %v4066_v49 = vmul.f32 0.125, %v4052_v0 }
0x15f4   :  { %v4049_v55 = vpop.xlane.xlu1 %4048 }
0x15f5   :  { %v4072_v60 = vsub.f32 %v4042_v19, %v4066_v49  ;;  %v4065_v40 = vmul.f32 0.125, %v4049_v55 }
0x15f7   :  { %v4071_v26 = vsub.f32 %v4041_v38, %v4065_v40  ;;  %v4078_v56 = vmul.f32 %v4072_v60, %v4072_v60 }
0x15f9   :  { %v4086_v12 = vsel %vm209_vm0, %v4078_v56, 0.0  ;;  %v4077_v54 = vmul.f32 %v4071_v26, %v4071_v26 }
0x15fa   :  { %4087 = vadd.xlane.f32.xlu0 %v4086_v12 }
0x15fb   :  { %v4083_v5 = vsel %vm209_vm0, %v4077_v54, 0.0 }
0x15fc   :  { %v4058_v32 = vpop.xlane.xlu1 %4057  ;;  %4084 = vadd.xlane.f32.xlu1 %v4083_v5 }
0x15fd   :  { %v4068_v37 = vmul.f32 0.125, %v4058_v32 }
0x15ff   :  { %v6504_v48 = vsub.f32 %v4044_v31, %v4068_v37 }
0x1600   :  { %v4055_v35 = vpop.xlane.xlu1 %4054 }
0x1601   :  { %v4067_v8 = vmul.f32 0.125, %v4055_v35  ;;  %v4080_v53 = vmul.f32 %v6504_v48, %v6504_v48 }
0x1603   :  { %v6508_v15 = vsub.f32 %v4043_v51, %v4067_v8  ;;  %v4092_v42 = vsel %vm209_vm0, %v4080_v53, 0.0 }
0x1604   :  { %4093 = vadd.xlane.f32.xlu1 %v4092_v42 }
0x1605   :  { %v4061_v29 = vpop.xlane.xlu0 %4060  ;;  %v4079_v23 = vmul.f32 %v6508_v15, %v6508_v15 }
0x1606   :  { %v4069_v21 = vmul.f32 0.125, %v4061_v29 }
0x1607   :  { %v4089_v11 = vsel %vm209_vm0, %v4079_v23, 0.0 }
0x1608   :  { %v6514_v47 = vsub.f32 %v4045_v2, %v4069_v21  ;;  %4090 = vadd.xlane.f32.xlu1 %v4089_v11 }
0x1609   :  { %v4064_v3 = vpop.xlane.xlu0 %4063 }
0x160a   :  { %v4070_v63 = vmul.f32 0.125, %v4064_v3  ;;  %v4081_v18 = vmul.f32 %v6514_v47, %v6514_v47 }
0x160c   :  { %v6518_v57 = vsub.f32 %v4046_v14, %v4070_v63  ;;  %v4095_v6 = vsel %vm209_vm0, %v4081_v18, 0.0 }
0x160d   :  { %4096 = vadd.xlane.f32.xlu0 %v4095_v6 }
0x160e   :  { %v4082_v62 = vmul.f32 %v6518_v57, %v6518_v57 }
0x1610   :  { %v4098_v41 = vsel %vm209_vm0, %v4082_v62, 0.0 }
0x1611   :  { %4099 = vadd.xlane.f32.xlu0 %v4098_v41 }
0x1683   :  { %v4088_v22 = vpop.xlane.xlu0 %4087 }
0x1684   :  { %v4102_v1 = vmul.f32 0.125, %v4088_v22  ;;  %v4201_v22 = vadd.s32 4294967280, %v5344_v46 }
0x1685   :  { %v4085_v28 = vpop.xlane.xlu1 %4084 }
0x1686   :  { %v4108_v58 = vadd.f32 1e-05, %v4102_v1  ;;  %v4101_v4 = vmul.f32 0.125, %v4085_v28  ;;  %v4194_v1 = vadd.s32 4294967288, %v5344_v46 }
0x1688   :  { %5101 = vrsqrt.f32 %v4108_v58  ;;  %v4107_v20 = vadd.f32 1e-05, %v4101_v4  ;;  %v4192_v58 = vsub.s32 %v5344_v46, %v5269_v9 }
0x168a   :  { %5103 = vrsqrt.f32 %v4107_v20 }
0x168d   :  { %v4094_v19 = vpop.xlane.xlu1 %4093 }
0x168e   :  { %v4104_v34 = vmul.f32 0.125, %v4094_v19  ;;  %v4204_v19 = vsub.s32 %v4201_v22, %v5269_v9 }
0x1690   :  { %v4110_v38 = vadd.f32 1e-05, %v4104_v34 }
0x1691   :  { %v4091_v43 = vpop.xlane.xlu1 %4090 }
0x1692   :  { %5105 = vrsqrt.f32 %v4110_v38  ;;  %v4103_v7 = vmul.f32 0.125, %v4091_v43  ;;  %v4197_v43 = vsub.s32 %v4194_v1, %v5269_v9 }
0x1694   :  { %v4109_v24 = vadd.f32 1e-05, %v4103_v7 }
0x1695   :  { %v5102_v31 = vpop.eup %5101 }
0x1696   :  { %5107 = vrsqrt.f32 %v4109_v24  ;;  %v4097_v51 = vpop.xlane.xlu0 %4096  ;;  %v4120_v39 = vmul.f32 %v5102_v31, %v4072_v60 }
0x1697   :  { %v5104_v13 = vpop.eup %5103  ;;  %v4105_v59 = vmul.f32 0.125, %v4097_v51 }
0x1698   :  { %v4130_v36 = vmul.f32 %v4128_v33, %v4120_v39  ;;  %v4119_v61 = vmul.f32 %v5104_v13, %v4071_v26 }
0x1699   :  { %v4111_v2 = vadd.f32 1e-05, %v4105_v59 }
0x169a   :  { %v4100_v14 = vpop.xlane.xlu0 %4099  ;;  %v4140_v30 = vadd.f32 %v4138_v45, %v4130_v36  ;;  %v4129_v25 = vmul.f32 %v4128_v33, %v4119_v61 }
0x169b   :  { %5109 = vrsqrt.f32 %v4111_v2  ;;  %v4106_v0 = vmul.f32 0.125, %v4100_v14 }
0x169c   :  { %v4150_v49 = vmul.f32 %v4148_v52, %v4140_v30  ;;  %v4139_v44 = vadd.f32 %v4138_v45, %v4129_v25 }
0x169d   :  { %v4112_v55 = vadd.f32 1e-05, %v4106_v0 }
0x169e   :  { %v4158_v10 = vsel %vm209_vm0, %v4150_v49, 0.0  ;;  %v4149_v40 = vmul.f32 %v4148_v52, %v4139_v44 }
0x169f   :  { %v5106_v56 = vpop.eup %5105  ;;  %5111 = vrsqrt.f32 %v4112_v55  ;;  %4159 = vadd.xlane.f32.xlu0 %v4158_v10 }
0x16a0   :  { %v4155_v60 = vsel %vm209_vm0, %v4149_v40, 0.0  ;;  %v4122_v17 = vmul.f32 %v5106_v56, %v6504_v48 }
0x16a1   :  { %4156 = vadd.xlane.f32.xlu1 %v4155_v60 }
0x16a2   :  { %v4132_v26 = vmul.f32 %v4128_v33, %v4122_v17 }
0x16a3   :  { %v5108_v12 = vpop.eup %5107 }
0x16a4   :  { %v4142_v54 = vadd.f32 %v4138_v45, %v4132_v26  ;;  %v4121_v5 = vmul.f32 %v5108_v12, %v6508_v15 }
0x16a6   :  { %v4152_v32 = vmul.f32 %v4148_v52, %v4142_v54  ;;  %v4131_v37 = vmul.f32 %v4128_v33, %v4121_v5 }
0x16a8   :  { %v5110_v35 = vpop.eup %5109  ;;  %v4164_v8 = vsel %vm209_vm0, %v4152_v32, 0.0  ;;  %v4141_v53 = vadd.f32 %v4138_v45, %v4131_v37 }
0x16a9   :  { %4165 = vadd.xlane.f32.xlu1 %v4164_v8  ;;  %v4123_v42 = vmul.f32 %v5110_v35, %v6514_v47 }
0x16aa   :  { %v4151_v29 = vmul.f32 %v4148_v52, %v4141_v53 }
0x16ab   :  { %v4133_v23 = vmul.f32 %v4128_v33, %v4123_v42 }
0x16ac   :  { %v5112_v21 = vpop.eup %5111  ;;  %v4161_v48 = vsel %vm209_vm0, %v4151_v29, 0.0 }
0x16ad   :  { %4162 = vadd.xlane.f32.xlu1 %v4161_v48  ;;  %v4143_v11 = vadd.f32 %v4138_v45, %v4133_v23  ;;  %v4124_v3 = vmul.f32 %v5112_v21, %v6518_v57  ;;  %v4176_v57 = vstv %s4894_s5 }
0x16af   :  { %v4153_v63 = vmul.f32 %v4148_v52, %v4143_v11  ;;  %v4134_v15 = vmul.f32 %v4128_v33, %v4124_v3 }
0x16b1   :  { %v4167_v18 = vsel %vm209_vm0, %v4153_v63, 0.0  ;;  %v4144_v6 = vadd.f32 %v4138_v45, %v4134_v15 }
0x16b2   :  { %4168 = vadd.xlane.f32.xlu0 %v4167_v18 }
0x16b3   :  { %v4154_v62 = vmul.f32 %v4148_v52, %v4144_v6 }
0x16b5   :  { %v4170_v41 = vsel %vm209_vm0, %v4154_v62, 0.0 }
0x16b6   :  { %4171 = vadd.xlane.f32.xlu0 %v4170_v41 }
0x1728   :  { %v4160_v16 = vpop.xlane.xlu0 %4159 }
0x1729   :  { %v4179_v7 = vadd.f32 %v4176_v57, %v4160_v16 }
0x172a   :  { %v4157_v47 = vpop.xlane.xlu1 %4156 }
0x172b   :  { %v4178_v4 = vadd.f32 %v4176_v57, %v4157_v47  ;;  %v4198_v39 = vrot.slane %v4179_v7, %v4197_v43 }
0x172d   :  { %v4193_v27 = vrot.slane %v4178_v4, %v4192_v58 }
0x172f   :  { %v4200_v59 = vsel %vm4199_vm10, %v4198_v39, %v4193_v27 }
0x1732   :  { %v4166_v50 = vpop.xlane.xlu1 %4165 }
0x1733   :  { %v4181_v24 = vadd.f32 %v4176_v57, %v4166_v50 }
0x1735   :  { %v4211_v13 = vrot.slane %v4181_v24, %v4192_v58 }
0x1736   :  { %v4163_v28 = vpop.xlane.xlu1 %4162 }
0x1737   :  { %v4180_v34 = vadd.f32 %v4176_v57, %v4163_v28 }
0x1739   :  { %v4205_v45 = vrot.slane %v4180_v34, %v4204_v19 }
0x173b   :  { %v4169_v20 = vpop.xlane.xlu0 %4168  ;;  %v4207_v36 = vsel %vm4206_vm11, %v4205_v45, %v4200_v59 }
0x173c   :  { %v4182_v38 = vadd.f32 %v4176_v57, %v4169_v20 }
0x173e   :  { %v4215_v33 = vrot.slane %v4182_v38, %v4197_v43 }
0x173f   :  { %v4172_v31 = vpop.xlane.xlu0 %4171 }
0x1740   :  { %v4183_v51 = vadd.f32 %v4176_v57, %v4172_v31  ;;  %v4216_v52 = vsel %vm4199_vm10, %v4215_v33, %v4211_v13 }
0x1742   :  { %v4220_v46 = vrot.slane %v4183_v51, %v4204_v19 }
0x1744   :  { %v4221_v9 = vsel %vm4206_vm11, %v4220_v46, %v4216_v52 }
0x1745   :  { %v4223_v61 = vsel %vm4222_vm12, %v4221_v9, %v4207_v36 }
0x1746   :  { %4226 = vst.msk [vmem:[#allocation7] sm:$0x3] %vm4225_vm13, %v4223_v61 }
0x1747   :  { %5172 = shalt.err (!%p5169_p0)
}
0x1748   :  { %4236 = dma.vmem_to_hbm [thread:$0]  %s4234_s20, 32, %s6559_s7, [#allocation4]  }
0x1749   :  { %5185 = dma.done.wait [#allocation4], 32  }
0x174a   :  { %5186 = vsyncadd [#allocation4], 4294967264 }
0x174b   :  { %4240 = vsyncpa [#allocation3], 1 }
0x174c   :  { %4241 = vsyncpa [#allocation6], 1 }
0x174d   :  { %4242 = vsyncpa [#allocation4], 1 }

</bundles_post_ra>
